<compile_context>
chip_gen: v7x
topology: tpu7x:2x2x1
jax: 0.10.0
libtpu: 0.0.40
codegen_flags: <defaults>
</compile_context>

<pallas_src>
import jax
import jax.numpy as jnp
from jax.experimental import pallas as pl
from jax.experimental.pallas import tpu as pltpu


# ----------------------------- parameter setup ------------------------------

def _fold_bn(w, b, gamma, beta, mean, var, eps=1e-5):
    """Fold eval-mode BatchNorm1d (+ conv bias) into the conv weight + shift."""
    scale = gamma / jnp.sqrt(var + eps)              # (Cout,)
    w_folded = w * scale[:, None]                    # (Cout, Cin)
    shift = scale * (b - mean) + beta                # (Cout,)
    return w_folded, shift


def init_params(key, input_channel, per_point_mlp1, per_point_mlp2, output_size):
    """Deterministic synthetic parameters matching the module's shapes."""
    def layer(key, cin, cout):
        ks = jax.random.split(key, 6)
        w = jax.random.normal(ks[0], (cout, cin), jnp.float32) * 0.1
        b = jax.random.normal(ks[1], (cout,), jnp.float32) * 0.1
        gamma = 1.0 + 0.1 * jax.random.normal(ks[2], (cout,), jnp.float32)
        beta = 0.1 * jax.random.normal(ks[3], (cout,), jnp.float32)
        mean = 0.1 * jax.random.normal(ks[4], (cout,), jnp.float32)
        var = jnp.abs(jax.random.normal(ks[5], (cout,), jnp.float32)) + 0.5
        return _fold_bn(w, b, gamma, beta, mean, var)

    keys = jax.random.split(key, len(per_point_mlp1) + len(per_point_mlp2) + 1)
    ki = 0
    params1 = []
    cin = input_channel
    for cout in per_point_mlp1:
        params1.append(layer(keys[ki], cin, cout)); ki += 1
        cin = cout
    params2 = []
    cin = cin + per_point_mlp1[1]          # concat [second_layer_out, pooled]
    for cout in per_point_mlp2:
        params2.append(layer(keys[ki], cin, cout)); ki += 1
        cin = cout
    kfc = jax.random.split(keys[ki], 2)
    fc_w = jax.random.normal(kfc[0], (output_size, cin), jnp.float32) * 0.1
    fc_b = jax.random.normal(kfc[1], (output_size,), jnp.float32) * 0.1
    return params1, params2, fc_w, fc_b


def _round_up(v, m):
    return ((v + m - 1) // m) * m


def prepare_kernel_params(params1, params2, fc_w, fc_b, input_channel):
    """Host-side packing: bf16 weights, split concat layer, packed shift matrix."""
    couts1 = [int(w.shape[0]) for w, _ in params1]
    couts2 = [int(w.shape[0]) for w, _ in params2]
    out_ch = int(fc_w.shape[0])
    c_second = couts1[1]          # channels of second_layer_out
    c_pool = couts1[-1]           # channels of the pooled feature
    c_in_pad = _round_up(input_channel, 16)   # bf16 sublane packing is 16

    weights = []
    # mlp1 (pad the first layer's input channels up to the bf16 sublane pack).
    w0, _ = params1[0]
    w0 = jnp.pad(w0, ((0, 0), (0, c_in_pad - input_channel)))
    weights.append(w0.astype(jnp.bfloat16))
    for w, _ in params1[1:]:
        weights.append(w.astype(jnp.bfloat16))
    # mlp2: split the first (concat) layer into [second | pooled] halves.
    w2, _ = params2[0]
    weights.append(w2[:, :c_second].astype(jnp.bfloat16))     # w2a
    weights.append(w2[:, c_second:].astype(jnp.bfloat16))     # w2b
    for w, _ in params2[1:]:
        weights.append(w.astype(jnp.bfloat16))
    weights.append(fc_w.astype(jnp.bfloat16))

    # Pack every shift / bias as one column of a single (C_max, L) f32 array:
    # columns 0..n1-1 -> mlp1, n1..n1+n2-1 -> mlp2, last column -> fc bias.
    shift_cols = [s for _, s in params1] + [s for _, s in params2] + [fc_b]
    c_max = _round_up(max(couts1 + couts2 + [out_ch]), 8)
    shifts = jnp.zeros((c_max, len(shift_cols)), jnp.float32)
    for j, s in enumerate(shift_cols):
        shifts = shifts.at[: s.shape[0], j].set(s)

    meta = dict(c_in_pad=c_in_pad, couts1=couts1, couts2=couts2,
                out_ch=out_ch, c_second=c_second, c_pool=c_pool)
    return weights, shifts, meta


# ----------------------- fully fused kernel (small N) -----------------------

def _make_fused_kernel(meta):
    couts1, couts2 = meta["couts1"], meta["couts2"]
    out_ch, c_pool = meta["out_ch"], meta["c_pool"]
    n1, n2 = len(couts1), len(couts2)
    n_w = n1 + n2 + 2   # mlp1 weights + (w2a, w2b) + mlp2[1:] + fc

    def kernel(x_ref, *args):
        w_refs = args[:n_w]
        shifts_ref = args[n_w]
        out_ref = args[n_w + 1]

        # Per-point MLP 1 (bf16 MXU operands, f32 accumulate + bias + relu).
        h = x_ref[...].astype(jnp.bfloat16)             # (C_in_pad, N)
        second = None
        last = None
        for i in range(n1):
            y = jnp.dot(w_refs[i][...], h, preferred_element_type=jnp.float32)
            last = jnp.maximum(y + shifts_ref[:couts1[i], i:i + 1], 0.0)
            h = last.astype(jnp.bfloat16)
            if i == 1:
                second = h                              # bf16 copy kept live

        # AdaptiveMaxPool1d(1): global max over points (f32).
        pooled = jnp.max(last, axis=-1, keepdims=True)  # (c_pool, 1)

        # Pooled half of the split concat layer: W2b @ pooled.  Broadcast the
        # pooled vector over one 128-lane tile for the MXU, then take column 0
        # (all columns are identical) -> never materializes a c_pool x N
        # broadcast or a (c_second + c_pool) x N concat.
        pooled_tile = jnp.broadcast_to(pooled, (c_pool, 128)).astype(jnp.bfloat16)
        pb = jnp.dot(w_refs[n1 + 1][...], pooled_tile,
                     preferred_element_type=jnp.float32)
        pool_bias = pb[:, 0:1]                          # (couts2[0], 1)

        # First MLP2 layer: relu(W2a @ second + W2b @ pooled + shift).
        y = jnp.dot(w_refs[n1][...], second, preferred_element_type=jnp.float32)
        hf = jnp.maximum(y + pool_bias + shifts_ref[:couts2[0], n1:n1 + 1], 0.0)
        h = hf.astype(jnp.bfloat16)
        for i in range(1, n2):                          # rest of MLP 2
            y = jnp.dot(w_refs[n1 + 1 + i][...], h,
                        preferred_element_type=jnp.float32)
            h = jnp.maximum(y + shifts_ref[:couts2[i], n1 + i:n1 + i + 1],
                            0.0).astype(jnp.bfloat16)
        out = jnp.dot(w_refs[n1 + n2 + 1][...], h,
                      preferred_element_type=jnp.float32)
        out_ref[...] = (out + shifts_ref[:out_ch, n1 + n2:n1 + n2 + 1]
                        ).astype(out_ref.dtype)

    return kernel


def _seg_pointnet_fused(x_pad, weights, shifts, meta, vmem_limit_bytes):
    B, c_in_pad, N = x_pad.shape
    out_ch = meta["out_ch"]
    params = list(weights) + [shifts]
    in_specs = [pl.BlockSpec((None, c_in_pad, N), lambda b: (b, 0, 0))]
    in_specs += [pl.BlockSpec(p.shape, lambda b: (0, 0)) for p in params]
    return pl.pallas_call(
        _make_fused_kernel(meta),
        out_shape=jax.ShapeDtypeStruct((B, out_ch, N), x_pad.dtype),
        grid=(B,),
        in_specs=in_specs,
        out_specs=pl.BlockSpec((None, out_ch, N), lambda b: (b, 0, 0)),
        compiler_params=pltpu.CompilerParams(
            dimension_semantics=("parallel",),
            vmem_limit_bytes=vmem_limit_bytes),
    )(x_pad, *params)


# --------- single-call two-phase tiled kernel (large N, resident VMEM) -------

def _make_two_phase_kernel(meta, tile_n):
    couts1, couts2 = meta["couts1"], meta["couts2"]
    out_ch = meta["out_ch"]
    c_pool = meta["c_pool"]
    n1, n2 = len(couts1), len(couts2)
    n_w = n1 + n2 + 2

    def kernel(x_ref, *args):
        w_refs = args[:n_w]
        shifts_ref = args[n_w]
        out_ref = args[n_w + 1]
        second_ref, pooled_ref, bias_ref = args[n_w + 2:n_w + 5]

        p = pl.program_id(1)      # 0 = mlp1 + pooling, 1 = mlp2 + fc
        t = pl.program_id(2)      # point tile
        off = pl.multiple_of(t * tile_n, 128)

        # ---- phase 0: per-point MLP 1, stash `second` tile, running max ----
        @pl.when(p == 0)
        def _phase0():
            h = x_ref[...].astype(jnp.bfloat16)          # (c_in_pad, tile_n)
            last = None
            for i in range(n1):
                y = jnp.dot(w_refs[i][...], h, preferred_element_type=jnp.float32)
                last = jnp.maximum(y + shifts_ref[:couts1[i], i:i + 1], 0.0)
                h = last.astype(jnp.bfloat16)
                if i == 1:
                    # Resident VMEM stash: no HBM round trip for second_layer_out.
                    second_ref[:, pl.ds(off, tile_n)] = h
            local_max = jnp.max(last, axis=-1, keepdims=True)   # (c_pool, 1)

            @pl.when(t == 0)
            def _():
                pooled_ref[...] = jnp.full((c_pool, 1), -jnp.inf, jnp.float32)

            pooled_ref[...] = jnp.maximum(pooled_ref[...], local_max)

        # ---- phase 1: pooled-branch matvec (once), per-point MLP 2 + fc ----
        @pl.when(p == 1)
        def _phase1():
            @pl.when(t == 0)
            def _():
                pooled_tile = jnp.broadcast_to(
                    pooled_ref[...], (c_pool, 128)).astype(jnp.bfloat16)
                pb = jnp.dot(w_refs[n1 + 1][...], pooled_tile,
                             preferred_element_type=jnp.float32)
                bias_ref[...] = pb[:, 0:1]               # W2b @ pooled

            sec = second_ref[:, pl.ds(off, tile_n)]      # bf16 (c_second, tile_n)
            y = jnp.dot(w_refs[n1][...], sec, preferred_element_type=jnp.float32)
            hf = jnp.maximum(
                y + bias_ref[...] + shifts_ref[:couts2[0], n1:n1 + 1], 0.0)
            h = hf.astype(jnp.bfloat16)
            for i in range(1, n2):
                y = jnp.dot(w_refs[n1 + 1 + i][...], h,
                            preferred_element_type=jnp.float32)
                h = jnp.maximum(
                    y + shifts_ref[:couts2[i], n1 + i:n1 + i + 1], 0.0
                ).astype(jnp.bfloat16)
            out = jnp.dot(w_refs[n1 + n2 + 1][...], h,
                          preferred_element_type=jnp.float32)
            out_ref[...] = (out + shifts_ref[:out_ch, n1 + n2:n1 + n2 + 1]
                            ).astype(out_ref.dtype)

    return kernel


def _seg_pointnet_tiled(x_pad, weights, shifts, meta, tile_n, vmem_limit_bytes):
    B, c_in_pad, N = x_pad.shape
    out_ch = meta["out_ch"]
    couts2 = meta["couts2"]
    c_second, c_pool = meta["c_second"], meta["c_pool"]
    assert tile_n % 128 == 0 and N % tile_n == 0
    nt = N // tile_n

    params = list(weights) + [shifts]
    # Phase 0 streams x tiles; phase 1 pins x at block 0 (no redundant DMAs).
    in_specs = [pl.BlockSpec((None, c_in_pad, tile_n),
                             lambda b, p, t: (b, 0, t * (1 - p)))]
    in_specs += [pl.BlockSpec(w.shape, lambda b, p, t: (0, 0)) for w in params]

    return pl.pallas_call(
        _make_two_phase_kernel(meta, tile_n),
        out_shape=jax.ShapeDtypeStruct((B, out_ch, N), x_pad.dtype),
        grid=(B, 2, nt),
        in_specs=in_specs,
        # Output tiles are only produced in phase 1.
        out_specs=pl.BlockSpec((None, out_ch, tile_n),
                               lambda b, p, t: (b, 0, t * p)),
        scratch_shapes=[
            pltpu.VMEM((c_second, N), jnp.bfloat16),   # resident second_layer_out
            pltpu.VMEM((c_pool, 1), jnp.float32),      # running global max
            pltpu.VMEM((couts2[0], 1), jnp.float32),   # W2b @ pooled bias
        ],
        compiler_params=pltpu.CompilerParams(
            dimension_semantics=("parallel", "arbitrary", "arbitrary"),
            vmem_limit_bytes=vmem_limit_bytes),
    )(x_pad, *params)


# --------------------------------- wrapper -----------------------------------

def _pick_tile_n(N, target=4096):
    """Largest multiple of 128 that divides N and is <= target (>=512 sweet spot)."""
    m = N // 128
    cap = max(1, min(m, target // 128))
    best = 1
    for d in range(1, cap + 1):
        if m % d == 0:
            best = d
    return 128 * best


def seg_pointnet_forward(x, params1, params2, fc_w, fc_b, *, tile_n=None,
                         force_tiled=False, vmem_budget_bytes=48 * 1024 * 1024):
    """x: (B, C_in, N) float32 -> (B, output_size, N) float32.

    The default path is chosen against an explicit VMEM budget (48 MiB is safe
    on v7x's 64 MiB physical VMEM with headroom; raise it on v5e/v6e for very
    large fused N).  Small/moderate N -> fully fused single-block kernel;
    larger N -> single-call two-phase kernel with the `second` activation kept
    resident in VMEM scratch and ~4K-wide point tiles.
    """
    B, c_in, N = x.shape
    assert N % 128 == 0, "point dim must be a multiple of the 128-lane width"
    assert len(params1) >= 2, "module requires at least two per_point_mlp1 layers"
    weights, shifts, meta = prepare_kernel_params(params1, params2, fc_w, fc_b, c_in)
    c_in_pad = meta["c_in_pad"]
    if c_in_pad != c_in:
        x = jnp.pad(x, ((0, 0), (0, c_in_pad - c_in), (0, 0)))

    # Rough live-VMEM estimate of the fused (whole N in one block) path:
    # double-buffered x/out tiles + fat intermediates (~1.6 KB / point) + weights.
    fused_bytes = N * (8 * (c_in_pad + meta["out_ch"]) + 1600) + (1 << 20)
    use_fused = (not force_tiled) and (tile_n is None) and \
        (fused_bytes <= 0.75 * vmem_budget_bytes)
    if use_fused:
        return _seg_pointnet_fused(x, weights, shifts, meta,
                                   int(vmem_budget_bytes))
    if tile_n is None:
        tile_n = _pick_tile_n(N)
    tile_n = min(tile_n, N)
    return _seg_pointnet_tiled(x, weights, shifts, meta, tile_n,
                               int(vmem_budget_bytes))


# ------------------------------ pure-JAX reference ---------------------------

def ref_forward(x, params1, params2, fc_w, fc_b):
    """f32 reference with the module's exact forward semantics (BN pre-folded)."""
    prec = jax.lax.Precision.HIGHEST

    def conv_bn_relu(w, s, h):
        return jnp.maximum(
            jnp.einsum("oc,bcn->bon", w, h, precision=prec) + s[None, :, None], 0.0)

    h = x
    second = None
    for i, (w, s) in enumerate(params1):
        h = conv_bn_relu(w, s, h)
        if i == 1:
            second = h
    pooled = jnp.max(h, axis=-1, keepdims=True)
    h = jnp.concatenate([second, jnp.broadcast_to(pooled, h.shape)], axis=1)
    for (w, s) in params2:
        h = conv_bn_relu(w, s, h)
    return jnp.einsum("oc,bcn->bon", fc_w, h, precision=prec) + fc_b[None, :, None]


# ------------------------------------ main ------------------------------------

if __name__ == "__main__":
    B, C_IN, N = 2, 4, 1024
    PER_POINT_MLP1 = [32, 64, 128]
    PER_POINT_MLP2 = [128, 64]
    OUTPUT_SIZE = 16

    key = jax.random.PRNGKey(0)
    kx, kp = jax.random.split(key)
    x = jax.random.normal(kx, (B, C_IN, N), jnp.float32)
    params1, params2, fc_w, fc_b = init_params(
        kp, C_IN, PER_POINT_MLP1, PER_POINT_MLP2, OUTPUT_SIZE)

    ref = jax.block_until_ready(ref_forward(x, params1, params2, fc_w, fc_b))

    # bf16 MXU operands with f32 accumulation => ~1% deviation from the f32
    # reference is expected; tolerance is sized accordingly.
    TOL = dict(atol=3e-2, rtol=3e-2)

    # Fully fused path (one block over N per batch element).
    out_fused = jax.block_until_ready(
        seg_pointnet_forward(x, params1, params2, fc_w, fc_b))
    assert out_fused.shape == (B, OUTPUT_SIZE, N), out_fused.shape
    assert jnp.allclose(out_fused, ref, **TOL), \
        float(jnp.max(jnp.abs(out_fused - ref)))

    # Two-phase tiled path (resident `second` scratch + running-max pooling);
    # tile_n=512 here only to exercise multi-tile accumulation at this tiny N.
    out_tiled = jax.block_until_ready(
        seg_pointnet_forward(x, params1, params2, fc_w, fc_b,
                             tile_n=512, force_tiled=True))
    assert out_tiled.shape == (B, OUTPUT_SIZE, N), out_tiled.shape
    assert jnp.allclose(out_tiled, ref, **TOL), \
        float(jnp.max(jnp.abs(out_tiled - ref)))

    print("KERNEL_OK")
</pallas_src>

<mosaic_0001>
module attributes {stable_mosaic.version = 11 : i64} {
  func.func @kernel(%arg0: i32, %arg1: memref<1x16x1024xf32, #tpu.memory_space<vmem>>, %arg2: memref<32x16xbf16, #tpu.memory_space<vmem>>, %arg3: memref<64x32xbf16, #tpu.memory_space<vmem>>, %arg4: memref<128x64xbf16, #tpu.memory_space<vmem>>, %arg5: memref<128x64xbf16, #tpu.memory_space<vmem>>, %arg6: memref<128x128xbf16, #tpu.memory_space<vmem>>, %arg7: memref<64x128xbf16, #tpu.memory_space<vmem>>, %arg8: memref<16x64xbf16, #tpu.memory_space<vmem>>, %arg9: memref<128x6xf32, #tpu.memory_space<vmem>>, %arg10: memref<1x16x1024xf32, #tpu.memory_space<vmem>>) attributes {dimension_semantics = [#tpu.dimension_semantics<parallel>], iteration_bounds = array<i64: 2>, scalar_prefetch = 0 : i64, scratch_operands = 0 : i64, tpu.core_type = #tpu.core_type<tc>, window_params = [{transform_indices = @transform_0, window_bounds = array<i64: 1, 16, 1024>}, {pipeline_mode = #tpu.pipeline_mode<synchronous>, transform_indices = @transform_1, window_bounds = array<i64: 32, 16>}, {pipeline_mode = #tpu.pipeline_mode<synchronous>, transform_indices = @transform_2, window_bounds = array<i64: 64, 32>}, {pipeline_mode = #tpu.pipeline_mode<synchronous>, transform_indices = @transform_3, window_bounds = array<i64: 128, 64>}, {pipeline_mode = #tpu.pipeline_mode<synchronous>, transform_indices = @transform_4, window_bounds = array<i64: 128, 64>}, {pipeline_mode = #tpu.pipeline_mode<synchronous>, transform_indices = @transform_5, window_bounds = array<i64: 128, 128>}, {pipeline_mode = #tpu.pipeline_mode<synchronous>, transform_indices = @transform_6, window_bounds = array<i64: 64, 128>}, {pipeline_mode = #tpu.pipeline_mode<synchronous>, transform_indices = @transform_7, window_bounds = array<i64: 16, 64>}, {pipeline_mode = #tpu.pipeline_mode<synchronous>, transform_indices = @transform_8, window_bounds = array<i64: 128, 6>}, {transform_indices = @transform_9, window_bounds = array<i64: 1, 16, 1024>}]} {
    %c0 = arith.constant 0 : index
    %c0_0 = arith.constant 0 : index
    %c0_1 = arith.constant 0 : index
    %0 = vector.load %arg1[%c0, %c0_0, %c0_1] : memref<1x16x1024xf32, #tpu.memory_space<vmem>>, vector<1x16x1024xf32>
    %1 = vector.shape_cast %0 : vector<1x16x1024xf32> to vector<16x1024xf32>
    %2 = arith.truncf %1 : vector<16x1024xf32> to vector<16x1024xbf16>
    %c0_2 = arith.constant 0 : index
    %c0_3 = arith.constant 0 : index
    %3 = vector.load %arg2[%c0_2, %c0_3] : memref<32x16xbf16, #tpu.memory_space<vmem>>, vector<32x16xbf16>
    %cst = arith.constant dense<0.000000e+00> : vector<32x1024xf32>
    %4 = tpu.matmul %3, %2, %cst {dimension_numbers = #tpu.dot_dimension_numbers<[1], [0], [0], [1], [0, 0, 1, 1], [], []>} : vector<32x16xbf16>, vector<16x1024xbf16>, vector<32x1024xf32> -> vector<32x1024xf32>
    %c0_4 = arith.constant 0 : index
    %c0_5 = arith.constant 0 : index
    %5 = vector.load %arg9[%c0_4, %c0_5] : memref<128x6xf32, #tpu.memory_space<vmem>>, vector<32x1xf32>
    %6 = vector.broadcast %5 : vector<32x1xf32> to vector<32x1024xf32>
    %7 = arith.addf %4, %6 : vector<32x1024xf32>
    %cst_6 = arith.constant 0.000000e+00 : f32
    %8 = vector.broadcast %cst_6 : f32 to vector<32x1024xf32>
    %9 = arith.maximumf %7, %8 : vector<32x1024xf32>
    %10 = arith.truncf %9 : vector<32x1024xf32> to vector<32x1024xbf16>
    %c0_7 = arith.constant 0 : index
    %c0_8 = arith.constant 0 : index
    %11 = vector.load %arg3[%c0_7, %c0_8] : memref<64x32xbf16, #tpu.memory_space<vmem>>, vector<64x32xbf16>
    %cst_9 = arith.constant dense<0.000000e+00> : vector<64x1024xf32>
    %12 = tpu.matmul %11, %10, %cst_9 {dimension_numbers = #tpu.dot_dimension_numbers<[1], [0], [0], [1], [0, 0, 1, 1], [], []>} : vector<64x32xbf16>, vector<32x1024xbf16>, vector<64x1024xf32> -> vector<64x1024xf32>
    %c0_10 = arith.constant 0 : index
    %c1 = arith.constant 1 : index
    %13 = vector.load %arg9[%c0_10, %c1] : memref<128x6xf32, #tpu.memory_space<vmem>>, vector<64x1xf32>
    %14 = vector.broadcast %13 : vector<64x1xf32> to vector<64x1024xf32>
    %15 = arith.addf %12, %14 : vector<64x1024xf32>
    %cst_11 = arith.constant 0.000000e+00 : f32
    %16 = vector.broadcast %cst_11 : f32 to vector<64x1024xf32>
    %17 = arith.maximumf %15, %16 : vector<64x1024xf32>
    %18 = arith.truncf %17 : vector<64x1024xf32> to vector<64x1024xbf16>
    %c0_12 = arith.constant 0 : index
    %c0_13 = arith.constant 0 : index
    %19 = vector.load %arg4[%c0_12, %c0_13] : memref<128x64xbf16, #tpu.memory_space<vmem>>, vector<128x64xbf16>
    %cst_14 = arith.constant dense<0.000000e+00> : vector<128x1024xf32>
    %20 = tpu.matmul %19, %18, %cst_14 {dimension_numbers = #tpu.dot_dimension_numbers<[1], [0], [0], [1], [0, 0, 1, 1], [], []>} : vector<128x64xbf16>, vector<64x1024xbf16>, vector<128x1024xf32> -> vector<128x1024xf32>
    %c0_15 = arith.constant 0 : index
    %c2 = arith.constant 2 : index
    %21 = vector.load %arg9[%c0_15, %c2] : memref<128x6xf32, #tpu.memory_space<vmem>>, vector<128x1xf32>
    %22 = vector.broadcast %21 : vector<128x1xf32> to vector<128x1024xf32>
    %23 = arith.addf %20, %22 : vector<128x1024xf32>
    %cst_16 = arith.constant 0.000000e+00 : f32
    %24 = vector.broadcast %cst_16 : f32 to vector<128x1024xf32>
    %25 = arith.maximumf %23, %24 : vector<128x1024xf32>
    %cst_17 = arith.constant dense<0xFF800000> : vector<128xf32>
    %26 = vector.multi_reduction <maximumf>, %25, %cst_17 [1] : vector<128x1024xf32> to vector<128xf32>
    %27 = vector.shape_cast %26 : vector<128xf32> to vector<128x1xf32>
    %28 = vector.shape_cast %27 : vector<128x1xf32> to vector<128x1xf32>
    %29 = vector.broadcast %28 : vector<128x1xf32> to vector<128x128xf32>
    %30 = arith.truncf %29 : vector<128x128xf32> to vector<128x128xbf16>
    %c0_18 = arith.constant 0 : index
    %c0_19 = arith.constant 0 : index
    %31 = vector.load %arg6[%c0_18, %c0_19] : memref<128x128xbf16, #tpu.memory_space<vmem>>, vector<128x128xbf16>
    %cst_20 = arith.constant dense<0.000000e+00> : vector<128x128xf32>
    %32 = tpu.matmul %31, %30, %cst_20 {dimension_numbers = #tpu.dot_dimension_numbers<[1], [0], [0], [1], [0, 0, 1, 1], [], []>} : vector<128x128xbf16>, vector<128x128xbf16>, vector<128x128xf32> -> vector<128x128xf32>
    %33 = vector.extract_strided_slice %32 {offsets = [0, 0], sizes = [128, 1], strides = [1, 1]} : vector<128x128xf32> to vector<128x1xf32>
    %c0_21 = arith.constant 0 : index
    %c0_22 = arith.constant 0 : index
    %34 = vector.load %arg5[%c0_21, %c0_22] : memref<128x64xbf16, #tpu.memory_space<vmem>>, vector<128x64xbf16>
    %cst_23 = arith.constant dense<0.000000e+00> : vector<128x1024xf32>
    %35 = tpu.matmul %34, %18, %cst_23 {dimension_numbers = #tpu.dot_dimension_numbers<[1], [0], [0], [1], [0, 0, 1, 1], [], []>} : vector<128x64xbf16>, vector<64x1024xbf16>, vector<128x1024xf32> -> vector<128x1024xf32>
    %36 = vector.broadcast %33 : vector<128x1xf32> to vector<128x1024xf32>
    %37 = arith.addf %35, %36 : vector<128x1024xf32>
    %c0_24 = arith.constant 0 : index
    %c3 = arith.constant 3 : index
    %38 = vector.load %arg9[%c0_24, %c3] : memref<128x6xf32, #tpu.memory_space<vmem>>, vector<128x1xf32>
    %39 = vector.broadcast %38 : vector<128x1xf32> to vector<128x1024xf32>
    %40 = arith.addf %37, %39 : vector<128x1024xf32>
    %cst_25 = arith.constant 0.000000e+00 : f32
    %41 = vector.broadcast %cst_25 : f32 to vector<128x1024xf32>
    %42 = arith.maximumf %40, %41 : vector<128x1024xf32>
    %43 = arith.truncf %42 : vector<128x1024xf32> to vector<128x1024xbf16>
    %c0_26 = arith.constant 0 : index
    %c0_27 = arith.constant 0 : index
    %44 = vector.load %arg7[%c0_26, %c0_27] : memref<64x128xbf16, #tpu.memory_space<vmem>>, vector<64x128xbf16>
    %cst_28 = arith.constant dense<0.000000e+00> : vector<64x1024xf32>
    %45 = tpu.matmul %44, %43, %cst_28 {dimension_numbers = #tpu.dot_dimension_numbers<[1], [0], [0], [1], [0, 0, 1, 1], [], []>} : vector<64x128xbf16>, vector<128x1024xbf16>, vector<64x1024xf32> -> vector<64x1024xf32>
    %c0_29 = arith.constant 0 : index
    %c4 = arith.constant 4 : index
    %46 = vector.load %arg9[%c0_29, %c4] : memref<128x6xf32, #tpu.memory_space<vmem>>, vector<64x1xf32>
    %47 = vector.broadcast %46 : vector<64x1xf32> to vector<64x1024xf32>
    %48 = arith.addf %45, %47 : vector<64x1024xf32>
    %cst_30 = arith.constant 0.000000e+00 : f32
    %49 = vector.broadcast %cst_30 : f32 to vector<64x1024xf32>
    %50 = arith.maximumf %48, %49 : vector<64x1024xf32>
    %51 = arith.truncf %50 : vector<64x1024xf32> to vector<64x1024xbf16>
    %c0_31 = arith.constant 0 : index
    %c0_32 = arith.constant 0 : index
    %52 = vector.load %arg8[%c0_31, %c0_32] : memref<16x64xbf16, #tpu.memory_space<vmem>>, vector<16x64xbf16>
    %cst_33 = arith.constant dense<0.000000e+00> : vector<16x1024xf32>
    %53 = tpu.matmul %52, %51, %cst_33 {dimension_numbers = #tpu.dot_dimension_numbers<[1], [0], [0], [1], [0, 0, 1, 1], [], []>} : vector<16x64xbf16>, vector<64x1024xbf16>, vector<16x1024xf32> -> vector<16x1024xf32>
    %c0_34 = arith.constant 0 : index
    %c5 = arith.constant 5 : index
    %54 = vector.load %arg9[%c0_34, %c5] : memref<128x6xf32, #tpu.memory_space<vmem>>, vector<16x1xf32>
    %55 = vector.broadcast %54 : vector<16x1xf32> to vector<16x1024xf32>
    %56 = arith.addf %53, %55 : vector<16x1024xf32>
    %c0_35 = arith.constant 0 : index
    %c0_36 = arith.constant 0 : index
    %c0_37 = arith.constant 0 : index
    %57 = vector.load %arg10[%c0_35, %c0_36, %c0_37] : memref<1x16x1024xf32, #tpu.memory_space<vmem>>, vector<1x16x1024xf32>
    %58 = vector.shape_cast %57 : vector<1x16x1024xf32> to vector<16x1024xf32>
    %59 = vector.shape_cast %56 : vector<16x1024xf32> to vector<1x16x1024xf32>
    tpu.vector_store %arg10[%c0_35, %c0_36, %c0_37], %59 {strides = array<i32>} : memref<1x16x1024xf32, #tpu.memory_space<vmem>>, vector<1x16x1024xf32>,
    return
  }
  func.func @transform_0(%arg0: i32) -> (i32, i32, i32) {
    %c0_i32 = arith.constant 0 : i32
    %c0_i32_0 = arith.constant 0 : i32
    %c0_i32_1 = arith.constant 0 : i32
    return %arg0, %c0_i32, %c0_i32_0 : i32, i32, i32
  }
  func.func @transform_1(%arg0: i32) -> (i32, i32) {
    %c0_i32 = arith.constant 0 : i32
    %c0_i32_0 = arith.constant 0 : i32
    %c0_i32_1 = arith.constant 0 : i32
    return %c0_i32, %c0_i32_0 : i32, i32
  }
  func.func @transform_2(%arg0: i32) -> (i32, i32) {
    %c0_i32 = arith.constant 0 : i32
    %c0_i32_0 = arith.constant 0 : i32
    %c0_i32_1 = arith.constant 0 : i32
    return %c0_i32, %c0_i32_0 : i32, i32
  }
  func.func @transform_3(%arg0: i32) -> (i32, i32) {
    %c0_i32 = arith.constant 0 : i32
    %c0_i32_0 = arith.constant 0 : i32
    %c0_i32_1 = arith.constant 0 : i32
    return %c0_i32, %c0_i32_0 : i32, i32
  }
  func.func @transform_4(%arg0: i32) -> (i32, i32) {
    %c0_i32 = arith.constant 0 : i32
    %c0_i32_0 = arith.constant 0 : i32
    %c0_i32_1 = arith.constant 0 : i32
    return %c0_i32, %c0_i32_0 : i32, i32
  }
  func.func @transform_5(%arg0: i32) -> (i32, i32) {
    %c0_i32 = arith.constant 0 : i32
    %c0_i32_0 = arith.constant 0 : i32
    %c0_i32_1 = arith.constant 0 : i32
    return %c0_i32, %c0_i32_0 : i32, i32
  }
  func.func @transform_6(%arg0: i32) -> (i32, i32) {
    %c0_i32 = arith.constant 0 : i32
    %c0_i32_0 = arith.constant 0 : i32
    %c0_i32_1 = arith.constant 0 : i32
    return %c0_i32, %c0_i32_0 : i32, i32
  }
  func.func @transform_7(%arg0: i32) -> (i32, i32) {
    %c0_i32 = arith.constant 0 : i32
    %c0_i32_0 = arith.constant 0 : i32
    %c0_i32_1 = arith.constant 0 : i32
    return %c0_i32, %c0_i32_0 : i32, i32
  }
  func.func @transform_8(%arg0: i32) -> (i32, i32) {
    %c0_i32 = arith.constant 0 : i32
    %c0_i32_0 = arith.constant 0 : i32
    %c0_i32_1 = arith.constant 0 : i32
    return %c0_i32, %c0_i32_0 : i32, i32
  }
  func.func @transform_9(%arg0: i32) -> (i32, i32, i32) {
    %c0_i32 = arith.constant 0 : i32
    %c0_i32_0 = arith.constant 0 : i32
    %c0_i32_1 = arith.constant 0 : i32
    return %arg0, %c0_i32, %c0_i32_0 : i32, i32, i32
  }
}

</mosaic_0001>

<bundles_post_ra>
// kernel: tpu_custom_call.1
= control target key start
LH: loop header
LB: loop body
LE: loop exit
PB: predicated region body
PF: predicated region fallthrough
CT: control target
= control target key end

     0   :  { %14 = vsyncpa [#allocation3], 0  ;;  %s6504_s0 = inlined_call_operand.vmem [shape: f32[2,16,1024], index: 0, kind: input, shape index: {}]   ;;  %s6505_s1 = inlined_call_operand.vmem [shape: bf16[32,16], index: 1, kind: input, shape index: {}]   ;;  %s6506_s2 = inlined_call_operand.vmem [shape: bf16[64,32], index: 2, kind: input, shape index: {}]   ;;  %s6507_s3 = inlined_call_operand.vmem [shape: bf16[128,64], index: 3, kind: input, shape index: {}]   ;;  %s6508_s4 = inlined_call_operand.vmem [shape: bf16[128,64], index: 4, kind: input, shape index: {}]   ;;  %s6509_s5 = inlined_call_operand.vmem [shape: bf16[128,128], index: 5, kind: input, shape index: {}]   ;;  %s6510_s6 = inlined_call_operand.vmem [shape: bf16[64,128], index: 6, kind: input, shape index: {}]   ;;  %s6511_s7 = inlined_call_operand.hbm [shape: bf16[16,64], index: 7, kind: input, shape index: {}]   ;;  %s6512_s8 = inlined_call_operand.vmem [shape: f32[128,6], index: 8, kind: input, shape index: {}]   ;;  %s6513_s9 = inlined_call_operand.hbm [shape: f32[2,16,1024], index: 9, kind: output, shape index: {}]  }
   0x1   :  { %15 = vsyncpa [#allocation4], 0 }
   0x2   :  { %17 = vsyncpa [#allocation4 + $0x1], 0  ;;  %s4457_s30 = smov 0   ;;  %s4459_s10 = smov 0  }
   0x3   :  { %s4461_s11 = smov 0   ;;  %s4463_s12 = smov 0  }
   0x4 LB: > { %s4478_s13 = sadd.s32 4294967295, %s4393_s12   ;;  %s3969_s14 = sadd.s32 4294967294, %s4393_s12   ;;  %s4393_s12 = sphi %s4463_s12, %s6752_s12   ;;  %s4389_s11 = sphi %s4461_s11, %s6751_s11   ;;  %s4385_s10 = sphi %s4459_s10, %s6750_s10   ;;  %s4381_s30 = sphi %s4457_s30, %s6749_s30  }
   0x5   : > { %s4482_s15 = sadd.s32 1, %s4393_s12   ;;  %s224_s16 = sadd.s32 1, %s4389_s11 }
   0x6   : > { %s221_s17 = ssub.s32 %s4393_s12, %s4482_s15  ;;  %p234_p0 = scmp.ne.s32.totalorder %s4389_s11, %s4385_s10 }
   0x7   : > { %p222_p1 = scmp.eq.s32.totalorder %s221_s17, 0  ;;  %p235_p2 = scmp.eq.s32.totalorder %s4478_s13, 1 }
   0x8   : > { %p240_p3 = scmp.ne.s32.totalorder %s4385_s10, %s4381_s30  ;;  %p241_p4 = scmp.eq.s32.totalorder %s3969_s14, 1 }
   0x9   : > { %s4493_s18 = scalar_select %p222_p1, %s4389_s11, %s224_s16  }
   0xa   : > { %p4495_p5 = por %p235_p2, %p234_p0  ;;  %p4499_p6 = por %p241_p4, %p240_p3 }
   0xb   : > { %p3970_p7 = scmp.ge.s32.totalorder %s4393_s12, 1  ;;  %p248_p8 = scmp.lt.s32.totalorder %s4393_s12, 3 }
   0xc   : > { %s6539_s19 = scalar_select %p4495_p5, 1, 0 }
   0xd   : > { %s6540_s20 = scalar_select %p4499_p6, 1, 0 }
   0xe   : > { %p6514_p9 = scmp.eq.s32.totalorder %s4478_s13, 0  ;;  %p4506_p10 = pnand %p3970_p7, %p248_p8 }
   0xf   : > { %s4395_s22 = smov [#allocation2]   ;;  %s4299_s27 = scalar_lea.hbm %s6511_s7, 128 }
  0x10   : > { %s6541_s21 = scalar_select %p4506_p10, 1, 0 }
  0x11   : > { %s278_s23 = sshll.u32 %s4395_s22, 4  ;;  %p4166_p11 = pneg %p4506_p10  ;;  %s279_s23 = int_to_ptr.vmem [resolvable:$true] %s278_s23 }
  0x12   : > { %p4300_p13 = scmp.ne.s32.totalorder %s6511_s7, %s4299_s27  ;;  %p4306_p3 = scmp.lt.u32.totalorder %s4299_s27, %s6511_s7 }
  0x13   : > { %p4514_p12 = pnand %p6514_p9, %p4166_p11 }
  0x15   : > { %p4301_p0 = pneg %p4514_p12 }
  0x17   : > { %p4302_p1 = pnand %p4301_p0, %p4300_p13 }
  0x19   : > { %p4303_p2 = pneg %p4302_p1 }
  0x1b   : > { %p4308_p4 = pnand %p4306_p3, %p4303_p2 }
  0x1d   : > { %4311 = shalt.err (!%p4308_p4)
}
  0x1e   : > { %s4312_s17 = scalar_lea.vmem %s279_s23, 128  ;;  %p4320_p9 = scmp.lt.s32.totalorder %s279_s23, %s279_s23 }
  0x1f   : > { %p4313_p7 = scmp.ne.s32.totalorder %s279_s23, %s4312_s17  ;;  %p4321_p6 = scmp.lt.s32.totalorder %s4312_s17, %s4312_s17 }
  0x21   : > { %p4315_p8 = pnand %p4313_p7, %p4301_p0  ;;  %p4322_p5 = por %p4321_p6, %p4320_p9 }
  0x23   : > { %p4316_p11 = pneg %p4315_p8 }
  0x25   : > { %p4323_p10 = pnand %p4322_p5, %p4316_p11 }
  0x27   : > { %4326 = shalt.err (!%p4323_p10)
}
  0x28   : > { %s4396_s22 = smov 64   ;;  %s4397_s25 = smov 4  }
  0x29   : > { %4169 = dma.hbm_to_vmem [thread:$0]  (!%p4514_p12), %s6511_s7, 128, %s279_s23, [#allocation3], %s4396_s22, %s4396_s22, %s4397_s25  }
  0x2a   : > { %p6543_p13 = scmp.ne.s32.totalorder %s6541_s21, 0 }
  0x2c   : > { %305 = sbr.rel (%p6543_p13) target bundleno = 1986 (0x7c2), region = 56 }
  0x33   : > { %p6544_p1 = scmp.eq.s32.totalorder %s4478_s13, 0 }
  0x35   : > { %4372 = dma.done.wait (%p6544_p1), [#allocation3], 128   ;;  %p6545_p0 = pmov %p6544_p1 }
  0x36   : > { %p341_p5 = scmp.lt.s32.totalorder %s4478_s13, 1  ;;  %v6517_v0 = vmov 0   ;;  %v4239_v13 = vld [vmem:[%s6505_s1] sm:$0xff]   ;;  %vm409_vm0 = vcmask 130048   ;;  %v377_v27 = vld [vmem:[%s6512_s8 + $0x10] sm:$0xff]  ;;  %v4240_v28 = vld [vmem:[%s6505_s1 + $0x8] sm:$0xff]  }
  0x37   : > { %4374 = vsyncadd (%p6545_p0), [#allocation3], 4294967168  ;;  %448 = vmatprep.mubr.bf16.mxu0 %v6517_v0  ;;  %501 = vmatprep.mubr.bf16.mxu1 %v6517_v0  ;;  %v375_v26 = vld [vmem:[%s6512_s8] sm:$0xff]  ;;  %v376_v29 = vld [vmem:[%s6512_s8 + $0x8] sm:$0xff]  ;;  %v4399_v31 = vmov 1   ;;  %vm752_vm1 = vcmask 261120  }
  0x38   : > { %s342_s24 = scalar_select %p341_p5, %s4478_s13, 1  ;;  %4220 = vset.pattern.permute.xlu0 %v6517_v0  ;;  %4221 = vset.pattern.permute.xlu1 %v6517_v0  ;;  %v378_v30 = vld [vmem:[%s6512_s8 + $0x18] sm:$0xff]  ;;  %v4586_v32 = vld [vmem:[%s6512_s8 + $0x20] sm:$0xff]  ;;  %v4591_v33 = vld [vmem:[%s6512_s8 + $0x28] sm:$0xff]  ;;  %vm1305_vm2 = vcmask 523264  }
  0x39   : > { %381 = vperm.xlu0 %4220, %v375_v26   ;;  %391 = vperm.xlu1 %4221, %v377_v27   ;;  %v4598_v34 = vld [vmem:[%s6512_s8 + $0x30] sm:$0xff]  ;;  %v4603_v35 = vld [vmem:[%s6512_s8 + $0x38] sm:$0xff]  ;;  %s338_s28 = sand.u32 1, %s4385_s10   ;;  %s4111_s23 = sshll.u32 %s4478_s13, 11 }
  0x3a   : > { %s4110_s21 = sshll.u32 %s342_s24, 7  ;;  %s3975_s24 = sshll.u32 %s338_s28, 7 }
  0x3b   : > { %s345_s29 = scalar_lea.vmem %s6504_s0, %s4110_s21  ;;  %s6434_s21 = scalar_lea.vmem [#allocation5], %s3975_s24 }
  0x3c   : > { %v348_v1 = vld [vmem:[%s345_s29 + $0x8] sm:$0xff]  ;;  %v350_v3 = vld [vmem:[%s345_s29 + $0x18] sm:$0xff]  ;;  %v347_v6 = vld [vmem:[%s345_s29] sm:$0xff]  ;;  %s3895_s27 = sshll.u32 %s6434_s21, 4  ;;  %s6454_s13 = scalar_lea.hbm %s6513_s9, %s4111_s23  ;;  %s6456_s27 = int_to_ptr.vmem [resolvable:$true] %s3895_s27 }
  0x3d   : > { %v356_v2 = vld [vmem:[%s345_s29 + $0x48] sm:$0xff]  ;;  %v358_v5 = vld [vmem:[%s345_s29 + $0x58] sm:$0xff]  ;;  %v355_v7 = vld [vmem:[%s345_s29 + $0x40] sm:$0xff]  ;;  %386 = vperm.xlu0 %4220, %v376_v29   ;;  %396 = vperm.xlu1 %4221, %v378_v30   ;;  %s6463_s16 = scalar_lea.sflag [#allocation4], %s338_s28  ;;  %s4327_s17 = scalar_lea.vmem %s6456_s27, 2048 }
  0x3e   : > { %v364_v4 = vpack.c.bf16 %v356_v2, %v348_v1  ;;  %v366_v8 = vpack.c.bf16 %v358_v5, %v350_v3  ;;  %v363_v9 = vpack.c.bf16 %v355_v7, %v347_v6  ;;  %v349_v10 = vld [vmem:[%s345_s29 + $0x10] sm:$0xff]  ;;  %v352_v14 = vld [vmem:[%s345_s29 + $0x28] sm:$0xff]  ;;  %v354_v16 = vld [vmem:[%s345_s29 + $0x38] sm:$0xff]  ;;  %p4328_p6 = scmp.ne.s32.totalorder %s6456_s27, %s4327_s17  ;;  %p6747_p9 = scmp.ne.s32.totalorder %s6539_s19, 0 }
  0x3f   : > { %v357_v11 = vld [vmem:[%s345_s29 + $0x50] sm:$0xff]  ;;  %v360_v15 = vld [vmem:[%s345_s29 + $0x68] sm:$0xff]  ;;  %v362_v17 = vld [vmem:[%s345_s29 + $0x78] sm:$0xff]  ;;  %s4404_s22 = smov [#allocation5]  }
  0x40   : > { %416 = vmatprep.subr.bf16.mxu0 %v364_v4  ;;  %v365_v12 = vpack.c.bf16 %v357_v11, %v349_v10  ;;  %469 = vmatprep.subr.bf16.mxu1 %v366_v8  ;;  %v368_v18 = vpack.c.bf16 %v360_v15, %v352_v14  ;;  %v370_v19 = vpack.c.bf16 %v362_v17, %v354_v16  ;;  %v351_v20 = vld [vmem:[%s345_s29 + $0x20] sm:$0xff]  ;;  %v353_v22 = vld [vmem:[%s345_s29 + $0x30] sm:$0xff]  ;;  %p4329_p10 = pnand %p4328_p6, %p6747_p9  ;;  %s4331_s25 = sshll.u32 %s4404_s22, 4  ;;  %s4332_s25 = int_to_ptr.vmem [resolvable:$false] %s4331_s25 }
  0x41   : > { %417 = vmatpush1.bf16.msra.mxu0 %v363_v9  ;;  %v359_v21 = vld [vmem:[%s345_s29 + $0x60] sm:$0xff]  ;;  %v361_v24 = vld [vmem:[%s345_s29 + $0x70] sm:$0xff]  ;;  %4222 = vset.pattern.permute.xlu0 %v4399_v31  ;;  %s4333_s26 = scalar_lea.vmem %s4332_s25, 4096  ;;  %p4334_p2 = scmp.lt.s32.totalorder %s6456_s27, %s4332_s25 }
  0x42   : > { %470 = vmatpush1.bf16.msra.mxu1 %v365_v12  ;;  %v367_v23 = vpack.c.bf16 %v359_v21, %v351_v20  ;;  %v369_v25 = vpack.c.bf16 %v361_v24, %v353_v22  ;;  %522 = vmatprep.subr.bf16.mxu0 %v368_v18  ;;  %p4330_p12 = pneg %p4329_p10  ;;  %p4335_p3 = scmp.lt.s32.totalorder %s4333_s26, %s4327_s17 }
  0x43   : > { %575 = vmatprep.subr.bf16.mxu1 %v370_v19  ;;  %4223 = vset.pattern.permute.xlu1 %v4399_v31 }
  0x44   : > { %3980 = vmatmul.mubr.msk.bf16.vlgmr.msra.gmra.mrb[0].mxu0 %vm409_vm0, %v4239_v13  ;;  %694 = vperm.xlu0 %4222, %v375_v26   ;;  %p4336_p4 = por %p4335_p3, %p4334_p2 }
  0x45   : > { %3982 = vmatmul.mubr.msk.bf16.vlgmr.msra.gmra.mrb[0].mxu1 %vm409_vm0, %v4239_v13  ;;  %458 = vmatprep.mubr.bf16.mxu0 %v6517_v0 }
  0x46   : > { %511 = vmatprep.mubr.bf16.mxu1 %v6517_v0  ;;  %523 = vmatpush1.bf16.msra.mxu0 %v367_v23  ;;  %p4337_p7 = pnand %p4336_p4, %p4330_p12 }
  0x47   : > { %576 = vmatpush1.bf16.msra.mxu1 %v369_v25  ;;  %699 = vperm.xlu1 %4223, %v376_v29  }
  0x48   : > { %709 = vperm.xlu0 %4222, %v378_v30  }
  0x4b   : > { %704 = vperm.xlu1 %4223, %v377_v27  }
  0x4c   : > { %3981 = vmatmul.mubr.msk.bf16.gmra.mrb[4].mxu0 %vm409_vm0, %v4240_v28  ;;  %719 = vperm.xlu0 %4222, %v4591_v33  }
  0x4d   : > { %3983 = vmatmul.mubr.msk.bf16.gmra.mrb[4].mxu1 %vm409_vm0, %v4240_v28  ;;  %554 = vmatprep.mubr.bf16.mxu0 %v6517_v0 }
  0x4e   : > { %607 = vmatprep.mubr.bf16.mxu1 %v6517_v0 }
  0x4f   : > { %714 = vperm.xlu1 %4223, %v4586_v32  }
  0x50   : > { %729 = vperm.xlu0 %4222, %v4603_v35  }
  0x53   : > { %724 = vperm.xlu1 %4223, %v4598_v34  }
  0x54   : > { %3984 = vmatmul.mubr.msk.bf16.vlgmr.msra.gmra.mrb[8].mxu0 %vm409_vm0, %v4239_v13 }
  0x55   : > { %3986 = vmatmul.mubr.msk.bf16.vlgmr.msra.gmra.mrb[8].mxu1 %vm409_vm0, %v4239_v13  ;;  %564 = vmatprep.mubr.bf16.mxu0 %v6517_v0 }
  0x56   : > { %617 = vmatprep.mubr.bf16.mxu1 %v6517_v0 }
  0x5c   : > { %3985 = vmatmul.mubr.msk.bf16.gmra.mrb[12].mxu0 %vm409_vm0, %v4240_v28 }
  0x5d   : > { %3987 = vmatmul.mubr.msk.bf16.gmra.mrb[12].mxu1 %vm409_vm0, %v4240_v28  ;;  %797 = vmatprep.mubr.bf16.mxu0 %v6517_v0 }
  0x5e   : > { %870 = vmatprep.mubr.bf16.mxu1 %v6517_v0 }
  0xb8   : > { %v4607_v36 = vpop.permute.xlu0 %381  ;;  %v4609_v37 = vpop.permute.xlu1 %391 }
  0xbc   : > { %v4611_v39 = vpop.permute.xlu0 %386  ;;  %v4621_v3 = vpop.permute.xlu1 %396 }
 0x117   : > { %v450_v38 = vpop.f32.mrb[0].mxu0 }
 0x118   : > { %v451_v40 = vadd.f32 %v450_v38, %v4607_v36  ;;  %v503_v41 = vpop.f32.mrb[0].mxu1  ;;  %v452_v42 = vpop.f32.mrb[1].mxu0 }
 0x119   : > { %v504_v43 = vadd.f32 %v503_v41, %v4607_v36  ;;  %v453_v44 = vadd.f32 %v452_v42, %v4607_v36  ;;  %v505_v45 = vpop.f32.mrb[1].mxu1  ;;  %v454_v46 = vpop.f32.mrb[2].mxu0 }
 0x11a   : > { %v506_v47 = vadd.f32 %v505_v45, %v4607_v36  ;;  %v455_v48 = vadd.f32 %v454_v46, %v4611_v39  ;;  %v507_v49 = vpop.f32.mrb[2].mxu1  ;;  %v456_v50 = vpop.f32.mrb[3].mxu0  ;;  %v628_v55 = vmax.f32 %v451_v40, 0.0 }
 0x11b   : > { %v630_v51 = vmax.f32 %v504_v43, 0.0  ;;  %v508_v52 = vadd.f32 %v507_v49, %v4611_v39  ;;  %v457_v53 = vadd.f32 %v456_v50, %v4611_v39  ;;  %v509_v54 = vpop.f32.mrb[3].mxu1  ;;  %v629_v59 = vmax.f32 %v453_v44, 0.0 }
 0x11c   : > { %v631_v56 = vmax.f32 %v506_v47, 0.0  ;;  %v636_v57 = vmax.f32 %v455_v48, 0.0  ;;  %v510_v58 = vadd.f32 %v509_v54, %v4611_v39  ;;  %v4637_v48 = vld [vmem:[%s6506_s2] sm:$0xff]  }
 0x11d   : > { %v638_v60 = vmax.f32 %v508_v52, 0.0  ;;  %v637_v61 = vmax.f32 %v457_v53, 0.0 }
 0x11e   : > { %v660_v62 = vpack.c.bf16 %v636_v57, %v628_v55  ;;  %v639_v63 = vmax.f32 %v510_v58, 0.0 }
 0x11f   : > { %v662_v1 = vpack.c.bf16 %v638_v60, %v630_v51  ;;  %v661_v2 = vpack.c.bf16 %v637_v61, %v629_v59  ;;  %v460_v4 = vpop.f32.mrb[4].mxu0 }
 0x120   : > { %v663_v5 = vpack.c.bf16 %v639_v63, %v631_v56  ;;  %v461_v6 = vadd.f32 %v460_v4, %v4609_v37  ;;  %v513_v7 = vpop.f32.mrb[4].mxu1  ;;  %v462_v8 = vpop.f32.mrb[5].mxu0 }
 0x121   : > { %v514_v9 = vadd.f32 %v513_v7, %v4609_v37  ;;  %v463_v10 = vadd.f32 %v462_v8, %v4609_v37  ;;  %v515_v11 = vpop.f32.mrb[5].mxu1  ;;  %v464_v12 = vpop.f32.mrb[6].mxu0  ;;  %765 = vmatprep.subr.bf16.mxu0 %v661_v2 }
 0x122   : > { %v516_v13 = vadd.f32 %v515_v11, %v4609_v37  ;;  %v465_v14 = vadd.f32 %v464_v12, %v4621_v3  ;;  %v517_v15 = vpop.f32.mrb[6].mxu1  ;;  %838 = vmatprep.subr.bf16.mxu1 %v663_v5  ;;  %v466_v16 = vpop.f32.mrb[7].mxu0  ;;  %766 = vmatpush1.bf16.msra.mxu0 %v660_v62  ;;  %v644_v20 = vmax.f32 %v461_v6, 0.0 }
 0x123   : > { %v518_v17 = vadd.f32 %v517_v15, %v4621_v3  ;;  %v467_v18 = vadd.f32 %v466_v16, %v4621_v3  ;;  %v519_v19 = vpop.f32.mrb[7].mxu1  ;;  %839 = vmatpush1.bf16.msra.mxu1 %v662_v1  ;;  %v646_v23 = vmax.f32 %v514_v9, 0.0  ;;  %v645_v24 = vmax.f32 %v463_v10, 0.0 }
 0x124   : > { %v652_v21 = vmax.f32 %v465_v14, 0.0  ;;  %v520_v22 = vadd.f32 %v519_v19, %v4621_v3  ;;  %v647_v27 = vmax.f32 %v516_v13, 0.0  ;;  %v4242_v13 = vld [vmem:[%s6506_s2 + $0x8] sm:$0xff]  }
 0x125   : > { %v654_v25 = vmax.f32 %v518_v17, 0.0  ;;  %v653_v26 = vmax.f32 %v467_v18, 0.0 }
 0x126   : > { %v668_v28 = vpack.c.bf16 %v652_v21, %v644_v20  ;;  %v655_v29 = vmax.f32 %v520_v22, 0.0 }
 0x127   : > { %v670_v30 = vpack.c.bf16 %v654_v25, %v646_v23  ;;  %v669_v31 = vpack.c.bf16 %v653_v26, %v645_v24  ;;  %v556_v38 = vpop.f32.mrb[8].mxu0 }
 0x128   : > { %v671_v40 = vpack.c.bf16 %v655_v29, %v647_v27  ;;  %v557_v41 = vadd.f32 %v556_v38, %v4607_v36  ;;  %v609_v42 = vpop.f32.mrb[8].mxu1  ;;  %v558_v43 = vpop.f32.mrb[9].mxu0 }
 0x129   : > { %v610_v44 = vadd.f32 %v609_v42, %v4607_v36  ;;  %v559_v45 = vadd.f32 %v558_v43, %v4607_v36  ;;  %v611_v46 = vpop.f32.mrb[9].mxu1  ;;  %v560_v47 = vpop.f32.mrb[10].mxu0  ;;  %767 = vmatprep.subr.bf16.mxu0 %v669_v31  ;;  %v1170_v42 = vld [vmem:[%s6512_s8 + $0x8] sm:$0xff]  ;;  %v4400_v43 = vmov 2  }
 0x12a   : > { %v612_v49 = vadd.f32 %v611_v46, %v4607_v36  ;;  %v561_v50 = vadd.f32 %v560_v47, %v4611_v39  ;;  %v613_v51 = vpop.f32.mrb[10].mxu1  ;;  %840 = vmatprep.subr.bf16.mxu1 %v671_v40  ;;  %v562_v52 = vpop.f32.mrb[11].mxu0  ;;  %768 = vmatpush1.bf16.msra.mxu0 %v668_v28  ;;  %v632_v56 = vmax.f32 %v557_v41, 0.0  ;;  %v4244_v40 = vld [vmem:[%s6506_s2 + $0x18] sm:$0xff]   ;;  %v1169_v41 = vld [vmem:[%s6512_s8] sm:$0xff] }
 0x12b   : > { %v614_v53 = vadd.f32 %v613_v51, %v4611_v39  ;;  %v563_v54 = vadd.f32 %v562_v52, %v4611_v39  ;;  %v615_v55 = vpop.f32.mrb[11].mxu1  ;;  %841 = vmatpush1.bf16.msra.mxu1 %v670_v30  ;;  %v634_v59 = vmax.f32 %v610_v44, 0.0  ;;  %v633_v60 = vmax.f32 %v559_v45, 0.0  ;;  %4224 = vset.pattern.permute.xlu1 %v4400_v43  ;;  %v4704_v44 = vpop.permute.xlu0 %694  ;;  %v1171_v45 = vld [vmem:[%s6512_s8 + $0x10] sm:$0xff]  ;;  %v1172_v51 = vld [vmem:[%s6512_s8 + $0x18] sm:$0xff] }
 0x12c   : > { %v640_v57 = vmax.f32 %v561_v50, 0.0  ;;  %v616_v58 = vadd.f32 %v615_v55, %v4611_v39  ;;  %v635_v62 = vmax.f32 %v612_v49, 0.0  ;;  %4225 = vset.pattern.permute.xlu0 %v4400_v43  ;;  %1187 = vperm.xlu1 %4224, %v1169_v41   ;;  %v4709_v47 = vpop.permute.xlu1 %699 }
 0x12d   : > { %v642_v36 = vmax.f32 %v614_v53, 0.0  ;;  %v641_v61 = vmax.f32 %v563_v54, 0.0  ;;  %3992 = vmatmul.mubr.msk.bf16.vlgmr.msra.gmra.mrb[16].mxu0 %vm752_vm1, %v4637_v48  ;;  %1192 = vperm.xlu0 %4225, %v1170_v42  }
 0x12e   : > { %v664_v63 = vpack.c.bf16 %v640_v57, %v632_v56  ;;  %v643_v1 = vmax.f32 %v616_v58, 0.0  ;;  %3996 = vmatmul.mubr.msk.bf16.vlgmr.msra.gmra.mrb[16].mxu1 %vm752_vm1, %v4637_v48  ;;  %807 = vmatprep.mubr.bf16.mxu0 %v6517_v0 }
 0x12f   : > { %v666_v2 = vpack.c.bf16 %v642_v36, %v634_v59  ;;  %v665_v4 = vpack.c.bf16 %v641_v61, %v633_v60  ;;  %v566_v5 = vpop.f32.mrb[12].mxu0  ;;  %880 = vmatprep.mubr.bf16.mxu1 %v6517_v0 }
 0x130   : > { %v667_v39 = vpack.c.bf16 %v643_v1, %v635_v62  ;;  %v567_v6 = vadd.f32 %v566_v5, %v4609_v37  ;;  %v619_v7 = vpop.f32.mrb[12].mxu1  ;;  %v568_v8 = vpop.f32.mrb[13].mxu0  ;;  %1197 = vperm.xlu1 %4224, %v1171_v45  }
 0x131   : > { %v620_v9 = vadd.f32 %v619_v7, %v4609_v37  ;;  %v569_v10 = vadd.f32 %v568_v8, %v4609_v37  ;;  %v621_v11 = vpop.f32.mrb[13].mxu1  ;;  %v570_v12 = vpop.f32.mrb[14].mxu0  ;;  %911 = vmatprep.subr.bf16.mxu0 %v665_v4  ;;  %1207 = vperm.xlu0 %4225, %v4586_v32  }
 0x132   : > { %v622_v14 = vadd.f32 %v621_v11, %v4609_v37  ;;  %v571_v15 = vadd.f32 %v570_v12, %v4621_v3  ;;  %v623_v16 = vpop.f32.mrb[14].mxu1  ;;  %984 = vmatprep.subr.bf16.mxu1 %v667_v39  ;;  %v572_v17 = vpop.f32.mrb[15].mxu0  ;;  %912 = vmatpush1.bf16.msra.mxu0 %v664_v63  ;;  %v648_v21 = vmax.f32 %v567_v6, 0.0 }
 0x133   : > { %v624_v18 = vadd.f32 %v623_v16, %v4621_v3  ;;  %v573_v19 = vadd.f32 %v572_v17, %v4621_v3  ;;  %v625_v20 = vpop.f32.mrb[15].mxu1  ;;  %985 = vmatpush1.bf16.msra.mxu1 %v666_v2  ;;  %v650_v24 = vmax.f32 %v620_v9, 0.0  ;;  %v649_v25 = vmax.f32 %v569_v10, 0.0  ;;  %v4723_v39 = vpop.permute.xlu1 %704 }
 0x134   : > { %v656_v22 = vmax.f32 %v571_v15, 0.0  ;;  %v626_v23 = vadd.f32 %v625_v20, %v4621_v3  ;;  %v651_v27 = vmax.f32 %v622_v14, 0.0  ;;  %v4243_v3 = vld [vmem:[%s6506_s2 + $0x10] sm:$0xff]   ;;  %1202 = vperm.xlu1 %4224, %v1172_v51   ;;  %v4731_v10 = vpop.permute.xlu0 %709 }
 0x135   : > { %v658_v26 = vmax.f32 %v624_v18, 0.0  ;;  %v657_v37 = vmax.f32 %v573_v19, 0.0  ;;  %3993 = vmatmul.mubr.msk.bf16.gmra.mrb[20].mxu0 %vm752_vm1, %v4242_v13  ;;  %1217 = vperm.xlu0 %4225, %v4598_v34  }
 0x136   : > { %v672_v28 = vpack.c.bf16 %v656_v22, %v648_v21  ;;  %v659_v29 = vmax.f32 %v626_v23, 0.0  ;;  %3997 = vmatmul.mubr.msk.bf16.gmra.mrb[20].mxu1 %vm752_vm1, %v4242_v13  ;;  %817 = vmatprep.mubr.bf16.mxu0 %v6517_v0 }
 0x137   : > { %v674_v30 = vpack.c.bf16 %v658_v26, %v650_v24  ;;  %v673_v31 = vpack.c.bf16 %v657_v37, %v649_v25  ;;  %890 = vmatprep.mubr.bf16.mxu1 %v6517_v0 }
 0x138   : > { %v675_v38 = vpack.c.bf16 %v659_v29, %v651_v27  ;;  %1212 = vperm.xlu1 %4224, %v4591_v33   ;;  %v4755_v43 = vpop.permute.xlu0 %719 }
 0x139   : > { %913 = vmatprep.subr.bf16.mxu0 %v673_v31 }
 0x13a   : > { %986 = vmatprep.subr.bf16.mxu1 %v675_v38  ;;  %914 = vmatpush1.bf16.msra.mxu0 %v672_v28 }
 0x13b   : > { %987 = vmatpush1.bf16.msra.mxu1 %v674_v30 }
 0x13c   : > { %1222 = vperm.xlu1 %4224, %v4603_v35  }
 0x13d   : > { %3994 = vmatmul.mubr.msk.bf16.gmra.mrb[24].mxu0 %vm752_vm1, %v4243_v3 }
 0x13e   : > { %3998 = vmatmul.mubr.msk.bf16.gmra.mrb[24].mxu1 %vm752_vm1, %v4243_v3  ;;  %827 = vmatprep.mubr.bf16.mxu0 %v6517_v0 }
 0x13f   : > { %900 = vmatprep.mubr.bf16.mxu1 %v6517_v0 }
 0x145   : > { %3995 = vmatmul.mubr.msk.bf16.gmra.mrb[28].mxu0 %vm752_vm1, %v4244_v40 }
 0x146   : > { %3999 = vmatmul.mubr.msk.bf16.gmra.mrb[28].mxu1 %vm752_vm1, %v4244_v40  ;;  %943 = vmatprep.mubr.bf16.mxu0 %v6517_v0 }
 0x147   : > { %1016 = vmatprep.mubr.bf16.mxu1 %v6517_v0 }
 0x14d   : > { %4000 = vmatmul.mubr.msk.bf16.vlgmr.msra.gmra.mrb[32].mxu0 %vm752_vm1, %v4637_v48 }
 0x14e   : > { %4004 = vmatmul.mubr.msk.bf16.vlgmr.msra.gmra.mrb[32].mxu1 %vm752_vm1, %v4637_v48  ;;  %953 = vmatprep.mubr.bf16.mxu0 %v6517_v0 }
 0x14f   : > { %1026 = vmatprep.mubr.bf16.mxu1 %v6517_v0 }
 0x155   : > { %4001 = vmatmul.mubr.msk.bf16.gmra.mrb[36].mxu0 %vm752_vm1, %v4242_v13 }
 0x156   : > { %4005 = vmatmul.mubr.msk.bf16.gmra.mrb[36].mxu1 %vm752_vm1, %v4242_v13  ;;  %963 = vmatprep.mubr.bf16.mxu0 %v6517_v0 }
 0x157   : > { %1036 = vmatprep.mubr.bf16.mxu1 %v6517_v0 }
 0x15d   : > { %4002 = vmatmul.mubr.msk.bf16.gmra.mrb[40].mxu0 %vm752_vm1, %v4243_v3 }
 0x15e   : > { %4006 = vmatmul.mubr.msk.bf16.gmra.mrb[40].mxu1 %vm752_vm1, %v4243_v3  ;;  %973 = vmatprep.mubr.bf16.mxu0 %v6517_v0 }
 0x15f   : > { %1046 = vmatprep.mubr.bf16.mxu1 %v6517_v0 }
 0x165   : > { %4003 = vmatmul.mubr.msk.bf16.gmra.mrb[44].mxu0 %vm752_vm1, %v4244_v40 }
 0x166   : > { %4007 = vmatmul.mubr.msk.bf16.gmra.mrb[44].mxu1 %vm752_vm1, %v4244_v40  ;;  %1362 = vmatprep.mubr.bf16.mxu0 %v6517_v0  ;;  %v4751_v40 = vpop.permute.xlu1 %714 }
 0x167   : > { %1475 = vmatprep.mubr.bf16.mxu1 %v6517_v0 }
 0x200   : > { %v799_v46 = vpop.f32.mrb[16].mxu0 }
 0x201   : > { %v800_v48 = vadd.f32 %v799_v46, %v4704_v44  ;;  %v872_v49 = vpop.f32.mrb[16].mxu1  ;;  %v801_v50 = vpop.f32.mrb[17].mxu0 }
 0x202   : > { %v873_v32 = vadd.f32 %v872_v49, %v4704_v44  ;;  %v802_v52 = vadd.f32 %v801_v50, %v4704_v44  ;;  %v874_v53 = vpop.f32.mrb[17].mxu1  ;;  %v803_v54 = vpop.f32.mrb[18].mxu0 }
 0x203   : > { %v875_v55 = vadd.f32 %v874_v53, %v4704_v44  ;;  %v804_v56 = vadd.f32 %v803_v54, %v4709_v47  ;;  %v876_v57 = vpop.f32.mrb[18].mxu1  ;;  %v805_v58 = vpop.f32.mrb[19].mxu0  ;;  %v1057_v34 = vmax.f32 %v800_v48, 0.0 }
 0x204   : > { %v1059_v59 = vmax.f32 %v873_v32, 0.0  ;;  %v877_v60 = vadd.f32 %v876_v57, %v4709_v47  ;;  %v806_v36 = vadd.f32 %v805_v58, %v4709_v47  ;;  %v878_v61 = vpop.f32.mrb[19].mxu1  ;;  %v1058_v2 = vmax.f32 %v802_v52, 0.0 }
 0x205   : > { %v1060_v62 = vmax.f32 %v875_v55, 0.0  ;;  %v1065_v63 = vmax.f32 %v804_v56, 0.0  ;;  %v879_v1 = vadd.f32 %v878_v61, %v4709_v47 }
 0x206   : > { %v1067_v4 = vmax.f32 %v877_v60, 0.0  ;;  %v1066_v5 = vmax.f32 %v806_v36, 0.0 }
 0x207   : > { %v4725_v6 = vpack.c.bf16 %v1065_v63, %v1057_v34  ;;  %v1068_v7 = vmax.f32 %v879_v1, 0.0 }
 0x208   : > { %v4727_v8 = vpack.c.bf16 %v1067_v4, %v1059_v59  ;;  %v4729_v9 = vpack.c.bf16 %v1066_v5, %v1058_v2  ;;  %v809_v11 = vpop.f32.mrb[20].mxu0  ;;  %v4773_v4 = vpop.permute.xlu1 %724 }
 0x209   : > { %v4734_v12 = vpack.c.bf16 %v1068_v7, %v1060_v62  ;;  %v810_v13 = vadd.f32 %v809_v11, %v4723_v39  ;;  %v882_v14 = vpop.f32.mrb[20].mxu1  ;;  %v811_v15 = vpop.f32.mrb[21].mxu0 }
 0x20a   : > { %v883_v16 = vadd.f32 %v882_v14, %v4723_v39  ;;  %v812_v17 = vadd.f32 %v811_v15, %v4723_v39  ;;  %v884_v18 = vpop.f32.mrb[21].mxu1  ;;  %v813_v19 = vpop.f32.mrb[22].mxu0  ;;  %1330 = vmatprep.subr.bf16.mxu0 %v4729_v9  ;;  %v1178_v14 = vld [vmem:[%s6512_s8 + $0x48] sm:$0xff] }
 0x20b   : > { %v885_v20 = vadd.f32 %v884_v18, %v4723_v39  ;;  %v814_v21 = vadd.f32 %v813_v19, %v4731_v10  ;;  %v886_v22 = vpop.f32.mrb[22].mxu1  ;;  %1443 = vmatprep.subr.bf16.mxu1 %v4734_v12  ;;  %v815_v33 = vpop.f32.mrb[23].mxu0  ;;  %1331 = vmatpush1.bf16.msra.mxu0 %v4725_v6  ;;  %v1073_v37 = vmax.f32 %v810_v13, 0.0  ;;  %v1177_v13 = vld [vmem:[%s6512_s8 + $0x40] sm:$0xff] }
 0x20c   : > { %v1075_v23 = vmax.f32 %v883_v16, 0.0  ;;  %v887_v24 = vadd.f32 %v886_v22, %v4731_v10  ;;  %v816_v25 = vadd.f32 %v815_v33, %v4731_v10  ;;  %v888_v26 = vpop.f32.mrb[23].mxu1  ;;  %1444 = vmatpush1.bf16.msra.mxu1 %v4727_v8  ;;  %v1074_v30 = vmax.f32 %v812_v17, 0.0  ;;  %v4783_v15 = vpop.permute.xlu0 %729  ;;  %1227 = vperm.xlu0 %4225, %v1177_v13  }
 0x20d   : > { %v1076_v27 = vmax.f32 %v885_v20, 0.0  ;;  %v1081_v28 = vmax.f32 %v814_v21, 0.0  ;;  %v889_v29 = vadd.f32 %v888_v26, %v4731_v10  ;;  %1232 = vperm.xlu1 %4224, %v1178_v14  }
 0x20e   : > { %v1083_v31 = vmax.f32 %v887_v24, 0.0  ;;  %v1082_v38 = vmax.f32 %v816_v25, 0.0 }
 0x20f   : > { %v4749_v3 = vpack.c.bf16 %v1081_v28, %v1073_v37  ;;  %v1084_v41 = vmax.f32 %v889_v29, 0.0 }
 0x210   : > { %v4753_v42 = vpack.c.bf16 %v1083_v31, %v1075_v23  ;;  %v4757_v45 = vpack.c.bf16 %v1082_v38, %v1074_v30  ;;  %v819_v35 = vpop.f32.mrb[24].mxu0 }
 0x211   : > { %v4759_v46 = vpack.c.bf16 %v1084_v41, %v1076_v27  ;;  %v820_v48 = vadd.f32 %v819_v35, %v4751_v40  ;;  %v892_v49 = vpop.f32.mrb[24].mxu1  ;;  %v821_v50 = vpop.f32.mrb[25].mxu0 }
 0x212   : > { %v893_v51 = vadd.f32 %v892_v49, %v4751_v40  ;;  %v822_v32 = vadd.f32 %v821_v50, %v4751_v40  ;;  %v894_v52 = vpop.f32.mrb[25].mxu1  ;;  %v823_v53 = vpop.f32.mrb[26].mxu0  ;;  %1332 = vmatprep.subr.bf16.mxu0 %v4757_v45 }
 0x213   : > { %v895_v54 = vadd.f32 %v894_v52, %v4751_v40  ;;  %v824_v55 = vadd.f32 %v823_v53, %v4755_v43  ;;  %v896_v56 = vpop.f32.mrb[26].mxu1  ;;  %1445 = vmatprep.subr.bf16.mxu1 %v4759_v46  ;;  %v825_v57 = vpop.f32.mrb[27].mxu0  ;;  %1333 = vmatpush1.bf16.msra.mxu0 %v4749_v3  ;;  %v1089_v36 = vmax.f32 %v820_v48, 0.0 }
 0x214   : > { %v897_v58 = vadd.f32 %v896_v56, %v4755_v43  ;;  %v826_v59 = vadd.f32 %v825_v57, %v4755_v43  ;;  %v898_v60 = vpop.f32.mrb[27].mxu1  ;;  %1446 = vmatpush1.bf16.msra.mxu1 %v4753_v42  ;;  %v1091_v62 = vmax.f32 %v893_v51, 0.0  ;;  %v1090_v63 = vmax.f32 %v822_v32, 0.0 }
 0x215   : > { %v1097_v61 = vmax.f32 %v824_v55, 0.0  ;;  %v899_v34 = vadd.f32 %v898_v60, %v4755_v43  ;;  %v1092_v5 = vmax.f32 %v895_v54, 0.0  ;;  %v1179_v54 = vld [vmem:[%s6512_s8 + $0x50] sm:$0xff]  ;;  %v1180_v55 = vld [vmem:[%s6512_s8 + $0x58] sm:$0xff] }
 0x216   : > { %v1099_v1 = vmax.f32 %v897_v58, 0.0  ;;  %v1098_v2 = vmax.f32 %v826_v59, 0.0  ;;  %1237 = vperm.xlu0 %4225, %v1179_v54   ;;  %1242 = vperm.xlu1 %4224, %v1180_v55  }
 0x217   : > { %v4775_v7 = vpack.c.bf16 %v1097_v61, %v1089_v36  ;;  %v1100_v11 = vmax.f32 %v899_v34, 0.0 }
 0x218   : > { %v4785_v16 = vpack.c.bf16 %v1099_v1, %v1091_v62  ;;  %v4787_v17 = vpack.c.bf16 %v1098_v2, %v1090_v63  ;;  %v829_v18 = vpop.f32.mrb[28].mxu0  ;;  %v4824_v2 = vld [vmem:[%s6507_s3] sm:$0xff]  }
 0x219   : > { %v4789_v19 = vpack.c.bf16 %v1100_v11, %v1092_v5  ;;  %v830_v20 = vadd.f32 %v829_v18, %v4773_v4  ;;  %v902_v21 = vpop.f32.mrb[28].mxu1  ;;  %v831_v22 = vpop.f32.mrb[29].mxu0 }
 0x21a   : > { %v903_v33 = vadd.f32 %v902_v21, %v4773_v4  ;;  %v832_v23 = vadd.f32 %v831_v22, %v4773_v4  ;;  %v904_v24 = vpop.f32.mrb[29].mxu1  ;;  %v833_v25 = vpop.f32.mrb[30].mxu0  ;;  %1334 = vmatprep.subr.bf16.mxu0 %v4787_v17 }
 0x21b   : > { %v905_v26 = vadd.f32 %v904_v24, %v4773_v4  ;;  %v834_v37 = vadd.f32 %v833_v25, %v4783_v15  ;;  %v906_v27 = vpop.f32.mrb[30].mxu1  ;;  %1447 = vmatprep.subr.bf16.mxu1 %v4789_v19  ;;  %v835_v28 = vpop.f32.mrb[31].mxu0  ;;  %1335 = vmatpush1.bf16.msra.mxu0 %v4775_v7  ;;  %v1105_v38 = vmax.f32 %v830_v20, 0.0 }
 0x21c   : > { %v907_v29 = vadd.f32 %v906_v27, %v4783_v15  ;;  %v836_v30 = vadd.f32 %v835_v28, %v4783_v15  ;;  %v908_v31 = vpop.f32.mrb[31].mxu1  ;;  %1448 = vmatpush1.bf16.msra.mxu1 %v4785_v16  ;;  %v1107_v48 = vmax.f32 %v903_v33, 0.0  ;;  %v1106_v49 = vmax.f32 %v832_v23, 0.0 }
 0x21d   : > { %v1113_v41 = vmax.f32 %v834_v37, 0.0  ;;  %v909_v35 = vadd.f32 %v908_v31, %v4783_v15  ;;  %v1108_v32 = vmax.f32 %v905_v26, 0.0 }
 0x21e   : > { %v1115_v50 = vmax.f32 %v907_v29, 0.0  ;;  %v1114_v51 = vmax.f32 %v836_v30, 0.0 }
 0x21f   : > { %v4803_v52 = vpack.c.bf16 %v1113_v41, %v1105_v38  ;;  %v1116_v53 = vmax.f32 %v909_v35, 0.0 }
 0x220   : > { %v4811_v56 = vpack.c.bf16 %v1115_v50, %v1107_v48  ;;  %v4813_v57 = vpack.c.bf16 %v1114_v51, %v1106_v49  ;;  %v945_v58 = vpop.f32.mrb[32].mxu0  ;;  %v1181_v48 = vld [vmem:[%s6512_s8 + $0x60] sm:$0xff] }
 0x221   : > { %v4815_v59 = vpack.c.bf16 %v1116_v53, %v1108_v32  ;;  %v946_v60 = vadd.f32 %v945_v58, %v4704_v44  ;;  %v1018_v36 = vpop.f32.mrb[32].mxu1  ;;  %v947_v61 = vpop.f32.mrb[33].mxu0  ;;  %v4858_v53 = vld [vmem:[%s6507_s3 + $0x8] sm:$0xff]   ;;  %1247 = vperm.xlu0 %4225, %v1181_v48  }
 0x222   : > { %v1019_v34 = vadd.f32 %v1018_v36, %v4704_v44  ;;  %v948_v62 = vadd.f32 %v947_v61, %v4704_v44  ;;  %v1020_v63 = vpop.f32.mrb[33].mxu1  ;;  %v949_v1 = vpop.f32.mrb[34].mxu0  ;;  %1336 = vmatprep.subr.bf16.mxu0 %v4813_v57 }
 0x223   : > { %v1021_v5 = vadd.f32 %v1020_v63, %v4704_v44  ;;  %v950_v11 = vadd.f32 %v949_v1, %v4709_v47  ;;  %v1022_v13 = vpop.f32.mrb[34].mxu1  ;;  %1449 = vmatprep.subr.bf16.mxu1 %v4815_v59  ;;  %v951_v14 = vpop.f32.mrb[35].mxu0  ;;  %1337 = vmatpush1.bf16.msra.mxu0 %v4803_v52  ;;  %v1061_v22 = vmax.f32 %v946_v60, 0.0 }
 0x224   : > { %v1023_v18 = vadd.f32 %v1022_v13, %v4709_v47  ;;  %v952_v20 = vadd.f32 %v951_v14, %v4709_v47  ;;  %v1024_v21 = vpop.f32.mrb[35].mxu1  ;;  %1450 = vmatpush1.bf16.msra.mxu1 %v4811_v56  ;;  %v1063_v23 = vmax.f32 %v1019_v34, 0.0  ;;  %v1062_v24 = vmax.f32 %v948_v62, 0.0 }
 0x225   : > { %v1069_v33 = vmax.f32 %v950_v11, 0.0  ;;  %v1025_v44 = vadd.f32 %v1024_v21, %v4709_v47  ;;  %v1064_v37 = vmax.f32 %v1021_v5, 0.0 }
 0x226   : > { %v1071_v25 = vmax.f32 %v1023_v18, 0.0  ;;  %v1070_v26 = vmax.f32 %v952_v20, 0.0  ;;  %4016 = vmatmul.mubr.msk.bf16.vlgmr.msra.gmra.mrb[48].mxu0 %vm1305_vm2, %v4824_v2 }
 0x227   : > { %v4836_v27 = vpack.c.bf16 %v1069_v33, %v1061_v22  ;;  %v1072_v28 = vmax.f32 %v1025_v44, 0.0  ;;  %4024 = vmatmul.mubr.msk.bf16.vlgmr.msra.gmra.mrb[48].mxu1 %vm1305_vm2, %v4824_v2  ;;  %1372 = vmatprep.mubr.bf16.mxu0 %v6517_v0 }
 0x228   : > { %v4841_v29 = vpack.c.bf16 %v1071_v25, %v1063_v23  ;;  %v4843_v30 = vpack.c.bf16 %v1070_v26, %v1062_v24  ;;  %v955_v47 = vpop.f32.mrb[36].mxu0  ;;  %1485 = vmatprep.mubr.bf16.mxu1 %v6517_v0  ;;  %v1183_v26 = vld [vmem:[%s6512_s8 + $0x70] sm:$0xff] }
 0x229   : > { %v4846_v31 = vpack.c.bf16 %v1072_v28, %v1064_v37  ;;  %v956_v38 = vadd.f32 %v955_v47, %v4723_v39  ;;  %v1028_v41 = vpop.f32.mrb[36].mxu1  ;;  %v957_v35 = vpop.f32.mrb[37].mxu0  ;;  %1257 = vperm.xlu0 %4225, %v1183_v26   ;;  %v4929_v26 = vld [vmem:[%s6507_s3 + $0x18] sm:$0xff]  }
 0x22a   : > { %6546 = vst [vmem:[#allocation8_spill] sm:$0xff] %v4841_v29  ;;  %v1029_v49 = vadd.f32 %v1028_v41, %v4723_v39  ;;  %v958_v50 = vadd.f32 %v957_v35, %v4723_v39  ;;  %v1030_v51 = vpop.f32.mrb[37].mxu1  ;;  %v959_v32 = vpop.f32.mrb[38].mxu0  ;;  %1556 = vmatprep.subr.bf16.mxu0 %v4843_v30  ;;  %v4895_v41 = vld [vmem:[%s6507_s3 + $0x10] sm:$0xff]  }
 0x22b   : > { %v1031_v54 = vadd.f32 %v1030_v51, %v4723_v39  ;;  %v960_v55 = vadd.f32 %v959_v32, %v4731_v10  ;;  %v1032_v58 = vpop.f32.mrb[38].mxu1  ;;  %1669 = vmatprep.subr.bf16.mxu1 %v4846_v31  ;;  %v961_v60 = vpop.f32.mrb[39].mxu0  ;;  %1557 = vmatpush1.bf16.msra.mxu0 %v4836_v27  ;;  %v1077_v62 = vmax.f32 %v956_v38, 0.0  ;;  %v1182_v39 = vld [vmem:[%s6512_s8 + $0x68] sm:$0xff] }
 0x22c   : > { %v1033_v36 = vadd.f32 %v1032_v58, %v4731_v10  ;;  %v962_v61 = vadd.f32 %v961_v60, %v4731_v10  ;;  %v1034_v34 = vpop.f32.mrb[39].mxu1  ;;  %1670 = vmatpush1.bf16.msra.mxu1 %v4841_v29  ;;  %v1079_v5 = vmax.f32 %v1029_v49, 0.0  ;;  %v1078_v11 = vmax.f32 %v958_v50, 0.0  ;;  %1252 = vperm.xlu1 %4224, %v1182_v39  }
 0x22d   : > { %v1085_v63 = vmax.f32 %v960_v55, 0.0  ;;  %v1035_v1 = vadd.f32 %v1034_v34, %v4731_v10  ;;  %v1080_v18 = vmax.f32 %v1031_v54, 0.0  ;;  %v1184_v55 = vld [vmem:[%s6512_s8 + $0x78] sm:$0xff] }
 0x22e   : > { %v1087_v13 = vmax.f32 %v1033_v36, 0.0  ;;  %v1086_v14 = vmax.f32 %v962_v61, 0.0  ;;  %4017 = vmatmul.mubr.msk.bf16.gmra.mrb[52].mxu0 %vm1305_vm2, %v4858_v53 }
 0x22f   : > { %v4873_v20 = vpack.c.bf16 %v1085_v63, %v1077_v62  ;;  %v1088_v21 = vmax.f32 %v1035_v1, 0.0  ;;  %4025 = vmatmul.mubr.msk.bf16.gmra.mrb[52].mxu1 %vm1305_vm2, %v4858_v53  ;;  %1382 = vmatprep.mubr.bf16.mxu0 %v6517_v0 }
 0x230   : > { %v4878_v10 = vpack.c.bf16 %v1087_v13, %v1079_v5  ;;  %v4880_v22 = vpack.c.bf16 %v1086_v14, %v1078_v11  ;;  %v965_v33 = vpop.f32.mrb[40].mxu0  ;;  %1495 = vmatprep.mubr.bf16.mxu1 %v6517_v0  ;;  %1262 = vperm.xlu1 %4224, %v1184_v55  }
 0x231   : > { %v4883_v44 = vpack.c.bf16 %v1088_v21, %v1080_v18  ;;  %v966_v23 = vadd.f32 %v965_v33, %v4751_v40  ;;  %v1038_v24 = vpop.f32.mrb[40].mxu1  ;;  %v967_v25 = vpop.f32.mrb[41].mxu0 }
 0x232   : > { %6547 = vst [vmem:[#allocation9_spill] sm:$0xff] %v4878_v10  ;;  %v1039_v37 = vadd.f32 %v1038_v24, %v4751_v40  ;;  %v968_v28 = vadd.f32 %v967_v25, %v4751_v40  ;;  %v1040_v47 = vpop.f32.mrb[41].mxu1  ;;  %v969_v38 = vpop.f32.mrb[42].mxu0  ;;  %1558 = vmatprep.subr.bf16.mxu0 %v4880_v22 }
 0x233   : > { %6548 = vst [vmem:[#allocation10_spill] sm:$0xff] %v4883_v44  ;;  %v1041_v35 = vadd.f32 %v1040_v47, %v4751_v40  ;;  %v970_v48 = vadd.f32 %v969_v38, %v4755_v43  ;;  %v1042_v49 = vpop.f32.mrb[42].mxu1  ;;  %1671 = vmatprep.subr.bf16.mxu1 %v4883_v44  ;;  %v971_v50 = vpop.f32.mrb[43].mxu0  ;;  %1559 = vmatpush1.bf16.msra.mxu0 %v4873_v20  ;;  %v1093_v40 = vmax.f32 %v966_v23, 0.0 }
 0x234   : > { %v1043_v51 = vadd.f32 %v1042_v49, %v4755_v43  ;;  %v972_v32 = vadd.f32 %v971_v50, %v4755_v43  ;;  %v1044_v54 = vpop.f32.mrb[43].mxu1  ;;  %1672 = vmatpush1.bf16.msra.mxu1 %v4878_v10  ;;  %v1095_v36 = vmax.f32 %v1039_v37, 0.0  ;;  %v1094_v61 = vmax.f32 %v968_v28, 0.0 }
 0x235   : > { %v1101_v58 = vmax.f32 %v970_v48, 0.0  ;;  %v1045_v60 = vadd.f32 %v1044_v54, %v4755_v43  ;;  %v1096_v63 = vmax.f32 %v1041_v35, 0.0 }
 0x236   : > { %v1103_v34 = vmax.f32 %v1043_v51, 0.0  ;;  %v1102_v62 = vmax.f32 %v972_v32, 0.0  ;;  %4018 = vmatmul.mubr.msk.bf16.gmra.mrb[56].mxu0 %vm1305_vm2, %v4895_v41 }
 0x237   : > { %v4910_v1 = vpack.c.bf16 %v1101_v58, %v1093_v40  ;;  %v1104_v39 = vmax.f32 %v1045_v60, 0.0  ;;  %4026 = vmatmul.mubr.msk.bf16.gmra.mrb[56].mxu1 %vm1305_vm2, %v4895_v41  ;;  %1392 = vmatprep.mubr.bf16.mxu0 %v6517_v0 }
 0x238   : > { %v4915_v5 = vpack.c.bf16 %v1103_v34, %v1095_v36  ;;  %v4917_v43 = vpack.c.bf16 %v1102_v62, %v1094_v61  ;;  %v975_v11 = vpop.f32.mrb[44].mxu0  ;;  %1505 = vmatprep.mubr.bf16.mxu1 %v6517_v0  ;;  %v4249_v62 = vld [vmem:[%s6507_s3 + $0x20] sm:$0xff]  }
 0x239   : > { %v4920_v13 = vpack.c.bf16 %v1104_v39, %v1096_v63  ;;  %v976_v14 = vadd.f32 %v975_v11, %v4773_v4  ;;  %v1048_v18 = vpop.f32.mrb[44].mxu1  ;;  %v977_v21 = vpop.f32.mrb[45].mxu0  ;;  %v4250_v63 = vld [vmem:[%s6507_s3 + $0x28] sm:$0xff]   ;;  %v4252_v39 = vld [vmem:[%s6507_s3 + $0x38] sm:$0xff]  }
 0x23a   : > { %6549 = vst [vmem:[#allocation11_spill] sm:$0xff] %v4915_v5  ;;  %v1049_v33 = vadd.f32 %v1048_v18, %v4773_v4  ;;  %v978_v23 = vadd.f32 %v977_v21, %v4773_v4  ;;  %v1050_v24 = vpop.f32.mrb[45].mxu1  ;;  %v979_v25 = vpop.f32.mrb[46].mxu0  ;;  %1560 = vmatprep.subr.bf16.mxu0 %v4917_v43 }
 0x23b   : > { %6550 = vst [vmem:[#allocation12_spill] sm:$0xff] %v4920_v13  ;;  %v1051_v37 = vadd.f32 %v1050_v24, %v4773_v4  ;;  %v980_v28 = vadd.f32 %v979_v25, %v4783_v15  ;;  %v1052_v47 = vpop.f32.mrb[46].mxu1  ;;  %1673 = vmatprep.subr.bf16.mxu1 %v4920_v13  ;;  %v981_v38 = vpop.f32.mrb[47].mxu0  ;;  %1561 = vmatpush1.bf16.msra.mxu0 %v4910_v1  ;;  %v1109_v50 = vmax.f32 %v976_v14, 0.0 }
 0x23c   : > { %v1053_v35 = vadd.f32 %v1052_v47, %v4783_v15  ;;  %v982_v48 = vadd.f32 %v981_v38, %v4783_v15  ;;  %v1054_v49 = vpop.f32.mrb[47].mxu1  ;;  %1674 = vmatpush1.bf16.msra.mxu1 %v4915_v5  ;;  %v1111_v4 = vmax.f32 %v1049_v33, 0.0  ;;  %v1110_v54 = vmax.f32 %v978_v23, 0.0 }
 0x23d   : > { %v1117_v51 = vmax.f32 %v980_v28, 0.0  ;;  %v1055_v32 = vadd.f32 %v1054_v49, %v4783_v15  ;;  %v1112_v58 = vmax.f32 %v1051_v37, 0.0 }
 0x23e   : > { %v1119_v55 = vmax.f32 %v1053_v35, 0.0  ;;  %v1118_v40 = vmax.f32 %v982_v48, 0.0  ;;  %4019 = vmatmul.mubr.msk.bf16.gmra.mrb[60].mxu0 %vm1305_vm2, %v4929_v26 }
 0x23f   : > { %v4941_v60 = vpack.c.bf16 %v1117_v51, %v1109_v50  ;;  %v1120_v36 = vmax.f32 %v1055_v32, 0.0  ;;  %4027 = vmatmul.mubr.msk.bf16.gmra.mrb[60].mxu1 %vm1305_vm2, %v4929_v26  ;;  %1402 = vmatprep.mubr.bf16.mxu0 %v6517_v0 }
 0x240   : > { %v4946_v61 = vpack.c.bf16 %v1119_v55, %v1111_v4  ;;  %v4948_v34 = vpack.c.bf16 %v1118_v40, %v1110_v54  ;;  %1515 = vmatprep.mubr.bf16.mxu1 %v6517_v0 }
 0x241   : > { %v4951_v15 = vpack.c.bf16 %v1120_v36, %v1112_v58 }
 0x242   : > { %6551 = vst [vmem:[#allocation13_spill] sm:$0xff] %v4946_v61  ;;  %1562 = vmatprep.subr.bf16.mxu0 %v4948_v34 }
 0x243   : > { %6552 = vst [vmem:[#allocation14_spill] sm:$0xff] %v4951_v15  ;;  %1675 = vmatprep.subr.bf16.mxu1 %v4951_v15  ;;  %1563 = vmatpush1.bf16.msra.mxu0 %v4941_v60 }
 0x244   : > { %1676 = vmatpush1.bf16.msra.mxu1 %v4946_v61 }
 0x245   : > { %2383 = vmatprep.subr.bf16.mxu1 %v4729_v9  ;;  %v4251_v9 = vld [vmem:[%s6507_s3 + $0x30] sm:$0xff]  }
 0x246   : > { %4020 = vmatmul.mubr.msk.bf16.gmra.mrb[64].mxu0 %vm1305_vm2, %v4249_v62 }
 0x247   : > { %4028 = vmatmul.mubr.msk.bf16.gmra.mrb[64].mxu1 %vm1305_vm2, %v4249_v62  ;;  %1412 = vmatprep.mubr.bf16.mxu0 %v6517_v0 }
 0x248   : > { %1525 = vmatprep.mubr.bf16.mxu1 %v6517_v0 }
 0x24e   : > { %4021 = vmatmul.mubr.msk.bf16.gmra.mrb[68].mxu0 %vm1305_vm2, %v4250_v63 }
 0x24f   : > { %4029 = vmatmul.mubr.msk.bf16.gmra.mrb[68].mxu1 %vm1305_vm2, %v4250_v63  ;;  %1422 = vmatprep.mubr.bf16.mxu0 %v6517_v0 }
 0x250   : > { %1535 = vmatprep.mubr.bf16.mxu1 %v6517_v0 }
 0x256   : > { %4022 = vmatmul.mubr.msk.bf16.gmra.mrb[72].mxu0 %vm1305_vm2, %v4251_v9 }
 0x257   : > { %4030 = vmatmul.mubr.msk.bf16.gmra.mrb[72].mxu1 %vm1305_vm2, %v4251_v9  ;;  %1432 = vmatprep.mubr.bf16.mxu0 %v6517_v0 }
 0x258   : > { %1545 = vmatprep.mubr.bf16.mxu1 %v6517_v0 }
 0x25e   : > { %4023 = vmatmul.mubr.msk.bf16.gmra.mrb[76].mxu0 %vm1305_vm2, %v4252_v39 }
 0x25f   : > { %4031 = vmatmul.mubr.msk.bf16.gmra.mrb[76].mxu1 %vm1305_vm2, %v4252_v39  ;;  %1588 = vmatprep.mubr.bf16.mxu0 %v6517_v0 }
 0x260   : > { %1701 = vmatprep.mubr.bf16.mxu1 %v6517_v0 }
 0x266   : > { %4032 = vmatmul.mubr.msk.bf16.vlgmr.msra.gmra.mrb[80].mxu0 %vm1305_vm2, %v4824_v2 }
 0x267   : > { %4040 = vmatmul.mubr.msk.bf16.vlgmr.msra.gmra.mrb[80].mxu1 %vm1305_vm2, %v4824_v2  ;;  %1598 = vmatprep.mubr.bf16.mxu0 %v6517_v0 }
 0x268   : > { %2384 = vmatpush1.bf16.msra.mxu1 %v4725_v6  ;;  %1711 = vmatprep.mubr.bf16.mxu1 %v6517_v0  ;;  %v4253_v6 = vld [vmem:[%s6508_s4] sm:$0xff]  }
 0x269   : > { %2385 = vmatprep.subr.bf16.mxu1 %v4757_v45  ;;  %v5047_v45 = vpop.permute.xlu0 %1192 }
 0x26c   : > { %2386 = vmatpush1.bf16.msra.mxu1 %v4749_v3  ;;  %v5045_v3 = vpop.permute.xlu1 %1187 }
 0x26d   : > { %2387 = vmatprep.subr.bf16.mxu1 %v4787_v17 }
 0x26e   : > { %4033 = vmatmul.mubr.msk.bf16.gmra.mrb[84].mxu0 %vm1305_vm2, %v4858_v53 }
 0x26f   : > { %4041 = vmatmul.mubr.msk.bf16.gmra.mrb[84].mxu1 %vm1305_vm2, %v4858_v53  ;;  %1608 = vmatprep.mubr.bf16.mxu0 %v6517_v0 }
 0x270   : > { %2388 = vmatpush1.bf16.msra.mxu1 %v4775_v7  ;;  %1721 = vmatprep.mubr.bf16.mxu1 %v6517_v0  ;;  %v5049_v17 = vpop.permute.xlu1 %1197 }
 0x271   : > { %2389 = vmatprep.subr.bf16.mxu1 %v4813_v57 }
 0x274   : > { %2390 = vmatpush1.bf16.msra.mxu1 %v4803_v52  ;;  %v5059_v49 = vpop.permute.xlu1 %1202 }
 0x275   : > { %2609 = vmatprep.subr.bf16.mxu1 %v4843_v30 }
 0x276   : > { %4034 = vmatmul.mubr.msk.bf16.gmra.mrb[88].mxu0 %vm1305_vm2, %v4895_v41 }
 0x277   : > { %4042 = vmatmul.mubr.msk.bf16.gmra.mrb[88].mxu1 %vm1305_vm2, %v4895_v41  ;;  %1618 = vmatprep.mubr.bf16.mxu0 %v6517_v0 }
 0x278   : > { %1731 = vmatprep.mubr.bf16.mxu1 %v6517_v0 }
 0x27e   : > { %4035 = vmatmul.mubr.msk.bf16.gmra.mrb[92].mxu0 %vm1305_vm2, %v4929_v26 }
 0x27f   : > { %4043 = vmatmul.mubr.msk.bf16.gmra.mrb[92].mxu1 %vm1305_vm2, %v4929_v26  ;;  %1628 = vmatprep.mubr.bf16.mxu0 %v6517_v0 }
 0x280   : > { %1741 = vmatprep.mubr.bf16.mxu1 %v6517_v0 }
 0x286   : > { %4036 = vmatmul.mubr.msk.bf16.gmra.mrb[96].mxu0 %vm1305_vm2, %v4249_v62 }
 0x287   : > { %4044 = vmatmul.mubr.msk.bf16.gmra.mrb[96].mxu1 %vm1305_vm2, %v4249_v62  ;;  %1638 = vmatprep.mubr.bf16.mxu0 %v6517_v0 }
 0x288   : > { %1751 = vmatprep.mubr.bf16.mxu1 %v6517_v0 }
 0x28e   : > { %4037 = vmatmul.mubr.msk.bf16.gmra.mrb[100].mxu0 %vm1305_vm2, %v4250_v63 }
 0x28f   : > { %4045 = vmatmul.mubr.msk.bf16.gmra.mrb[100].mxu1 %vm1305_vm2, %v4250_v63  ;;  %1648 = vmatprep.mubr.bf16.mxu0 %v6517_v0 }
 0x290   : > { %1761 = vmatprep.mubr.bf16.mxu1 %v6517_v0 }
 0x296   : > { %4038 = vmatmul.mubr.msk.bf16.gmra.mrb[104].mxu0 %vm1305_vm2, %v4251_v9 }
 0x297   : > { %4046 = vmatmul.mubr.msk.bf16.gmra.mrb[104].mxu1 %vm1305_vm2, %v4251_v9  ;;  %1658 = vmatprep.mubr.bf16.mxu0 %v6517_v0 }
 0x298   : > { %1771 = vmatprep.mubr.bf16.mxu1 %v6517_v0 }
 0x29e   : > { %4039 = vmatmul.mubr.msk.bf16.gmra.mrb[108].mxu0 %vm1305_vm2, %v4252_v39 }
 0x29f   : > { %4047 = vmatmul.mubr.msk.bf16.gmra.mrb[108].mxu1 %vm1305_vm2, %v4252_v39 }
 0x2a0   : > { %2415 = vmatprep.mubr.bf16.mxu1 %v6517_v0 }
 0x2a7   : > { %4064 = vmatmul.mubr.msk.bf16.vlgmr.msra.gmra.mrb[112].mxu1 %vm1305_vm2, %v4253_v6 }
 0x2a8   : > { %2610 = vmatpush1.bf16.msra.mxu1 %v4836_v27  ;;  %2425 = vmatprep.mubr.bf16.mxu1 %v6517_v0 }
 0x2a9   : > { %2611 = vmatprep.subr.bf16.mxu1 %v4880_v22 }
 0x2ac   : > { %2612 = vmatpush1.bf16.msra.mxu1 %v4873_v20 }
 0x2ad   : > { %2613 = vmatprep.subr.bf16.mxu1 %v4917_v43 }
 0x2b0   : > { %2614 = vmatpush1.bf16.msra.mxu1 %v4910_v1 }
 0x2b1   : > { %2615 = vmatprep.subr.bf16.mxu1 %v4948_v34 }
 0x2b4   : > { %2616 = vmatpush1.bf16.msra.mxu1 %v4941_v60 }
 0x2f9   : > { %v1364_v7 = vpop.f32.mrb[48].mxu0 }
 0x2fa   : > { %v1365_v52 = vadd.f32 %v1364_v7, %v5045_v3  ;;  %v1366_v57 = vpop.f32.mrb[49].mxu0  ;;  %v1477_v2 = vpop.f32.mrb[48].mxu1 }
 0x2fb   : > { %v1367_v27 = vadd.f32 %v1366_v57, %v5045_v3  ;;  %v1478_v30 = vadd.f32 %v1477_v2, %v5045_v3  ;;  %v1368_v53 = vpop.f32.mrb[50].mxu0  ;;  %v1479_v20 = vpop.f32.mrb[49].mxu1 }
 0x2fc   : > { %v1782_v22 = vmax.f32 %v1365_v52, 0.0  ;;  %v1369_v41 = vadd.f32 %v1368_v53, %v5047_v45  ;;  %v1480_v1 = vadd.f32 %v1479_v20, %v5045_v3  ;;  %v1370_v43 = vpop.f32.mrb[51].mxu0  ;;  %v1481_v11 = vpop.f32.mrb[50].mxu1 }
 0x2fd   : > { %v1783_v14 = vmax.f32 %v1367_v27, 0.0  ;;  %v1784_v18 = vmax.f32 %v1478_v30, 0.0  ;;  %v1371_v21 = vadd.f32 %v1370_v43, %v5047_v45  ;;  %v1482_v33 = vadd.f32 %v1481_v11, %v5047_v45  ;;  %v1483_v23 = vpop.f32.mrb[51].mxu1 }
 0x2fe   : > { %v1790_v24 = vmax.f32 %v1369_v41, 0.0  ;;  %v1484_v25 = vadd.f32 %v1483_v23, %v5047_v45  ;;  %v1785_v37 = vmax.f32 %v1480_v1, 0.0  ;;  %v5073_v1 = vpop.permute.xlu0 %1207 }
 0x2ff   : > { %v1910_v26 = vmax.f32 %v1782_v22, %v1783_v14  ;;  %v1791_v28 = vmax.f32 %v1371_v21, 0.0  ;;  %v1792_v47 = vmax.f32 %v1482_v33, 0.0  ;;  %v5075_v21 = vpop.permute.xlu1 %1212 }
 0x300   : > { %v1793_v50 = vmax.f32 %v1484_v25, 0.0 }
 0x301   : > { %v1911_v38 = vmax.f32 %v1910_v26, %v1784_v18  ;;  %v1919_v35 = vmax.f32 %v1790_v24, %v1791_v28  ;;  %v1374_v48 = vpop.f32.mrb[52].mxu0 }
 0x302   : > { %v1375_v51 = vadd.f32 %v1374_v48, %v5049_v17  ;;  %v1376_v32 = vpop.f32.mrb[53].mxu0  ;;  %v1487_v4 = vpop.f32.mrb[52].mxu1 }
 0x303   : > { %v5062_v54 = vmax.f32 %v1911_v38, %v1785_v37  ;;  %v1920_v55 = vmax.f32 %v1919_v35, %v1792_v47  ;;  %v1377_v40 = vadd.f32 %v1376_v32, %v5049_v17  ;;  %v1488_v58 = vadd.f32 %v1487_v4, %v5049_v17  ;;  %v1378_v60 = vpop.f32.mrb[54].mxu0  ;;  %v1489_v36 = vpop.f32.mrb[53].mxu1 }
 0x304   : > { %v1798_v34 = vmax.f32 %v1375_v51, 0.0  ;;  %v1379_v62 = vadd.f32 %v1378_v60, %v5059_v49  ;;  %v1490_v63 = vadd.f32 %v1489_v36, %v5049_v17  ;;  %v1380_v9 = vpop.f32.mrb[55].mxu0  ;;  %v1491_v39 = vpop.f32.mrb[54].mxu1 }
 0x305   : > { %v5068_v6 = vmax.f32 %v1920_v55, %v1793_v50  ;;  %v1799_v7 = vmax.f32 %v1377_v40, 0.0  ;;  %v1800_v52 = vmax.f32 %v1488_v58, 0.0  ;;  %v1381_v57 = vadd.f32 %v1380_v9, %v5059_v49  ;;  %v1493_v2 = vpop.f32.mrb[55].mxu1 }
 0x306   : > { %v1806_v27 = vmax.f32 %v1379_v62, 0.0  ;;  %v1492_v30 = vadd.f32 %v1491_v39, %v5059_v49  ;;  %v1494_v53 = vadd.f32 %v1493_v2, %v5059_v49  ;;  %v1801_v22 = vmax.f32 %v1490_v63, 0.0 }
 0x307   : > { %v1928_v20 = vmax.f32 %v1798_v34, %v1799_v7  ;;  %v1807_v41 = vmax.f32 %v1381_v57, 0.0 }
 0x308   : > { %v1808_v43 = vmax.f32 %v1492_v30, 0.0  ;;  %v1809_v33 = vmax.f32 %v1494_v53, 0.0  ;;  %v5091_v53 = vpop.permute.xlu1 %1222 }
 0x309   : > { %v1929_v11 = vmax.f32 %v1928_v20, %v1800_v52  ;;  %v1937_v14 = vmax.f32 %v1806_v27, %v1807_v41  ;;  %v1384_v18 = vpop.f32.mrb[56].mxu0  ;;  %v5089_v52 = vpop.permute.xlu0 %1217 }
 0x30a   : > { %v1385_v23 = vadd.f32 %v1384_v18, %v5073_v1  ;;  %v1386_v24 = vpop.f32.mrb[57].mxu0  ;;  %v1497_v25 = vpop.f32.mrb[56].mxu1 }
 0x30b   : > { %v5078_v26 = vmax.f32 %v1929_v11, %v1801_v22  ;;  %v1938_v37 = vmax.f32 %v1937_v14, %v1808_v43  ;;  %v1387_v28 = vadd.f32 %v1386_v24, %v5073_v1  ;;  %v1498_v47 = vadd.f32 %v1497_v25, %v5073_v1  ;;  %v1388_v38 = vpop.f32.mrb[58].mxu0  ;;  %v1499_v35 = vpop.f32.mrb[57].mxu1 }
 0x30c   : > { %v1814_v48 = vmax.f32 %v1385_v23, 0.0  ;;  %v1389_v50 = vadd.f32 %v1388_v38, %v5075_v21  ;;  %v1500_v51 = vadd.f32 %v1499_v35, %v5073_v1  ;;  %v1390_v32 = vpop.f32.mrb[59].mxu0  ;;  %v1501_v4 = vpop.f32.mrb[58].mxu1 }
 0x30d   : > { %v5084_v55 = vmax.f32 %v1938_v37, %v1809_v33  ;;  %v1815_v40 = vmax.f32 %v1387_v28, 0.0  ;;  %v1816_v58 = vmax.f32 %v1498_v47, 0.0  ;;  %v1391_v60 = vadd.f32 %v1390_v32, %v5075_v21  ;;  %v1503_v36 = vpop.f32.mrb[59].mxu1 }
 0x30e   : > { %v1822_v34 = vmax.f32 %v1389_v50, 0.0  ;;  %v1502_v62 = vadd.f32 %v1501_v4, %v5075_v21  ;;  %v1504_v63 = vadd.f32 %v1503_v36, %v5075_v21  ;;  %v1817_v39 = vmax.f32 %v1500_v51, 0.0 }
 0x30f   : > { %v1946_v9 = vmax.f32 %v1814_v48, %v1815_v40  ;;  %v1823_v7 = vmax.f32 %v1391_v60, 0.0 }
 0x310   : > { %v1824_v57 = vmax.f32 %v1502_v62, 0.0  ;;  %v1825_v20 = vmax.f32 %v1504_v63, 0.0  ;;  %v5105_v62 = vpop.permute.xlu0 %1227 }
 0x311   : > { %v1947_v2 = vmax.f32 %v1946_v9, %v1816_v58  ;;  %v1955_v27 = vmax.f32 %v1822_v34, %v1823_v7  ;;  %v1394_v30 = vpop.f32.mrb[60].mxu0 }
 0x312   : > { %v1395_v22 = vadd.f32 %v1394_v30, %v5089_v52  ;;  %v1396_v41 = vpop.f32.mrb[61].mxu0  ;;  %v1507_v43 = vpop.f32.mrb[60].mxu1 }
 0x313   : > { %v5094_v11 = vmax.f32 %v1947_v2, %v1817_v39  ;;  %v1956_v14 = vmax.f32 %v1955_v27, %v1824_v57  ;;  %v1397_v18 = vadd.f32 %v1396_v41, %v5089_v52  ;;  %v1508_v33 = vadd.f32 %v1507_v43, %v5089_v52  ;;  %v1398_v23 = vpop.f32.mrb[62].mxu0  ;;  %v1509_v24 = vpop.f32.mrb[61].mxu1 }
 0x314   : > { %v1830_v25 = vmax.f32 %v1395_v22, 0.0  ;;  %v1399_v37 = vadd.f32 %v1398_v23, %v5091_v53  ;;  %v1510_v28 = vadd.f32 %v1509_v24, %v5089_v52  ;;  %v1400_v47 = vpop.f32.mrb[63].mxu0  ;;  %v1511_v38 = vpop.f32.mrb[62].mxu1 }
 0x315   : > { %v5100_v35 = vmax.f32 %v1956_v14, %v1825_v20  ;;  %v1831_v48 = vmax.f32 %v1397_v18, 0.0  ;;  %v1832_v50 = vmax.f32 %v1508_v33, 0.0  ;;  %v1401_v51 = vadd.f32 %v1400_v47, %v5091_v53  ;;  %v1513_v32 = vpop.f32.mrb[63].mxu1  ;;  %v5107_v57 = vpop.permute.xlu1 %1232 }
 0x316   : > { %v1838_v4 = vmax.f32 %v1399_v37, 0.0  ;;  %v1512_v40 = vadd.f32 %v1511_v38, %v5091_v53  ;;  %v1514_v58 = vadd.f32 %v1513_v32, %v5091_v53  ;;  %v1833_v36 = vmax.f32 %v1510_v28, 0.0 }
 0x317   : > { %v1964_v60 = vmax.f32 %v1830_v25, %v1831_v48  ;;  %v1839_v34 = vmax.f32 %v1401_v51, 0.0 }
 0x318   : > { %v1840_v63 = vmax.f32 %v1512_v40, 0.0  ;;  %v1841_v2 = vmax.f32 %v1514_v58, 0.0 }
 0x319   : > { %v1965_v9 = vmax.f32 %v1964_v60, %v1832_v50  ;;  %v1973_v39 = vmax.f32 %v1838_v4, %v1839_v34  ;;  %v1404_v7 = vpop.f32.mrb[64].mxu0  ;;  %v5121_v34 = vpop.permute.xlu0 %1237 }
 0x31a   : > { %v1405_v27 = vadd.f32 %v1404_v7, %v5105_v62  ;;  %v1406_v30 = vpop.f32.mrb[65].mxu0  ;;  %v1517_v20 = vpop.f32.mrb[64].mxu1 }
 0x31b   : > { %v5110_v22 = vmax.f32 %v1965_v9, %v1833_v36  ;;  %v1974_v41 = vmax.f32 %v1973_v39, %v1840_v63  ;;  %v1407_v43 = vadd.f32 %v1406_v30, %v5105_v62  ;;  %v1518_v14 = vadd.f32 %v1517_v20, %v5105_v62  ;;  %v1408_v18 = vpop.f32.mrb[66].mxu0  ;;  %v1519_v33 = vpop.f32.mrb[65].mxu1 }
 0x31c   : > { %v1846_v23 = vmax.f32 %v1405_v27, 0.0  ;;  %v1409_v24 = vadd.f32 %v1408_v18, %v5107_v57  ;;  %v1520_v25 = vadd.f32 %v1519_v33, %v5105_v62  ;;  %v1410_v37 = vpop.f32.mrb[67].mxu0  ;;  %v1521_v28 = vpop.f32.mrb[66].mxu1 }
 0x31d   : > { %v5116_v47 = vmax.f32 %v1974_v41, %v1841_v2  ;;  %v1847_v38 = vmax.f32 %v1407_v43, 0.0  ;;  %v1848_v48 = vmax.f32 %v1518_v14, 0.0  ;;  %v1411_v50 = vadd.f32 %v1410_v37, %v5107_v57  ;;  %v1523_v51 = vpop.f32.mrb[67].mxu1  ;;  %v5123_v2 = vpop.permute.xlu1 %1242 }
 0x31e   : > { %v1854_v32 = vmax.f32 %v1409_v24, 0.0  ;;  %v1522_v4 = vadd.f32 %v1521_v28, %v5107_v57  ;;  %v1524_v40 = vadd.f32 %v1523_v51, %v5107_v57  ;;  %v1849_v60 = vmax.f32 %v1520_v25, 0.0 }
 0x31f   : > { %v1982_v58 = vmax.f32 %v1846_v23, %v1847_v38  ;;  %v1855_v36 = vmax.f32 %v1411_v50, 0.0 }
 0x320   : > { %v1856_v63 = vmax.f32 %v1522_v4, 0.0  ;;  %v1857_v27 = vmax.f32 %v1524_v40, 0.0 }
 0x321   : > { %v1983_v9 = vmax.f32 %v1982_v58, %v1848_v48  ;;  %v1991_v39 = vmax.f32 %v1854_v32, %v1855_v36  ;;  %v1414_v7 = vpop.f32.mrb[68].mxu0 }
 0x322   : > { %v1415_v30 = vadd.f32 %v1414_v7, %v5121_v34  ;;  %v1416_v20 = vpop.f32.mrb[69].mxu0  ;;  %v1527_v41 = vpop.f32.mrb[68].mxu1 }
 0x323   : > { %v5126_v43 = vmax.f32 %v1983_v9, %v1849_v60  ;;  %v1992_v14 = vmax.f32 %v1991_v39, %v1856_v63  ;;  %v1417_v18 = vadd.f32 %v1416_v20, %v5121_v34  ;;  %v1528_v33 = vadd.f32 %v1527_v41, %v5121_v34  ;;  %v1418_v23 = vpop.f32.mrb[70].mxu0  ;;  %v1529_v24 = vpop.f32.mrb[69].mxu1 }
 0x324   : > { %v1862_v25 = vmax.f32 %v1415_v30, 0.0  ;;  %v1419_v37 = vadd.f32 %v1418_v23, %v5123_v2  ;;  %v1530_v28 = vadd.f32 %v1529_v24, %v5121_v34  ;;  %v1420_v38 = vpop.f32.mrb[71].mxu0  ;;  %v1531_v48 = vpop.f32.mrb[70].mxu1 }
 0x325   : > { %v5132_v50 = vmax.f32 %v1992_v14, %v1857_v27  ;;  %v1863_v51 = vmax.f32 %v1417_v18, 0.0  ;;  %v1864_v32 = vmax.f32 %v1528_v33, 0.0  ;;  %v1421_v4 = vadd.f32 %v1420_v38, %v5123_v2  ;;  %v1533_v40 = vpop.f32.mrb[71].mxu1  ;;  %v5137_v7 = vpop.permute.xlu0 %1247 }
 0x326   : > { %v1870_v58 = vmax.f32 %v1419_v37, 0.0  ;;  %v1532_v60 = vadd.f32 %v1531_v48, %v5123_v2  ;;  %v1534_v36 = vadd.f32 %v1533_v40, %v5123_v2  ;;  %v1865_v9 = vmax.f32 %v1530_v28, 0.0  ;;  %v5139_v14 = vpop.permute.xlu1 %1252 }
 0x327   : > { %v2000_v63 = vmax.f32 %v1862_v25, %v1863_v51  ;;  %v1871_v39 = vmax.f32 %v1421_v4, 0.0 }
 0x328   : > { %v1872_v30 = vmax.f32 %v1532_v60, 0.0  ;;  %v1873_v18 = vmax.f32 %v1534_v36, 0.0 }
 0x329   : > { %v2001_v20 = vmax.f32 %v2000_v63, %v1864_v32  ;;  %v2009_v41 = vmax.f32 %v1870_v58, %v1871_v39  ;;  %v1424_v27 = vpop.f32.mrb[72].mxu0 }
 0x32a   : > { %v1425_v33 = vadd.f32 %v1424_v27, %v5137_v7  ;;  %v1426_v23 = vpop.f32.mrb[73].mxu0  ;;  %v1537_v24 = vpop.f32.mrb[72].mxu1 }
 0x32b   : > { %v5142_v37 = vmax.f32 %v2001_v20, %v1865_v9  ;;  %v2010_v38 = vmax.f32 %v2009_v41, %v1872_v30  ;;  %v1427_v25 = vadd.f32 %v1426_v23, %v5137_v7  ;;  %v1538_v28 = vadd.f32 %v1537_v24, %v5137_v7  ;;  %v1428_v48 = vpop.f32.mrb[74].mxu0  ;;  %v1539_v51 = vpop.f32.mrb[73].mxu1 }
 0x32c   : > { %v1878_v4 = vmax.f32 %v1425_v33, 0.0  ;;  %v1429_v32 = vadd.f32 %v1428_v48, %v5139_v14  ;;  %v1540_v40 = vadd.f32 %v1539_v51, %v5137_v7  ;;  %v1430_v58 = vpop.f32.mrb[75].mxu0  ;;  %v1541_v60 = vpop.f32.mrb[74].mxu1 }
 0x32d   : > { %v5148_v36 = vmax.f32 %v2010_v38, %v1873_v18  ;;  %v1879_v63 = vmax.f32 %v1427_v25, 0.0  ;;  %v1880_v39 = vmax.f32 %v1538_v28, 0.0  ;;  %v1431_v9 = vadd.f32 %v1430_v58, %v5139_v14  ;;  %v1543_v30 = vpop.f32.mrb[75].mxu1  ;;  %v5153_v48 = vpop.permute.xlu0 %1257 }
 0x32e   : > { %v1886_v20 = vmax.f32 %v1429_v32, 0.0  ;;  %v1542_v41 = vadd.f32 %v1541_v60, %v5139_v14  ;;  %v1544_v27 = vadd.f32 %v1543_v30, %v5139_v14  ;;  %v1881_v33 = vmax.f32 %v1540_v40, 0.0  ;;  %v5155_v38 = vpop.permute.xlu1 %1262 }
 0x32f   : > { %v2018_v23 = vmax.f32 %v1878_v4, %v1879_v63  ;;  %v1887_v24 = vmax.f32 %v1431_v9, 0.0 }
 0x330   : > { %v1888_v51 = vmax.f32 %v1542_v41, 0.0  ;;  %v1889_v25 = vmax.f32 %v1544_v27, 0.0 }
 0x331   : > { %v2019_v0 = vmax.f32 %v2018_v23, %v1880_v39  ;;  %v2027_v61 = vmax.f32 %v1886_v20, %v1887_v24  ;;  %v1434_v18 = vpop.f32.mrb[76].mxu0 }
 0x332   : > { %v1435_v28 = vadd.f32 %v1434_v18, %v5153_v48  ;;  %v1436_v58 = vpop.f32.mrb[77].mxu0  ;;  %v1547_v32 = vpop.f32.mrb[76].mxu1 }
 0x333   : > { %v5158_v15 = vmax.f32 %v2019_v0, %v1881_v33  ;;  %v2028_v60 = vmax.f32 %v2027_v61, %v1888_v51  ;;  %v1437_v4 = vadd.f32 %v1436_v58, %v5153_v48  ;;  %v1548_v40 = vadd.f32 %v1547_v32, %v5153_v48  ;;  %v1438_v63 = vpop.f32.mrb[78].mxu0  ;;  %v1549_v9 = vpop.f32.mrb[77].mxu1 }
 0x334   : > { %v1894_v30 = vmax.f32 %v1435_v28, 0.0  ;;  %v1439_v39 = vadd.f32 %v1438_v63, %v5155_v38  ;;  %v1550_v20 = vadd.f32 %v1549_v9, %v5153_v48  ;;  %v1440_v41 = vpop.f32.mrb[79].mxu0  ;;  %v1551_v27 = vpop.f32.mrb[78].mxu1 }
 0x335   : > { %v5164_v23 = vmax.f32 %v2028_v60, %v1889_v25  ;;  %v1895_v24 = vmax.f32 %v1437_v4, 0.0  ;;  %v1896_v18 = vmax.f32 %v1548_v40, 0.0  ;;  %v1441_v0 = vadd.f32 %v1440_v41, %v5155_v38  ;;  %v1553_v61 = vpop.f32.mrb[79].mxu1 }
 0x336   : > { %v1902_v33 = vmax.f32 %v1439_v39, 0.0  ;;  %v1552_v51 = vadd.f32 %v1551_v27, %v5155_v38  ;;  %v1554_v58 = vadd.f32 %v1553_v61, %v5155_v38  ;;  %v1897_v28 = vmax.f32 %v1550_v20, 0.0 }
 0x337   : > { %v2036_v32 = vmax.f32 %v1894_v30, %v1895_v24  ;;  %v1903_v5 = vmax.f32 %v1441_v0, 0.0 }
 0x338   : > { %v1904_v63 = vmax.f32 %v1552_v51, 0.0  ;;  %v1905_v44 = vmax.f32 %v1554_v58, 0.0 }
 0x339   : > { %v2037_v13 = vmax.f32 %v2036_v32, %v1896_v18  ;;  %v2045_v9 = vmax.f32 %v1902_v33, %v1903_v5  ;;  %v1590_v10 = vpop.f32.mrb[80].mxu0 }
 0x33a   : > { %v1591_v25 = vadd.f32 %v1590_v10, %v5045_v3  ;;  %v1592_v60 = vpop.f32.mrb[81].mxu0  ;;  %v1703_v4 = vpop.f32.mrb[80].mxu1 }
 0x33b   : > { %v5170_v40 = vmax.f32 %v2037_v13, %v1897_v28  ;;  %v2046_v41 = vmax.f32 %v2045_v9, %v1904_v63  ;;  %v1593_v39 = vadd.f32 %v1592_v60, %v5045_v3  ;;  %v1704_v27 = vadd.f32 %v1703_v4, %v5045_v3  ;;  %v1594_v61 = vpop.f32.mrb[82].mxu0  ;;  %v1705_v30 = vpop.f32.mrb[81].mxu1 }
 0x33c   : > { %v1786_v20 = vmax.f32 %v1591_v25, 0.0  ;;  %v1595_v24 = vadd.f32 %v1594_v61, %v5047_v45  ;;  %v1596_v18 = vpop.f32.mrb[83].mxu0  ;;  %v1707_v5 = vpop.f32.mrb[82].mxu1  ;;  %v1706_v60 = vadd.f32 %v1705_v30, %v5045_v3 }
 0x33d   : > { %v5175_v0 = vmax.f32 %v2046_v41, %v1905_v44  ;;  %v1787_v33 = vmax.f32 %v1593_v39, 0.0  ;;  %v1597_v10 = vadd.f32 %v1596_v18, %v5047_v45  ;;  %v1709_v51 = vpop.f32.mrb[83].mxu1  ;;  %v1788_v58 = vmax.f32 %v1704_v27, 0.0 }
 0x33e   : > { %v1913_v13 = vmax.f32 %v5062_v54, %v1786_v20  ;;  %v1794_v32 = vmax.f32 %v1595_v24, 0.0  ;;  %v1708_v28 = vadd.f32 %v1707_v5, %v5047_v45  ;;  %v1710_v4 = vadd.f32 %v1709_v51, %v5047_v45 }
 0x33f   : > { %v1795_v63 = vmax.f32 %v1597_v10, 0.0  ;;  %v1789_v10 = vmax.f32 %v1706_v60, 0.0 }
 0x340   : > { %v1914_v9 = vmax.f32 %v1913_v13, %v1787_v33  ;;  %v1922_v25 = vmax.f32 %v5068_v6, %v1794_v32  ;;  %v1796_v61 = vmax.f32 %v1708_v28, 0.0  ;;  %v1797_v51 = vmax.f32 %v1710_v4, 0.0 }
 0x341   : > { %v1600_v44 = vpop.f32.mrb[84].mxu0 }
 0x342   : > { %v1915_v41 = vmax.f32 %v1914_v9, %v1788_v58  ;;  %v1923_v39 = vmax.f32 %v1922_v25, %v1795_v63  ;;  %v1601_v18 = vadd.f32 %v1600_v44, %v5049_v17  ;;  %v1602_v29 = vpop.f32.mrb[85].mxu0  ;;  %v1713_v54 = vpop.f32.mrb[84].mxu1 }
 0x343   : > { %v1603_v27 = vadd.f32 %v1602_v29, %v5049_v17  ;;  %v1714_v20 = vadd.f32 %v1713_v54, %v5049_v17  ;;  %v1604_v24 = vpop.f32.mrb[86].mxu0  ;;  %v1715_v5 = vpop.f32.mrb[85].mxu1 }
 0x344   : > { %v1924_v33 = vmax.f32 %v1923_v39, %v1796_v61  ;;  %v1802_v6 = vmax.f32 %v1601_v18, 0.0  ;;  %v1605_v3 = vadd.f32 %v1604_v24, %v5059_v49  ;;  %v1606_v30 = vpop.f32.mrb[87].mxu0  ;;  %v1717_v45 = vpop.f32.mrb[86].mxu1  ;;  %v1916_v44 = vmax.f32 %v1915_v41, %v1789_v10 }
 0x345   : > { %v1803_v13 = vmax.f32 %v1603_v27, 0.0  ;;  %v1607_v58 = vadd.f32 %v1606_v30, %v5059_v49  ;;  %v1719_v32 = vpop.f32.mrb[87].mxu1  ;;  %v1804_v63 = vmax.f32 %v1714_v20, 0.0  ;;  %v1718_v9 = vadd.f32 %v1717_v45, %v5059_v49 }
 0x346   : > { %v1931_v28 = vmax.f32 %v5078_v26, %v1802_v6  ;;  %v1810_v29 = vmax.f32 %v1605_v3, 0.0  ;;  %v1925_v39 = vmax.f32 %v1924_v33, %v1797_v51  ;;  %v1716_v54 = vadd.f32 %v1715_v5, %v5049_v17  ;;  %1917 = vmax.xlane.f32.xlu0 %v1916_v44 }
 0x347   : > { %v1811_v25 = vmax.f32 %v1607_v58, 0.0  ;;  %v1720_v60 = vadd.f32 %v1719_v32, %v5059_v49  ;;  %v1812_v26 = vmax.f32 %v1718_v9, 0.0 }
 0x348   : > { %v1932_v61 = vmax.f32 %v1931_v28, %v1803_v13  ;;  %v1940_v18 = vmax.f32 %v5084_v55, %v1810_v29  ;;  %1926 = vmax.xlane.f32.xlu1 %v1925_v39  ;;  %v1805_v51 = vmax.f32 %v1716_v54, 0.0 }
 0x349   : > { %v1610_v4 = vpop.f32.mrb[88].mxu0  ;;  %v1813_v13 = vmax.f32 %v1720_v60, 0.0 }
 0x34a   : > { %v1933_v27 = vmax.f32 %v1932_v61, %v1804_v63  ;;  %v1941_v24 = vmax.f32 %v1940_v18, %v1811_v25  ;;  %v1611_v20 = vadd.f32 %v1610_v4, %v5073_v1  ;;  %v1723_v6 = vpop.f32.mrb[88].mxu1  ;;  %v1612_v3 = vpop.f32.mrb[89].mxu0 }
 0x34b   : > { %v1724_v41 = vadd.f32 %v1723_v6, %v5073_v1  ;;  %v1613_v33 = vadd.f32 %v1612_v3, %v5073_v1  ;;  %v1725_v30 = vpop.f32.mrb[89].mxu1  ;;  %v1614_v55 = vpop.f32.mrb[90].mxu0 }
 0x34c   : > { %v1942_v45 = vmax.f32 %v1941_v24, %v1812_v26  ;;  %v1818_v17 = vmax.f32 %v1611_v20, 0.0  ;;  %v1615_v49 = vadd.f32 %v1614_v55, %v5075_v21  ;;  %v1727_v5 = vpop.f32.mrb[90].mxu1  ;;  %v1616_v10 = vpop.f32.mrb[91].mxu0  ;;  %v1726_v9 = vadd.f32 %v1725_v30, %v5073_v1 }
 0x34d   : > { %v1819_v58 = vmax.f32 %v1613_v33, 0.0  ;;  %v1617_v32 = vadd.f32 %v1616_v10, %v5075_v21  ;;  %v1729_v28 = vpop.f32.mrb[91].mxu1  ;;  %v1820_v29 = vmax.f32 %v1724_v41, 0.0  ;;  %v1934_v39 = vmax.f32 %v1933_v27, %v1805_v51 }
 0x34e   : > { %v1949_v63 = vmax.f32 %v5094_v11, %v1818_v17  ;;  %v1826_v25 = vmax.f32 %v1615_v49, 0.0  ;;  %v1943_v61 = vmax.f32 %v1942_v45, %v1813_v13  ;;  %v1728_v24 = vadd.f32 %v1727_v5, %v5075_v21 }
 0x34f   : > { %v1827_v44 = vmax.f32 %v1617_v32, 0.0  ;;  %1935 = vmax.xlane.f32.xlu0 %v1934_v39  ;;  %v1821_v60 = vmax.f32 %v1726_v9, 0.0  ;;  %v1730_v1 = vadd.f32 %v1729_v28, %v5075_v21 }
 0x350   : > { %v1950_v18 = vmax.f32 %v1949_v63, %v1819_v58  ;;  %v1958_v4 = vmax.f32 %v5100_v35, %v1826_v25  ;;  %v1828_v5 = vmax.f32 %v1728_v24, 0.0 }
 0x351   : > { %v1620_v54 = vpop.f32.mrb[92].mxu0  ;;  %v1829_v28 = vmax.f32 %v1730_v1, 0.0 }
 0x352   : > { %v1959_v26 = vmax.f32 %v1958_v4, %v1827_v44  ;;  %v1621_v20 = vadd.f32 %v1620_v54, %v5089_v52  ;;  %v1733_v6 = vpop.f32.mrb[92].mxu1  ;;  %v1622_v11 = vpop.f32.mrb[93].mxu0  ;;  %v1951_v3 = vmax.f32 %v1950_v18, %v1820_v29 }
 0x353   : > { %v1623_v41 = vadd.f32 %v1622_v11, %v5089_v52  ;;  %v1735_v27 = vpop.f32.mrb[93].mxu1  ;;  %v1624_v33 = vpop.f32.mrb[94].mxu0  ;;  %v1734_v35 = vadd.f32 %v1733_v6, %v5089_v52  ;;  %1944 = vmax.xlane.f32.xlu0 %v1943_v61 }
 0x354   : > { %v1834_v30 = vmax.f32 %v1621_v20, 0.0  ;;  %v1625_v55 = vadd.f32 %v1624_v33, %v5091_v53  ;;  %v1737_v45 = vpop.f32.mrb[94].mxu1  ;;  %v1626_v17 = vpop.f32.mrb[95].mxu0  ;;  %v1952_v49 = vmax.f32 %v1951_v3, %v1821_v60  ;;  %v1736_v58 = vadd.f32 %v1735_v27, %v5089_v52 }
 0x355   : > { %v1835_v10 = vmax.f32 %v1623_v41, 0.0  ;;  %v1627_v51 = vadd.f32 %v1626_v17, %v5091_v53  ;;  %v1739_v13 = vpop.f32.mrb[95].mxu1  ;;  %v1960_v29 = vmax.f32 %v1959_v26, %v1828_v5  ;;  %v1836_v9 = vmax.f32 %v1734_v35, 0.0 }
 0x356   : > { %v1967_v21 = vmax.f32 %v5110_v22, %v1834_v30  ;;  %v1842_v32 = vmax.f32 %v1625_v55, 0.0  ;;  %1953 = vmax.xlane.f32.xlu1 %v1952_v49  ;;  %v1738_v39 = vadd.f32 %v1737_v45, %v5091_v53  ;;  %v1837_v4 = vmax.f32 %v1736_v58, 0.0 }
 0x357   : > { %v1843_v63 = vmax.f32 %v1627_v51, 0.0  ;;  %v1961_v18 = vmax.f32 %v1960_v29, %v1829_v28  ;;  %v1740_v20 = vadd.f32 %v1739_v13, %v5091_v53 }
 0x358   : > { %v1968_v25 = vmax.f32 %v1967_v21, %v1835_v10  ;;  %v1976_v44 = vmax.f32 %v5116_v47, %v1842_v32  ;;  %v1844_v30 = vmax.f32 %v1738_v39, 0.0 }
 0x359   : > { %v1630_v61 = vpop.f32.mrb[96].mxu0  ;;  %1962 = vmax.xlane.f32.xlu0 %v1961_v18  ;;  %v1845_v5 = vmax.f32 %v1740_v20, 0.0 }
 0x35a   : > { %v1977_v24 = vmax.f32 %v1976_v44, %v1843_v63  ;;  %v1631_v54 = vadd.f32 %v1630_v61, %v5105_v62  ;;  %v1743_v22 = vpop.f32.mrb[96].mxu1  ;;  %v1632_v60 = vpop.f32.mrb[97].mxu0  ;;  %v1969_v52 = vmax.f32 %v1968_v25, %v1836_v9 }
 0x35b   : > { %v1633_v26 = vadd.f32 %v1632_v60, %v5105_v62  ;;  %v1745_v6 = vpop.f32.mrb[97].mxu1  ;;  %v1634_v11 = vpop.f32.mrb[98].mxu0  ;;  %v1744_v47 = vadd.f32 %v1743_v22, %v5105_v62 }
 0x35c   : > { %v1850_v3 = vmax.f32 %v1631_v54, 0.0  ;;  %v1635_v1 = vadd.f32 %v1634_v11, %v5107_v57  ;;  %v1747_v41 = vpop.f32.mrb[98].mxu1  ;;  %v1636_v27 = vpop.f32.mrb[99].mxu0  ;;  %v1970_v33 = vmax.f32 %v1969_v52, %v1837_v4  ;;  %v1746_v17 = vadd.f32 %v1745_v6, %v5105_v62 }
 0x35d   : > { %v1851_v35 = vmax.f32 %v1633_v26, 0.0  ;;  %v1637_v55 = vadd.f32 %v1636_v27, %v5107_v57  ;;  %v1749_v45 = vpop.f32.mrb[99].mxu1  ;;  %v1978_v51 = vmax.f32 %v1977_v24, %v1844_v30  ;;  %v1852_v13 = vmax.f32 %v1744_v47, 0.0 }
 0x35e   : > { %v1985_v53 = vmax.f32 %v5126_v43, %v1850_v3  ;;  %v1858_v49 = vmax.f32 %v1635_v1, 0.0  ;;  %1971 = vmax.xlane.f32.xlu1 %v1970_v33  ;;  %v1748_v32 = vadd.f32 %v1747_v41, %v5107_v57  ;;  %v1853_v29 = vmax.f32 %v1746_v17, 0.0 }
 0x35f   : > { %v1859_v10 = vmax.f32 %v1637_v55, 0.0  ;;  %v1979_v28 = vmax.f32 %v1978_v51, %v1845_v5  ;;  %v1750_v39 = vadd.f32 %v1749_v45, %v5107_v57 }
 0x360   : > { %v1986_v21 = vmax.f32 %v1985_v53, %v1851_v35  ;;  %v1994_v58 = vmax.f32 %v5132_v50, %v1858_v49  ;;  %v1860_v20 = vmax.f32 %v1748_v32, 0.0 }
 0x361   : > { %v1640_v63 = vpop.f32.mrb[100].mxu0  ;;  %1980 = vmax.xlane.f32.xlu0 %v1979_v28  ;;  %v1861_v1 = vmax.f32 %v1750_v39, 0.0 }
 0x362   : > { %v1995_v9 = vmax.f32 %v1994_v58, %v1859_v10  ;;  %v1641_v25 = vadd.f32 %v1640_v63, %v5121_v34  ;;  %v1753_v43 = vpop.f32.mrb[100].mxu1  ;;  %v1642_v44 = vpop.f32.mrb[101].mxu0  ;;  %v1987_v62 = vmax.f32 %v1986_v21, %v1852_v13 }
 0x363   : > { %v1643_v18 = vadd.f32 %v1642_v44, %v5121_v34  ;;  %v1755_v61 = vpop.f32.mrb[101].mxu1  ;;  %v1644_v4 = vpop.f32.mrb[102].mxu0  ;;  %v1754_v50 = vadd.f32 %v1753_v43, %v5121_v34 }
 0x364   : > { %v1866_v24 = vmax.f32 %v1641_v25, 0.0  ;;  %v1645_v54 = vadd.f32 %v1644_v4, %v5123_v2  ;;  %v1757_v22 = vpop.f32.mrb[102].mxu1  ;;  %v1646_v60 = vpop.f32.mrb[103].mxu0  ;;  %v1988_v52 = vmax.f32 %v1987_v62, %v1853_v29  ;;  %v1756_v3 = vadd.f32 %v1755_v61, %v5121_v34 }
 0x365   : > { %v1867_v26 = vmax.f32 %v1643_v18, 0.0  ;;  %v1647_v6 = vadd.f32 %v1646_v60, %v5123_v2  ;;  %v1759_v11 = vpop.f32.mrb[103].mxu1  ;;  %v1996_v27 = vmax.f32 %v1995_v9, %v1860_v20  ;;  %v1868_v33 = vmax.f32 %v1754_v50, 0.0 }
 0x366   : > { %v2003_v57 = vmax.f32 %v5142_v37, %v1866_v24  ;;  %v1874_v47 = vmax.f32 %v1645_v54, 0.0  ;;  %1989 = vmax.xlane.f32.xlu1 %v1988_v52  ;;  %v1758_v55 = vadd.f32 %v1757_v22, %v5123_v2  ;;  %v1869_v17 = vmax.f32 %v1756_v3, 0.0 }
 0x367   : > { %v1875_v41 = vmax.f32 %v1647_v6, 0.0  ;;  %v1997_v45 = vmax.f32 %v1996_v27, %v1861_v1  ;;  %v1760_v51 = vadd.f32 %v1759_v11, %v5123_v2 }
 0x368   : > { %v2004_v30 = vmax.f32 %v2003_v57, %v1867_v26  ;;  %v2012_v35 = vmax.f32 %v5148_v36, %v1874_v47  ;;  %v1876_v25 = vmax.f32 %v1758_v55, 0.0 }
 0x369   : > { %v1650_v53 = vpop.f32.mrb[104].mxu0  ;;  %1998 = vmax.xlane.f32.xlu0 %v1997_v45  ;;  %v1877_v61 = vmax.f32 %v1760_v51, 0.0 }
 0x36a   : > { %v2013_v49 = vmax.f32 %v2012_v35, %v1875_v41  ;;  %v1651_v5 = vadd.f32 %v1650_v53, %v5137_v7  ;;  %v1763_v37 = vpop.f32.mrb[104].mxu1  ;;  %v1652_v10 = vpop.f32.mrb[105].mxu0  ;;  %v2005_v34 = vmax.f32 %v2004_v30, %v1868_v33 }
 0x36b   : > { %v1653_v13 = vadd.f32 %v1652_v10, %v5137_v7  ;;  %v1765_v21 = vpop.f32.mrb[105].mxu1  ;;  %v1654_v58 = vpop.f32.mrb[106].mxu0  ;;  %v1764_v36 = vadd.f32 %v1763_v37, %v5137_v7 }
 0x36c   : > { %v1882_v32 = vmax.f32 %v1651_v5, 0.0  ;;  %v1655_v28 = vadd.f32 %v1654_v58, %v5139_v14  ;;  %v1767_v63 = vpop.f32.mrb[106].mxu1  ;;  %v1656_v29 = vpop.f32.mrb[107].mxu0  ;;  %v2006_v9 = vmax.f32 %v2005_v34, %v1869_v17  ;;  %v1766_v39 = vadd.f32 %v1765_v21, %v5137_v7 }
 0x36d   : > { %v1883_v43 = vmax.f32 %v1653_v13, 0.0  ;;  %v1657_v44 = vadd.f32 %v1656_v29, %v5139_v14  ;;  %v1769_v62 = vpop.f32.mrb[107].mxu1  ;;  %v2014_v24 = vmax.f32 %v2013_v49, %v1876_v25  ;;  %v1884_v50 = vmax.f32 %v1764_v36, 0.0 }
 0x36e   : > { %v2021_v2 = vmax.f32 %v5158_v15, %v1882_v32  ;;  %v1890_v18 = vmax.f32 %v1655_v28, 0.0  ;;  %2007 = vmax.xlane.f32.xlu1 %v2006_v9  ;;  %v1768_v60 = vadd.f32 %v1767_v63, %v5139_v14  ;;  %v1885_v26 = vmax.f32 %v1766_v39, 0.0  ;;  %v5275_v39 = vld [vmem:[%s6508_s4 + $0x18] sm:$0xff]  }
 0x36f   : > { %v1891_v4 = vmax.f32 %v1657_v44, 0.0  ;;  %v2015_v52 = vmax.f32 %v2014_v24, %v1877_v61  ;;  %v1770_v3 = vadd.f32 %v1769_v62, %v5139_v14  ;;  %v4254_v62 = vld [vmem:[%s6509_s5] sm:$0xff]  }
 0x370   : > { %v2022_v54 = vmax.f32 %v2021_v2, %v1883_v43  ;;  %v2030_v22 = vmax.f32 %v5164_v23, %v1890_v18  ;;  %v1892_v45 = vmax.f32 %v1768_v60, 0.0  ;;  %4144 = vmatprep.mubr.bf16.mxu0 %v4254_v62  ;;  %v5267_v2 = vld [vmem:[%s6508_s4 + $0x10] sm:$0xff]   ;;  %v5283_v24 = vld [vmem:[%s6508_s4 + $0x20] sm:$0xff]  }
 0x371   : > { %v1660_v20 = vpop.f32.mrb[108].mxu0  ;;  %2016 = vmax.xlane.f32.xlu0 %v2015_v52  ;;  %v1893_v34 = vmax.f32 %v1770_v3, 0.0  ;;  %v5299_v52 = vld [vmem:[%s6508_s4 + $0x30] sm:$0xff]  }
 0x372   : > { %v2031_v6 = vmax.f32 %v2030_v22, %v1891_v4  ;;  %v1661_v11 = vadd.f32 %v1660_v20, %v5153_v48  ;;  %v1773_v15 = vpop.f32.mrb[108].mxu1  ;;  %v1662_v57 = vpop.f32.mrb[109].mxu0  ;;  %v2023_v7 = vmax.f32 %v2022_v54, %v1884_v50  ;;  %v5291_v54 = vld [vmem:[%s6508_s4 + $0x28] sm:$0xff]  }
 0x373   : > { %v1663_v47 = vadd.f32 %v1662_v57, %v5153_v48  ;;  %v1775_v1 = vpop.f32.mrb[109].mxu1  ;;  %v1664_v41 = vpop.f32.mrb[110].mxu0  ;;  %v1774_v23 = vadd.f32 %v1773_v15, %v5153_v48 }
 0x374   : > { %v1898_v27 = vmax.f32 %v1661_v11, 0.0  ;;  %v1665_v33 = vadd.f32 %v1664_v41, %v5155_v38  ;;  %v1777_v30 = vpop.f32.mrb[110].mxu1  ;;  %v1666_v35 = vpop.f32.mrb[111].mxu0  ;;  %v2024_v55 = vmax.f32 %v2023_v7, %v1885_v26  ;;  %v1776_v5 = vadd.f32 %v1775_v1, %v5153_v48  ;;  %v5307_v11 = vld [vmem:[%s6508_s4 + $0x38] sm:$0xff]   ;;  %v5315_v41 = vld [vmem:[%s6508_s4] sm:$0xff]  }
 0x375   : > { %v1899_v53 = vmax.f32 %v1663_v47, 0.0  ;;  %v1667_v17 = vadd.f32 %v1666_v35, %v5155_v38  ;;  %v1779_v49 = vpop.f32.mrb[111].mxu1  ;;  %v1778_v10 = vadd.f32 %v1777_v30, %v5155_v38  ;;  %v2032_v13 = vmax.f32 %v2031_v6, %v1892_v45 }
 0x376   : > { %v2039_v14 = vmax.f32 %v5170_v40, %v1898_v27  ;;  %v1906_v37 = vmax.f32 %v1665_v33, 0.0  ;;  %2025 = vmax.xlane.f32.xlu1 %v2024_v55  ;;  %v1900_v21 = vmax.f32 %v1774_v23, 0.0  ;;  %v1780_v36 = vadd.f32 %v1779_v49, %v5155_v38  ;;  %v5259_v38 = vld [vmem:[%s6508_s4 + $0x8] sm:$0xff]  }
 0x377   : > { %v1907_v51 = vmax.f32 %v1667_v17, 0.0  ;;  %v2033_v28 = vmax.f32 %v2032_v13, %v1893_v34  ;;  %v1901_v63 = vmax.f32 %v1776_v5, 0.0  ;;  %v1908_v29 = vmax.f32 %v1778_v10, 0.0  ;;  %4065 = vmatmul.mubr.msk.bf16.gmra.mrb[116].mxu1 %vm1305_vm2, %v5259_v38  ;;  %v4276_v5 = vld [vmem:[%s6512_s8 + $0x20] sm:$0xff]  ;;  %v4256_v10 = vld [vmem:[%s6509_s5 + $0x10] sm:$0xff]   ;;  %v4277_v34 = vld [vmem:[%s6512_s8 + $0x8] sm:$0xff] }
 0x378   : > { %v2040_v58 = vmax.f32 %v2039_v14, %v1899_v53  ;;  %v2048_v32 = vmax.f32 %v5175_v0, %v1906_v37  ;;  %v1909_v48 = vmax.f32 %v1780_v36, 0.0  ;;  %v6553_v0 = vmov 0   ;;  %v4275_v14 = vld [vmem:[%s6512_s8] sm:$0xff]  ;;  %v4255_v37 = vld [vmem:[%s6509_s5 + $0x8] sm:$0xff]   ;;  %v4257_v13 = vld [vmem:[%s6509_s5 + $0x18] sm:$0xff]  }
 0x379   : > { %2034 = vmax.xlane.f32.xlu0 %v2033_v28  ;;  %2435 = vmatprep.mubr.bf16.mxu1 %v6553_v0  ;;  %v6526_v17 = vmov 3   ;;  %v6554_v36 = vld [vmem:[#allocation8_spill] sm:$0xff]  ;;  %v6555_v28 = vld [vmem:[#allocation10_spill] sm:$0xff] }
 0x37a   : > { %v2049_v9 = vmax.f32 %v2048_v32, %v1907_v51  ;;  %v2041_v40 = vmax.f32 %v2040_v58, %v1900_v21  ;;  %4226 = vset.pattern.permute.xlu1 %v6526_v17  ;;  %4227 = vset.pattern.permute.xlu0 %v6526_v17  ;;  %v4278_v51 = vld [vmem:[%s6512_s8 + $0x40] sm:$0xff]  ;;  %v4260_v21 = vld [vmem:[%s6509_s5 + $0x30] sm:$0xff]   ;;  %v4286_v32 = vld [vmem:[%s6512_s8 + $0x58] sm:$0xff] }
 0x37b   : > { %v4285_v58 = vld [vmem:[%s6512_s8 + $0x50] sm:$0xff] }
 0x37c   : > { %v2042_v25 = vmax.f32 %v2041_v40, %v1901_v63  ;;  %v2050_v43 = vmax.f32 %v2049_v9, %v1908_v29  ;;  %v6556_v63 = vld [vmem:[#allocation9_spill] sm:$0xff]  ;;  %v6557_v29 = vld [vmem:[#allocation12_spill] sm:$0xff]  ;;  %v6558_v9 = vld [vmem:[#allocation11_spill] sm:$0xff] }
 0x37d   : > { %v6559_v40 = vld [vmem:[#allocation14_spill] sm:$0xff] }
 0x37e   : > { %2043 = vmax.xlane.f32.xlu1 %v2042_v25  ;;  %v2051_v44 = vmax.f32 %v2050_v43, %v1909_v48  ;;  %v6560_v48 = vld [vmem:[#allocation13_spill] sm:$0xff]  ;;  %v5458_v25 = vpop.f32.mrb[112].mxu1 }
 0x37f   : > { %4066 = vmatmul.mubr.msk.bf16.gmra.mrb[120].mxu1 %vm1305_vm2, %v5267_v2  ;;  %v5462_v43 = vpop.f32.mrb[113].mxu1 }
 0x380   : > { %2052 = vmax.xlane.f32.xlu0 %v2051_v44  ;;  %2445 = vmatprep.mubr.bf16.mxu1 %v6553_v0  ;;  %v5465_v44 = vpop.f32.mrb[114].mxu1 }
 0x381   : > { %v5467_v62 = vpop.f32.mrb[115].mxu1 }
 0x387   : > { %4067 = vmatmul.mubr.msk.bf16.gmra.mrb[124].mxu1 %vm1305_vm2, %v5275_v39 }
 0x388   : > { %2455 = vmatprep.mubr.bf16.mxu1 %v6553_v0 }
 0x38f   : > { %4068 = vmatmul.mubr.msk.bf16.gmra.mrb[128].mxu1 %vm1305_vm2, %v5283_v24  ;;  %2836 = vperm.xlu1 %4226, %v4275_v14  }
 0x390   : > { %2465 = vmatprep.mubr.bf16.mxu1 %v6553_v0 }
 0x393   : > { %2840 = vperm.xlu1 %4226, %v4277_v34  }
 0x396   : > { %2852 = vperm.xlu0 %4227, %v4276_v5  }
 0x397   : > { %4069 = vmatmul.mubr.msk.bf16.gmra.mrb[132].mxu1 %vm1305_vm2, %v5291_v54 }
 0x398   : > { %2475 = vmatprep.mubr.bf16.mxu1 %v6553_v0 }
 0x39a   : > { %2868 = vperm.xlu0 %4227, %v4278_v51  }
 0x39e   : > { %4229 = vset.pattern.permute.xlu0 %v6553_v0 }
 0x39f   : > { %4070 = vmatmul.mubr.msk.bf16.gmra.mrb[136].mxu1 %vm1305_vm2, %v5299_v52 }
 0x3a0   : > { %2485 = vmatprep.mubr.bf16.mxu1 %v6553_v0 }
 0x3a7   : > { %4071 = vmatmul.mubr.msk.bf16.gmra.mrb[140].mxu1 %vm1305_vm2, %v5307_v11 }
 0x3a8   : > { %2641 = vmatprep.mubr.bf16.mxu1 %v6553_v0 }
 0x3af   : > { %4080 = vmatmul.mubr.msk.bf16.vlgmr.msra.gmra.mrb[144].mxu1 %vm1305_vm2, %v5315_v41 }
 0x3b0   : > { %2651 = vmatprep.mubr.bf16.mxu1 %v6553_v0 }
 0x3b7   : > { %4081 = vmatmul.mubr.msk.bf16.gmra.mrb[148].mxu1 %vm1305_vm2, %v5259_v38 }
 0x3b8   : > { %2661 = vmatprep.mubr.bf16.mxu1 %v6553_v0 }
 0x3bf   : > { %4082 = vmatmul.mubr.msk.bf16.gmra.mrb[152].mxu1 %vm1305_vm2, %v5267_v2 }
 0x3c0   : > { %2671 = vmatprep.mubr.bf16.mxu1 %v6553_v0 }
 0x3c7   : > { %4083 = vmatmul.mubr.msk.bf16.gmra.mrb[156].mxu1 %vm1305_vm2, %v5275_v39 }
 0x3c8   : > { %2681 = vmatprep.mubr.bf16.mxu1 %v6553_v0 }
 0x3cf   : > { %4084 = vmatmul.mubr.msk.bf16.gmra.mrb[160].mxu1 %vm1305_vm2, %v5283_v24 }
 0x3d0   : > { %2691 = vmatprep.mubr.bf16.mxu1 %v6553_v0 }
 0x3d3   : > { %v1918_v18 = vpop.xlane.xlu0 %1917 }
 0x3d5   : > { %v1927_v61 = vpop.xlane.xlu1 %1926 }
 0x3d6   : > { %v2054_v4 = vpack.c.bf16 %v1927_v61, %v1918_v18 }
 0x3d7   : > { %4085 = vmatmul.mubr.msk.bf16.gmra.mrb[164].mxu1 %vm1305_vm2, %v5291_v54 }
 0x3d8   : > { %4128 = vmatprep.subr.bf16.mxu0 %v2054_v4  ;;  %2701 = vmatprep.mubr.bf16.mxu1 %v6553_v0 }
 0x3d9   : > { %4129 = vmatpush3.bf16.msra.mxu0 %v2054_v4 }
 0x3dc   : > { %v1936_v50 = vpop.xlane.xlu0 %1935 }
 0x3df   : > { %4086 = vmatmul.mubr.msk.bf16.gmra.mrb[168].mxu1 %vm1305_vm2, %v5299_v52 }
 0x3e0   : > { %v1945_v22 = vpop.xlane.xlu0 %1944  ;;  %2711 = vmatprep.mubr.bf16.mxu1 %v6553_v0 }
 0x3e1   : > { %v2055_v60 = vpack.c.bf16 %v1945_v22, %v1936_v50 }
 0x3e3   : > { %4130 = vmatprep.subr.bf16.mxu0 %v2055_v60  ;;  %v1954_v20 = vpop.xlane.xlu1 %1953 }
 0x3e4   : > { %4131 = vmatpush3.bf16.msra.mxu0 %v2055_v60 }
 0x3e6   : > { %v1963_v26 = vpop.xlane.xlu0 %1962 }
 0x3e7   : > { %v2056_v6 = vpack.c.bf16 %v1963_v26, %v1954_v20  ;;  %4087 = vmatmul.mubr.msk.bf16.gmra.mrb[172].mxu1 %vm1305_vm2, %v5307_v11 }
 0x3e8   : > { %3315 = vmatprep.mubr.bf16.mxu1 %v6553_v0 }
 0x3e9   : > { %4132 = vmatprep.subr.bf16.mxu0 %v2056_v6 }
 0x3ea   : > { %4133 = vmatpush3.bf16.msra.mxu0 %v2056_v6 }
 0x3eb   : > { %v1972_v15 = vpop.xlane.xlu1 %1971 }
 0x3ee   : > { %v1981_v57 = vpop.xlane.xlu0 %1980 }
 0x3ef   : > { %v2057_v7 = vpack.c.bf16 %v1981_v57, %v1972_v15 }
 0x3f1   : > { %4134 = vmatprep.subr.bf16.mxu0 %v2057_v7 }
 0x3f2   : > { %4135 = vmatpush3.bf16.msra.mxu0 %v2057_v7 }
 0x3f3   : > { %v1990_v3 = vpop.xlane.xlu1 %1989 }
 0x3f6   : > { %v1999_v47 = vpop.xlane.xlu0 %1998 }
 0x3f7   : > { %v2058_v1 = vpack.c.bf16 %v1999_v47, %v1990_v3 }
 0x3f9   : > { %4136 = vmatprep.subr.bf16.mxu0 %v2058_v1 }
 0x3fa   : > { %4137 = vmatpush3.bf16.msra.mxu0 %v2058_v1 }
 0x3fb   : > { %v2008_v27 = vpop.xlane.xlu1 %2007 }
 0x3fe   : > { %v2017_v23 = vpop.xlane.xlu0 %2016 }
 0x3ff   : > { %v2059_v33 = vpack.c.bf16 %v2017_v23, %v2008_v27 }
 0x401   : > { %4138 = vmatprep.subr.bf16.mxu0 %v2059_v33 }
 0x402   : > { %4139 = vmatpush3.bf16.msra.mxu0 %v2059_v33 }
 0x403   : > { %v2026_v30 = vpop.xlane.xlu1 %2025 }
 0x406   : > { %v2035_v35 = vpop.xlane.xlu0 %2034 }
 0x407   : > { %v2060_v55 = vpack.c.bf16 %v2035_v35, %v2026_v30 }
 0x409   : > { %4140 = vmatprep.subr.bf16.mxu0 %v2060_v55 }
 0x40a   : > { %4141 = vmatpush3.bf16.msra.mxu0 %v2060_v55 }
 0x40b   : > { %v2044_v45 = vpop.xlane.xlu1 %2043 }
 0x40d   : > { %v2053_v53 = vpop.xlane.xlu0 %2052 }
 0x40e   : > { %v2061_v49 = vpack.c.bf16 %v2053_v53, %v2044_v45 }
 0x410   : > { %4142 = vmatprep.subr.bf16.mxu0 %v2061_v49 }
 0x411   : > { %4143 = vmatpush3.bf16.msra.mxu0 %v2061_v49 }
 0x412   : > { %2496 = vmatprep.subr.bf16.mxu0 %v4734_v12  ;;  %v4279_v12 = vld [vmem:[%s6512_s8 + $0x10] sm:$0xff] }
 0x413   : > { %2844 = vperm.xlu1 %4226, %v4279_v12  }
 0x414   : > { %4145 = vmatmul.mubr.bf16.vlgmr.msra.gmra.mrb[112].mxu0 %v4255_v37 }
 0x415   : > { %2497 = vmatpush1.bf16.msra.mxu0 %v4727_v8  ;;  %4148 = vmatprep.mubr.bf16.mxu0 %v4256_v10  ;;  %v4258_v8 = vld [vmem:[%s6509_s5 + $0x20] sm:$0xff]  }
 0x416   : > { %2498 = vmatprep.subr.bf16.mxu0 %v4759_v46  ;;  %v4280_v46 = vld [vmem:[%s6512_s8 + $0x18] sm:$0xff] }
 0x417   : > { %2848 = vperm.xlu1 %4226, %v4280_v46  }
 0x419   : > { %2499 = vmatpush1.bf16.msra.mxu0 %v4753_v42  ;;  %v4281_v42 = vld [vmem:[%s6512_s8 + $0x28] sm:$0xff] }
 0x41a   : > { %2500 = vmatprep.subr.bf16.mxu0 %v4789_v19  ;;  %v4259_v19 = vld [vmem:[%s6509_s5 + $0x28] sm:$0xff]  }
 0x41b   : > { %2856 = vperm.xlu1 %4226, %v4281_v42  }
 0x41c   : > { %4149 = vmatmul.mubr.bf16.gmra.mrb[116].mxu0 %v4257_v13 }
 0x41d   : > { %2501 = vmatpush1.bf16.msra.mxu0 %v4785_v16  ;;  %4152 = vmatprep.mubr.bf16.mxu0 %v4258_v8  ;;  %v4282_v16 = vld [vmem:[%s6512_s8 + $0x30] sm:$0xff] }
 0x41e   : > { %2502 = vmatprep.subr.bf16.mxu0 %v4815_v59  ;;  %v4261_v59 = vld [vmem:[%s6509_s5 + $0x38] sm:$0xff]  }
 0x41f   : > { %2860 = vperm.xlu1 %4226, %v4282_v16  }
 0x421   : > { %2503 = vmatpush1.bf16.msra.mxu0 %v4811_v56  ;;  %v4283_v56 = vld [vmem:[%s6512_s8 + $0x38] sm:$0xff] }
 0x422   : > { %2722 = vmatprep.subr.bf16.mxu0 %v4846_v31  ;;  %v4284_v31 = vld [vmem:[%s6512_s8 + $0x48] sm:$0xff] }
 0x423   : > { %2864 = vperm.xlu1 %4226, %v4283_v56  }
 0x424   : > { %4153 = vmatmul.mubr.bf16.gmra.mrb[120].mxu0 %v4259_v19  ;;  %v4287_v19 = vld [vmem:[%s6512_s8 + $0x60] sm:$0xff] }
 0x425   : > { %4156 = vmatprep.mubr.bf16.mxu0 %v4260_v21 }
 0x427   : > { %2872 = vperm.xlu1 %4226, %v4284_v31  }
 0x42b   : > { %2876 = vperm.xlu1 %4226, %v4285_v58  }
 0x42c   : > { %4157 = vmatmul.mubr.bf16.gmra.mrb[124].mxu0 %v4261_v59 }
 0x42d   : > { %2528 = vmatprep.mubr.bf16.mxu0 %v6553_v0 }
 0x42f   : > { %2880 = vperm.xlu1 %4226, %v4286_v32  }
 0x433   : > { %4228 = vset.pattern.permute.xlu1 %v6553_v0 }
 0x434   : > { %4072 = vmatmul.mubr.msk.bf16.vlgmr.msra.gmra.mrb[128].mxu0 %vm1305_vm2, %v5315_v41 }
 0x435   : > { %2723 = vmatpush1.bf16.msra.mxu0 %v6554_v36  ;;  %2538 = vmatprep.mubr.bf16.mxu0 %v6553_v0 }
 0x436   : > { %2724 = vmatprep.subr.bf16.mxu0 %v6555_v28  ;;  %v4288_v28 = vld [vmem:[%s6512_s8 + $0x68] sm:$0xff] }
 0x439   : > { %2725 = vmatpush1.bf16.msra.mxu0 %v6556_v63 }
 0x43a   : > { %2726 = vmatprep.subr.bf16.mxu0 %v6557_v29 }
 0x43c   : > { %4073 = vmatmul.mubr.msk.bf16.gmra.mrb[132].mxu0 %vm1305_vm2, %v5259_v38 }
 0x43d   : > { %2727 = vmatpush1.bf16.msra.mxu0 %v6558_v9  ;;  %2548 = vmatprep.mubr.bf16.mxu0 %v6553_v0 }
 0x43e   : > { %2728 = vmatprep.subr.bf16.mxu0 %v6559_v40 }
 0x441   : > { %2729 = vmatpush1.bf16.msra.mxu0 %v6560_v48 }
 0x444   : > { %4074 = vmatmul.mubr.msk.bf16.gmra.mrb[136].mxu0 %vm1305_vm2, %v5267_v2 }
 0x445   : > { %2558 = vmatprep.mubr.bf16.mxu0 %v6553_v0 }
 0x44c   : > { %4075 = vmatmul.mubr.msk.bf16.gmra.mrb[140].mxu0 %vm1305_vm2, %v5275_v39 }
 0x44d   : > { %2568 = vmatprep.mubr.bf16.mxu0 %v6553_v0 }
 0x454   : > { %4076 = vmatmul.mubr.msk.bf16.gmra.mrb[144].mxu0 %vm1305_vm2, %v5283_v24 }
 0x455   : > { %2578 = vmatprep.mubr.bf16.mxu0 %v6553_v0 }
 0x45c   : > { %4077 = vmatmul.mubr.msk.bf16.gmra.mrb[148].mxu0 %vm1305_vm2, %v5291_v54 }
 0x45d   : > { %2588 = vmatprep.mubr.bf16.mxu0 %v6553_v0 }
 0x464   : > { %4078 = vmatmul.mubr.msk.bf16.gmra.mrb[152].mxu0 %vm1305_vm2, %v5299_v52 }
 0x465   : > { %2598 = vmatprep.mubr.bf16.mxu0 %v6553_v0 }
 0x46c   : > { %4079 = vmatmul.mubr.msk.bf16.gmra.mrb[156].mxu0 %vm1305_vm2, %v5307_v11 }
 0x46d   : > { %2754 = vmatprep.mubr.bf16.mxu0 %v6553_v0 }
 0x474   : > { %4088 = vmatmul.mubr.msk.bf16.vlgmr.msra.gmra.mrb[160].mxu0 %vm1305_vm2, %v5315_v41 }
 0x475   : > { %2764 = vmatprep.mubr.bf16.mxu0 %v6553_v0 }
 0x47c   : > { %4089 = vmatmul.mubr.msk.bf16.gmra.mrb[164].mxu0 %vm1305_vm2, %v5259_v38  ;;  %v5469_v38 = vpop.f32.mrb[116].mxu1 }
 0x47d   : > { %2774 = vmatprep.mubr.bf16.mxu0 %v6553_v0 }
 0x484   : > { %4090 = vmatmul.mubr.msk.bf16.gmra.mrb[168].mxu0 %vm1305_vm2, %v5267_v2  ;;  %v5471_v2 = vpop.f32.mrb[117].mxu1 }
 0x485   : > { %2784 = vmatprep.mubr.bf16.mxu0 %v6553_v0 }
 0x48c   : > { %4091 = vmatmul.mubr.msk.bf16.gmra.mrb[172].mxu0 %vm1305_vm2, %v5275_v39  ;;  %v5473_v39 = vpop.f32.mrb[118].mxu1 }
 0x48d   : > { %2794 = vmatprep.mubr.bf16.mxu0 %v6553_v0  ;;  %v5475_v18 = vpop.f32.mrb[119].mxu1 }
 0x48e   : > { %v5477_v61 = vpop.f32.mrb[120].mxu1 }
 0x48f   : > { %v5481_v4 = vpop.f32.mrb[121].mxu1 }
 0x494   : > { %4092 = vmatmul.mubr.msk.bf16.gmra.mrb[176].mxu0 %vm1305_vm2, %v5283_v24  ;;  %v5484_v24 = vpop.f32.mrb[122].mxu1 }
 0x495   : > { %2804 = vmatprep.mubr.bf16.mxu0 %v6553_v0  ;;  %v5486_v50 = vpop.f32.mrb[123].mxu1 }
 0x49c   : > { %4093 = vmatmul.mubr.msk.bf16.gmra.mrb[180].mxu0 %vm1305_vm2, %v5291_v54  ;;  %v5488_v54 = vpop.f32.mrb[124].mxu1 }
 0x49d   : > { %2814 = vmatprep.mubr.bf16.mxu0 %v6553_v0  ;;  %v5490_v22 = vpop.f32.mrb[125].mxu1 }
 0x49e   : > { %v5492_v60 = vpop.f32.mrb[126].mxu1 }
 0x49f   : > { %v5494_v20 = vpop.f32.mrb[127].mxu1 }
 0x4a4   : > { %4094 = vmatmul.mubr.msk.bf16.gmra.mrb[184].mxu0 %vm1305_vm2, %v5299_v52  ;;  %v5499_v52 = vpop.f32.mrb[128].mxu1 }
 0x4a5   : > { %2824 = vmatprep.mubr.bf16.mxu0 %v6553_v0  ;;  %v5501_v26 = vpop.f32.mrb[129].mxu1 }
 0x4a6   : > { %v5503_v6 = vpop.f32.mrb[130].mxu1 }
 0x4a7   : > { %6561 = vst [vmem:[#allocation8_spill] sm:$0xff] %v5503_v6  ;;  %v5505_v15 = vpop.f32.mrb[131].mxu1 }
 0x4a8   : > { %6562 = vst [vmem:[#allocation10_spill] sm:$0xff] %v5505_v15  ;;  %v5507_v57 = vpop.f32.mrb[132].mxu1 }
 0x4a9   : > { %6563 = vst [vmem:[#allocation9_spill] sm:$0xff] %v5507_v57  ;;  %v5509_v7 = vpop.f32.mrb[133].mxu1 }
 0x4aa   : > { %6564 = vst [vmem:[#allocation12_spill] sm:$0xff] %v5509_v7  ;;  %v5511_v3 = vpop.f32.mrb[134].mxu1 }
 0x4ab   : > { %6565 = vst [vmem:[#allocation11_spill] sm:$0xff] %v5511_v3  ;;  %v5513_v47 = vpop.f32.mrb[135].mxu1 }
 0x4ac   : > { %4095 = vmatmul.mubr.msk.bf16.gmra.mrb[188].mxu0 %vm1305_vm2, %v5307_v11  ;;  %6566 = vst [vmem:[#allocation14_spill] sm:$0xff] %v5513_v47  ;;  %v5515_v1 = vpop.f32.mrb[136].mxu1 }
 0x4ad   : > { %3388 = vmatprep.mubr.bf16.mxu0 %v6553_v0  ;;  %6567 = vst [vmem:[#allocation13_spill] sm:$0xff] %v5515_v1  ;;  %v5517_v11 = vpop.f32.mrb[137].mxu1 }
 0x4ae   : > { %6568 = vst [vmem:[#allocation15_spill] sm:$0xff] %v5517_v11  ;;  %v5519_v41 = vpop.f32.mrb[138].mxu1 }
 0x4af   : > { %6569 = vst [vmem:[#allocation16_spill] sm:$0xff] %v5519_v41  ;;  %v5521_v27 = vpop.f32.mrb[139].mxu1 }
 0x4b0   : > { %6570 = vst [vmem:[#allocation17_spill] sm:$0xff] %v5521_v27  ;;  %v5523_v23 = vpop.f32.mrb[140].mxu1 }
 0x4b1   : > { %6571 = vst [vmem:[#allocation18_spill] sm:$0xff] %v5523_v23  ;;  %v5525_v33 = vpop.f32.mrb[141].mxu1 }
 0x4b2   : > { %6572 = vst [vmem:[#allocation19_spill] sm:$0xff] %v5525_v33  ;;  %v5527_v30 = vpop.f32.mrb[142].mxu1 }
 0x4b3   : > { %6573 = vst [vmem:[#allocation20_spill] sm:$0xff] %v5527_v30  ;;  %v5529_v35 = vpop.f32.mrb[143].mxu1 }
 0x4b4   : > { %6574 = vst [vmem:[#allocation21_spill] sm:$0xff] %v5529_v35  ;;  %v5531_v55 = vpop.f32.mrb[144].mxu1 }
 0x4b5   : > { %6575 = vst [vmem:[#allocation22_spill] sm:$0xff] %v5531_v55  ;;  %v5533_v45 = vpop.f32.mrb[145].mxu1 }
 0x4b6   : > { %v5535_v53 = vpop.f32.mrb[146].mxu1 }
 0x4b7   : > { %6576 = vst [vmem:[#allocation23_spill] sm:$0xff] %v5535_v53  ;;  %v5537_v49 = vpop.f32.mrb[147].mxu1 }
 0x4b8   : > { %6577 = vst [vmem:[#allocation24_spill] sm:$0xff] %v5537_v49  ;;  %v5539_v14 = vpop.f32.mrb[148].mxu1 }
 0x4b9   : > { %v5541_v5 = vpop.f32.mrb[149].mxu1 }
 0x4ba   : > { %v5543_v12 = vpop.f32.mrb[150].mxu1 }
 0x4bb   : > { %6578 = vst [vmem:[#allocation25_spill] sm:$0xff] %v5543_v12  ;;  %v5545_v13 = vpop.f32.mrb[151].mxu1 }
 0x4bc   : > { %6579 = vst [vmem:[#allocation26_spill] sm:$0xff] %v5545_v13  ;;  %v5547_v8 = vpop.f32.mrb[152].mxu1  ;;  %v5652_v13 = vpop.permute.xlu1 %2836 }
 0x4bd   : > { %6580 = vst [vmem:[#allocation27_spill] sm:$0xff] %v5547_v8  ;;  %v5550_v42 = vpop.f32.mrb[153].mxu1 }
 0x4be   : > { %6581 = vst [vmem:[#allocation28_spill] sm:$0xff] %v5550_v42  ;;  %v5555_v16 = vpop.f32.mrb[154].mxu1 }
 0x4bf   : > { %6582 = vst [vmem:[#allocation29_spill] sm:$0xff] %v5555_v16  ;;  %v5557_v59 = vpop.f32.mrb[155].mxu1 }
 0x4c0   : > { %6583 = vst [vmem:[#allocation30_spill] sm:$0xff] %v5557_v59  ;;  %v5559_v58 = vpop.f32.mrb[156].mxu1  ;;  %v5662_v30 = vpop.permute.xlu1 %2840 }
 0x4c1   : > { %6584 = vst [vmem:[#allocation31_spill] sm:$0xff] %v5559_v58  ;;  %v5561_v32 = vpop.f32.mrb[157].mxu1  ;;  %v6600_v58 = vmov 3   ;;  %6608 = vst [vmem:[#allocation54_spill] sm:$0xff] %v5662_v30 }
 0x4c2   : > { %6585 = vst [vmem:[#allocation32_spill] sm:$0xff] %v5561_v32  ;;  %v5565_v36 = vpop.f32.mrb[158].mxu1 }
 0x4c3   : > { %6586 = vst [vmem:[#allocation33_spill] sm:$0xff] %v5565_v36  ;;  %v5570_v63 = vpop.f32.mrb[159].mxu1 }
 0x4c4   : > { %6587 = vst [vmem:[#allocation34_spill] sm:$0xff] %v5570_v63  ;;  %v5572_v29 = vpop.f32.mrb[160].mxu1  ;;  %v5668_v33 = vpop.permute.xlu1 %2844 }
 0x4c5   : > { %6588 = vst [vmem:[#allocation35_spill] sm:$0xff] %v5572_v29  ;;  %v5574_v40 = vpop.f32.mrb[161].mxu1 }
 0x4c6   : > { %6589 = vst [vmem:[#allocation36_spill] sm:$0xff] %v5574_v40 }
 0x4c8   : > { %v5674_v27 = vpop.permute.xlu1 %2848 }
 0x4cc   : > { %v5684_v57 = vpop.permute.xlu1 %2856 }
 0x4e7   : > { %v4146_v37 = vpop.f32.mrb[112].mxu0 }
 0x4e8   : > { %2251 = vperm.xlu1 %4228, %v4146_v37   ;;  %v2160_v10 = vpop.f32.mrb[113].mxu0  ;;  %v5576_v37 = vpop.f32.mrb[162].mxu1 }
 0x4e9   : > { %v4147_v34 = vpop.f32.mrb[114].mxu0  ;;  %6590 = vst [vmem:[#allocation37_spill] sm:$0xff] %v5576_v37 }
 0x4ea   : > { %v2163_v51 = vpop.f32.mrb[115].mxu0 }
 0x4eb   : > { %2246 = vperm.xlu0 %4229, %v2163_v51  }
 0x4ec   : > { %2241 = vperm.xlu1 %4228, %v2160_v10  }
 0x4ef   : > { %4230 = vset.pattern.permute.xlu0 %v6526_v17  ;;  %v4150_v46 = vpop.f32.mrb[116].mxu0 }
 0x4f0   : > { %2256 = vperm.xlu1 %4228, %v4147_v34   ;;  %2884 = vperm.xlu0 %4230, %v4287_v19   ;;  %v2176_v21 = vpop.f32.mrb[117].mxu0  ;;  %v5579_v34 = vpop.f32.mrb[163].mxu1 }
 0x4f1   : > { %v4151_v56 = vpop.f32.mrb[118].mxu0  ;;  %6591 = vst [vmem:[#allocation38_spill] sm:$0xff] %v5579_v34  ;;  %v5581_v19 = vpop.f32.mrb[164].mxu1 }
 0x4f2   : > { %v2179_v31 = vpop.f32.mrb[119].mxu0  ;;  %6592 = vst [vmem:[#allocation39_spill] sm:$0xff] %v5581_v19 }
 0x4f4   : > { %4231 = vset.pattern.permute.xlu1 %v6526_v17  ;;  %4233 = vset.pattern.permute.xlu0 %v6553_v0 }
 0x4f5   : > { %2888 = vperm.xlu1 %4231, %v4288_v28   ;;  %2276 = vperm.xlu0 %4233, %v4151_v56   ;;  %v5583_v56 = vpop.f32.mrb[165].mxu1 }
 0x4f6   : > { %6593 = vst [vmem:[#allocation40_spill] sm:$0xff] %v5583_v56  ;;  %v5585_v28 = vpop.f32.mrb[166].mxu1 }
 0x4f7   : > { %v4154_v9 = vpop.f32.mrb[120].mxu0  ;;  %6594 = vst [vmem:[#allocation41_spill] sm:$0xff] %v5585_v28  ;;  %v5587_v17 = vpop.f32.mrb[167].mxu1 }
 0x4f8   : > { %v2192_v48 = vpop.f32.mrb[121].mxu0  ;;  %6595 = vst [vmem:[#allocation42_spill] sm:$0xff] %v5587_v17  ;;  %v5589_v40 = vpop.f32.mrb[168].mxu1 }
 0x4f9   : > { %4232 = vset.pattern.permute.xlu1 %v6553_v0  ;;  %2281 = vperm.xlu0 %4233, %v2192_v48   ;;  %v4155_v10 = vpop.f32.mrb[122].mxu0 }
 0x4fa   : > { %2271 = vperm.xlu1 %4232, %v4150_v46   ;;  %v2195_v51 = vpop.f32.mrb[123].mxu0  ;;  %v5591_v46 = vpop.f32.mrb[169].mxu1 }
 0x4fb   : > { %v5593_v19 = vpop.f32.mrb[170].mxu1 }
 0x4fc   : > { %6596 = vst [vmem:[#allocation43_spill] sm:$0xff] %v5593_v19  ;;  %v5597_v28 = vpop.f32.mrb[171].mxu1 }
 0x4fd   : > { %2296 = vperm.xlu0 %4233, %v4155_v10   ;;  %6597 = vst [vmem:[#allocation44_spill] sm:$0xff] %v5597_v28  ;;  %v5601_v17 = vpop.f32.mrb[172].mxu1 }
 0x4fe   : > { %2261 = vperm.xlu1 %4232, %v2176_v21   ;;  %6598 = vst [vmem:[#allocation45_spill] sm:$0xff] %v5601_v17 }
 0x4ff   : > { %v4158_v29 = vpop.f32.mrb[124].mxu0 }
 0x500   : > { %v2208_v37 = vpop.f32.mrb[125].mxu0 }
 0x501   : > { %2301 = vperm.xlu0 %4233, %v2208_v37   ;;  %v4159_v48 = vpop.f32.mrb[126].mxu0  ;;  %v5605_v37 = vpop.f32.mrb[173].mxu1 }
 0x502   : > { %2266 = vperm.xlu1 %4232, %v2179_v31   ;;  %v2211_v34 = vpop.f32.mrb[127].mxu0  ;;  %6599 = vst [vmem:[#allocation46_spill] sm:$0xff] %v5605_v37 }
 0x505   : > { %2316 = vperm.xlu0 %4233, %v4159_v48   ;;  %v5609_v48 = vpop.f32.mrb[174].mxu1 }
 0x506   : > { %2291 = vperm.xlu1 %4232, %v4154_v9   ;;  %v5611_v9 = vpop.f32.mrb[175].mxu1 }
 0x507   : > { %v5595_v10 = vpop.f32.mrb[128].mxu0 }
 0x508   : > { %v5599_v21 = vpop.f32.mrb[129].mxu0 }
 0x509   : > { %v5603_v56 = vpop.f32.mrb[130].mxu0 }
 0x50a   : > { %2286 = vperm.xlu1 %4232, %v2195_v51   ;;  %v5607_v31 = vpop.f32.mrb[131].mxu0  ;;  %v4289_v51 = vld [vmem:[%s6512_s8 + $0x70] sm:$0xff] }
 0x50e   : > { %2311 = vperm.xlu1 %4232, %v4158_v29  }
 0x50f   : > { %v5613_v19 = vpop.f32.mrb[132].mxu0 }
 0x510   : > { %v5615_v36 = vpop.f32.mrb[133].mxu0 }
 0x511   : > { %v5617_v28 = vpop.f32.mrb[134].mxu0 }
 0x512   : > { %2306 = vperm.xlu1 %4232, %v2211_v34   ;;  %v5619_v17 = vpop.f32.mrb[135].mxu0  ;;  %v4290_v34 = vld [vmem:[%s6512_s8 + $0x78] sm:$0xff] }
 0x516   : > { %4234 = vset.pattern.permute.xlu1 %v6600_v58 }
 0x517   : > { %2892 = vperm.xlu1 %4234, %v4289_v51   ;;  %v5625_v37 = vpop.f32.mrb[136].mxu0 }
 0x518   : > { %v5627_v63 = vpop.f32.mrb[137].mxu0 }
 0x519   : > { %v5629_v29 = vpop.f32.mrb[138].mxu0 }
 0x51a   : > { %v5631_v32 = vpop.f32.mrb[139].mxu0 }
 0x51b   : > { %2896 = vperm.xlu1 %4234, %v4290_v34  }
 0x51f   : > { %v5636_v16 = vpop.f32.mrb[140].mxu0 }
 0x520   : > { %v5638_v58 = vpop.f32.mrb[141].mxu0 }
 0x521   : > { %v5640_v8 = vpop.f32.mrb[142].mxu0 }
 0x522   : > { %v5642_v51 = vpop.f32.mrb[143].mxu0 }
 0x527   : > { %v5644_v59 = vpop.f32.mrb[144].mxu0 }
 0x528   : > { %6601 = vst [vmem:[#allocation47_spill] sm:$0xff] %v5644_v59  ;;  %v5646_v42 = vpop.f32.mrb[145].mxu0 }
 0x529   : > { %v5648_v12 = vpop.f32.mrb[146].mxu0 }
 0x52a   : > { %6602 = vst [vmem:[#allocation48_spill] sm:$0xff] %v5648_v12  ;;  %v5650_v0 = vpop.f32.mrb[147].mxu0  ;;  %v5714_v12 = vpop.permute.xlu0 %2852 }
 0x52b   : > { %6603 = vst [vmem:[#allocation49_spill] sm:$0xff] %v5650_v0 }
 0x52f   : > { %v5654_v53 = vpop.f32.mrb[148].mxu0 }
 0x530   : > { %6604 = vst [vmem:[#allocation50_spill] sm:$0xff] %v5654_v53  ;;  %v5656_v34 = vpop.f32.mrb[149].mxu0 }
 0x531   : > { %6605 = vst [vmem:[#allocation51_spill] sm:$0xff] %v5656_v34  ;;  %v5658_v55 = vpop.f32.mrb[150].mxu0 }
 0x532   : > { %6606 = vst [vmem:[#allocation52_spill] sm:$0xff] %v5658_v55  ;;  %v5660_v49 = vpop.f32.mrb[151].mxu0 }
 0x533   : > { %6607 = vst [vmem:[#allocation53_spill] sm:$0xff] %v5660_v49 }
 0x537   : > { %v5664_v23 = vpop.f32.mrb[152].mxu0 }
 0x538   : > { %6609 = vst [vmem:[#allocation55_spill] sm:$0xff] %v5664_v23  ;;  %v5666_v35 = vpop.f32.mrb[153].mxu0 }
 0x539   : > { %6610 = vst [vmem:[#allocation56_spill] sm:$0xff] %v5666_v35  ;;  %v5670_v41 = vpop.f32.mrb[154].mxu0 }
 0x53a   : > { %6611 = vst [vmem:[#allocation57_spill] sm:$0xff] %v5670_v41  ;;  %v5672_v1 = vpop.f32.mrb[155].mxu0 }
 0x53b   : > { %6612 = vst [vmem:[#allocation58_spill] sm:$0xff] %v5672_v1  ;;  %v5694_v1 = vpop.permute.xlu1 %2860 }
 0x53f   : > { %v5676_v11 = vpop.f32.mrb[156].mxu0  ;;  %v5696_v47 = vpop.permute.xlu1 %2864 }
 0x540   : > { %6613 = vst [vmem:[#allocation59_spill] sm:$0xff] %v5676_v11  ;;  %v5678_v53 = vpop.f32.mrb[157].mxu0 }
 0x541   : > { %6614 = vst [vmem:[#allocation60_spill] sm:$0xff] %v5678_v53  ;;  %v5680_v55 = vpop.f32.mrb[158].mxu0 }
 0x542   : > { %6615 = vst [vmem:[#allocation61_spill] sm:$0xff] %v5680_v55  ;;  %v5682_v3 = vpop.f32.mrb[159].mxu0 }
 0x543   : > { %6616 = vst [vmem:[#allocation62_spill] sm:$0xff] %v5682_v3  ;;  %v5702_v3 = vpop.permute.xlu1 %2872 }
 0x544   : > { %6623 = vst [vmem:[#allocation69_spill] sm:$0xff] %v5702_v3 }
 0x547   : > { %v5686_v23 = vpop.f32.mrb[160].mxu0 }
 0x548   : > { %6617 = vst [vmem:[#allocation63_spill] sm:$0xff] %v5686_v23  ;;  %v5688_v35 = vpop.f32.mrb[161].mxu0 }
 0x549   : > { %6618 = vst [vmem:[#allocation64_spill] sm:$0xff] %v5688_v35  ;;  %v5690_v49 = vpop.f32.mrb[162].mxu0 }
 0x54a   : > { %6619 = vst [vmem:[#allocation65_spill] sm:$0xff] %v5690_v49  ;;  %v5692_v41 = vpop.f32.mrb[163].mxu0 }
 0x54b   : > { %6620 = vst [vmem:[#allocation66_spill] sm:$0xff] %v5692_v41  ;;  %v5712_v41 = vpop.permute.xlu1 %2876 }
 0x54c   : > { %6628 = vst [vmem:[#allocation74_spill] sm:$0xff] %v5712_v41 }
 0x54f   : > { %v2766_v34 = vpop.f32.mrb[164].mxu0  ;;  %v5724_v3 = vpop.permute.xlu1 %2880 }
 0x550   : > { %v2768_v11 = vpop.f32.mrb[165].mxu0  ;;  %6633 = vst [vmem:[#allocation79_spill] sm:$0xff] %v5724_v3 }
 0x551   : > { %v5698_v53 = vpop.f32.mrb[166].mxu0 }
 0x552   : > { %6621 = vst [vmem:[#allocation67_spill] sm:$0xff] %v5698_v53  ;;  %v5700_v55 = vpop.f32.mrb[167].mxu0 }
 0x553   : > { %6622 = vst [vmem:[#allocation68_spill] sm:$0xff] %v5700_v55 }
 0x557   : > { %v5704_v7 = vpop.f32.mrb[168].mxu0 }
 0x558   : > { %6624 = vst [vmem:[#allocation70_spill] sm:$0xff] %v5704_v7  ;;  %v5706_v23 = vpop.f32.mrb[169].mxu0  ;;  %v5726_v7 = vpop.permute.xlu0 %2868 }
 0x559   : > { %6625 = vst [vmem:[#allocation71_spill] sm:$0xff] %v5706_v23  ;;  %v5708_v35 = vpop.f32.mrb[170].mxu0 }
 0x55a   : > { %6626 = vst [vmem:[#allocation72_spill] sm:$0xff] %v5708_v35  ;;  %v5710_v49 = vpop.f32.mrb[171].mxu0 }
 0x55b   : > { %6627 = vst [vmem:[#allocation73_spill] sm:$0xff] %v5710_v49 }
 0x55f   : > { %v5716_v59 = vpop.f32.mrb[172].mxu0 }
 0x560   : > { %6629 = vst [vmem:[#allocation75_spill] sm:$0xff] %v5716_v59  ;;  %v5718_v6 = vpop.f32.mrb[173].mxu0 }
 0x561   : > { %6630 = vst [vmem:[#allocation76_spill] sm:$0xff] %v5718_v6  ;;  %v5720_v53 = vpop.f32.mrb[174].mxu0 }
 0x562   : > { %6631 = vst [vmem:[#allocation77_spill] sm:$0xff] %v5720_v53  ;;  %v5722_v55 = vpop.f32.mrb[175].mxu0 }
 0x563   : > { %6632 = vst [vmem:[#allocation78_spill] sm:$0xff] %v5722_v55 }
 0x567   : > { %v2252_v23 = vpop.permute.xlu1 %2251  ;;  %v5728_v35 = vpop.f32.mrb[176].mxu0 }
 0x568   : > { %6634 = vst [vmem:[#allocation80_spill] sm:$0xff] %v5728_v35  ;;  %v2769_v49 = vadd.f32 %v2768_v11, %v2252_v23  ;;  %v5730_v0 = vpop.f32.mrb[177].mxu0  ;;  %v2430_v41 = vadd.f32 %v5471_v2, %v2252_v23  ;;  %v2543_v59 = vadd.f32 %v5615_v36, %v2252_v23  ;;  %v2428_v6 = vadd.f32 %v5469_v38, %v2252_v23 }
 0x569   : > { %6635 = vst [vmem:[#allocation81_spill] sm:$0xff] %v5730_v0  ;;  %v5735_v15 = vpop.f32.mrb[178].mxu0  ;;  %v2541_v53 = vadd.f32 %v5613_v19, %v2252_v23  ;;  %v5739_v55 = vadd.f32 %v5541_v5, %v2252_v23  ;;  %v5742_v3 = vadd.f32 %v5539_v14, %v2252_v23  ;;  %v5744_v35 = vadd.f32 %v2766_v34, %v2252_v23 }
 0x56a   : > { %6636 = vst [vmem:[#allocation82_spill] sm:$0xff] %v5735_v15  ;;  %v5747_v11 = vadd.f32 %v5668_v33, %v2769_v49  ;;  %v5749_v2 = vpop.permute.xlu0 %2246  ;;  %v5751_v36 = vpop.f32.mrb[179].mxu0  ;;  %v5754_v38 = vadd.f32 %v5668_v33, %v2430_v41  ;;  %v5757_v19 = vadd.f32 %v5668_v33, %v2543_v59  ;;  %v5760_v5 = vadd.f32 %v5668_v33, %v2428_v6 }
 0x56b   : > { %6637 = vst [vmem:[#allocation83_spill] sm:$0xff] %v5739_v55  ;;  %6638 = vst [vmem:[#allocation84_spill] sm:$0xff] %v5742_v3  ;;  %v5762_v14 = vpop.permute.xlu1 %2241  ;;  %v2424_v23 = vadd.f32 %v5467_v62, %v5749_v2  ;;  %v2537_v49 = vadd.f32 %v5607_v31, %v5749_v2  ;;  %v2422_v34 = vadd.f32 %v5465_v44, %v5749_v2 }
 0x56c   : > { %6639 = vst [vmem:[#allocation85_spill] sm:$0xff] %v5744_v35  ;;  %6640 = vst [vmem:[#allocation86_spill] sm:$0xff] %v5747_v11  ;;  %v2535_v41 = vadd.f32 %v5603_v56, %v5749_v2  ;;  %v2420_v6 = vadd.f32 %v5462_v43, %v5762_v14  ;;  %v2533_v15 = vadd.f32 %v5599_v21, %v5762_v14 }
 0x56d   : > { %6641 = vst [vmem:[#allocation87_spill] sm:$0xff] %v5749_v2  ;;  %6642 = vst [vmem:[#allocation88_spill] sm:$0xff] %v5751_v36  ;;  %v2418_v62 = vadd.f32 %v5458_v25, %v5762_v14  ;;  %v2908_v36 = vadd.f32 %v5662_v30, %v2424_v23  ;;  %v2910_v31 = vadd.f32 %v5662_v30, %v2537_v49 }
 0x56e   : > { %v2907_v44 = vadd.f32 %v5662_v30, %v2422_v34  ;;  %v2531_v56 = vadd.f32 %v5595_v10, %v5762_v14  ;;  %v2900_v59 = vadd.f32 %v5652_v13, %v2420_v6  ;;  %v2902_v0 = vadd.f32 %v5652_v13, %v2533_v15 }
 0x56f   : > { %v2899_v43 = vadd.f32 %v5652_v13, %v2418_v62  ;;  %v2909_v21 = vadd.f32 %v5662_v30, %v2535_v41  ;;  %v5788_v11 = vpop.permute.xlu1 %2256  ;;  %v5790_v25 = vpop.permute.xlu0 %2884  ;;  %v3036_v23 = vmax.f32 %v2908_v36, 0.0  ;;  %v3038_v35 = vmax.f32 %v2910_v31, 0.0 }
 0x570   : > { %v3035_v49 = vmax.f32 %v2907_v44, 0.0  ;;  %v2901_v34 = vadd.f32 %v5652_v13, %v2531_v56  ;;  %v3028_v3 = vmax.f32 %v2900_v59, 0.0  ;;  %v3030_v55 = vmax.f32 %v2902_v0, 0.0  ;;  %v5793_v6 = vpop.f32.mrb[180].mxu0 }
 0x571   : > { %v3027_v10 = vmax.f32 %v2899_v43, 0.0  ;;  %v3037_v2 = vmax.f32 %v2909_v21, 0.0  ;;  %v2434_v62 = vadd.f32 %v5475_v18, %v5788_v11  ;;  %v3044_v41 = vmax.f32 %v5754_v38, 0.0  ;;  %v5800_v36 = vpop.f32.mrb[181].mxu0 }
 0x572   : > { %v3029_v15 = vmax.f32 %v2901_v34, 0.0  ;;  %v2547_v30 = vadd.f32 %v5619_v17, %v5788_v11  ;;  %v3156_v31 = vpack.c.bf16 %v3036_v23, %v3028_v3  ;;  %v3158_v44 = vpack.c.bf16 %v3038_v35, %v3030_v55  ;;  %v5803_v59 = vpop.f32.mrb[182].mxu0 }
 0x573   : > { %v3155_v56 = vpack.c.bf16 %v3035_v49, %v3027_v10  ;;  %v3046_v0 = vmax.f32 %v5757_v19, 0.0  ;;  %v2924_v21 = vadd.f32 %v5674_v27, %v2434_v62  ;;  %v2432_v18 = vadd.f32 %v5473_v39, %v5788_v11  ;;  %v5809_v38 = vpop.f32.mrb[183].mxu0 }
 0x574   : > { %v3157_v43 = vpack.c.bf16 %v3037_v2, %v3029_v15  ;;  %v2926_v34 = vadd.f32 %v5674_v27, %v2547_v30  ;;  %v5811_v17 = vpop.permute.xlu1 %2888  ;;  %3283 = vmatprep.subr.bf16.mxu1 %v3156_v31  ;;  %3356 = vmatprep.subr.bf16.mxu0 %v3158_v44  ;;  %v5813_v3 = vpop.permute.xlu0 %2276  ;;  %v3043_v35 = vmax.f32 %v5760_v5, 0.0  ;;  %v2545_v55 = vadd.f32 %v5617_v28, %v5788_v11 }
 0x575   : > { %v2917_v2 = vadd.f32 %v5668_v33, %v2541_v53  ;;  %v5821_v30 = vadd.f32 %v5533_v45, %v5762_v14  ;;  %3284 = vmatpush1.bf16.msra.mxu1 %v3155_v56  ;;  %v3052_v39 = vmax.f32 %v2924_v21, 0.0  ;;  %v2923_v23 = vadd.f32 %v5674_v27, %v2432_v18 }
 0x576   : > { %3357 = vmatpush1.bf16.msra.mxu0 %v3157_v43  ;;  %v3054_v19 = vmax.f32 %v2926_v34, 0.0  ;;  %v2454_v49 = vadd.f32 %v5494_v20, %v5813_v3  ;;  %v2925_v5 = vadd.f32 %v5674_v27, %v2545_v55  ;;  %v2567_v28 = vadd.f32 %v5642_v51, %v5813_v3 }
 0x577   : > { %v3045_v10 = vmax.f32 %v2917_v2, 0.0  ;;  %v2452_v53 = vadd.f32 %v5492_v60, %v5813_v3  ;;  %v3164_v45 = vpack.c.bf16 %v3052_v39, %v3044_v41  ;;  %v3051_v62 = vmax.f32 %v2923_v23, 0.0  ;;  %v2816_v31 = vpop.f32.mrb[184].mxu0 }
 0x578   : > { %v3166_v15 = vpack.c.bf16 %v3054_v19, %v3046_v0  ;;  %v5832_v44 = vadd.f32 %v5696_v47, %v2454_v49  ;;  %v5834_v56 = vpop.permute.xlu0 %2281  ;;  %v3053_v43 = vmax.f32 %v2925_v5, 0.0  ;;  %v2818_v20 = vpop.f32.mrb[185].mxu0  ;;  %v5837_v21 = vadd.f32 %v5696_v47, %v2567_v28 }
 0x579   : > { %v5840_v34 = vadd.f32 %v5696_v47, %v2452_v53  ;;  %v2565_v60 = vadd.f32 %v5640_v8, %v5813_v3  ;;  %3285 = vmatprep.subr.bf16.mxu1 %v3164_v45  ;;  %v5844_v51 = vpop.permute.xlu1 %2271  ;;  %v3163_v41 = vpack.c.bf16 %v3051_v62, %v3043_v35  ;;  %v5846_v0 = vpop.f32.mrb[186].mxu0  ;;  %v2460_v55 = vadd.f32 %v5501_v26, %v5834_v56 }
 0x57a   : > { %3358 = vmatprep.subr.bf16.mxu0 %v3166_v15  ;;  %v2573_v2 = vadd.f32 %v5646_v42, %v5834_v56  ;;  %v3165_v39 = vpack.c.bf16 %v3053_v43, %v3045_v10  ;;  %v5853_v19 = vpop.f32.mrb[187].mxu0  ;;  %v2450_v8 = vadd.f32 %v5490_v22, %v5844_v51  ;;  %v2563_v23 = vadd.f32 %v5638_v58, %v5844_v51 }
 0x57b   : > { %3286 = vmatpush1.bf16.msra.mxu1 %v3163_v41  ;;  %v2448_v49 = vadd.f32 %v5488_v54, %v5844_v51  ;;  %v2561_v42 = vadd.f32 %v5636_v16, %v5844_v51  ;;  %v5866_v5 = vadd.f32 %v5696_v47, %v2565_v60  ;;  %v5873_v28 = vadd.f32 %v5726_v7, %v2460_v55 }
 0x57c   : > { %3359 = vmatpush1.bf16.msra.mxu0 %v3165_v39  ;;  %v5868_v10 = vpop.permute.xlu0 %2296  ;;  %v2948_v22 = vadd.f32 %v5694_v1, %v2450_v8  ;;  %v2950_v58 = vadd.f32 %v5694_v1, %v2563_v23  ;;  %v5876_v54 = vadd.f32 %v5726_v7, %v2573_v2  ;;  %v5885_v62 = vadd.f32 %v5499_v52, %v5834_v56 }
 0x57d   : > { %v5878_v53 = vpop.permute.xlu1 %2261  ;;  %v2947_v16 = vadd.f32 %v5694_v1, %v2448_v49  ;;  %v2949_v45 = vadd.f32 %v5694_v1, %v2561_v42  ;;  %v3085_v15 = vmax.f32 %v5866_v5, 0.0 }
 0x57e   : > { %v2440_v43 = vadd.f32 %v5481_v4, %v5878_v53  ;;  %v2553_v60 = vadd.f32 %v5627_v63, %v5878_v53  ;;  %v2438_v41 = vadd.f32 %v5477_v61, %v5878_v53  ;;  %v2551_v55 = vadd.f32 %v5625_v37, %v5878_v53 }
 0x57f   : > { %v5895_v2 = vpop.f32.mrb[188].mxu0  ;;  %v3076_v39 = vmax.f32 %v2948_v22, 0.0  ;;  %v3078_v8 = vmax.f32 %v2950_v58, 0.0  ;;  %v3075_v23 = vmax.f32 %v2947_v16, 0.0  ;;  %v3077_v49 = vmax.f32 %v2949_v45, 0.0 }
 0x580   : > { %6643 = vst [vmem:[#allocation89_spill] sm:$0xff] %v5895_v2  ;;  %v5897_v52 = vpop.permute.xlu0 %2301  ;;  %v5899_v42 = vpop.f32.mrb[189].mxu0  ;;  %v2932_v4 = vadd.f32 %v5714_v12, %v2440_v43  ;;  %v2934_v63 = vadd.f32 %v5714_v12, %v2553_v60  ;;  %v2931_v5 = vadd.f32 %v5714_v12, %v2438_v41  ;;  %v2933_v61 = vadd.f32 %v5714_v12, %v2551_v55 }
 0x581   : > { %v2704_v37 = vadd.f32 %v5589_v40, %v5897_v52  ;;  %v5907_v26 = vpop.permute.xlu1 %2266  ;;  %v2817_v22 = vadd.f32 %v2816_v31, %v5897_v52  ;;  %v2706_v58 = vadd.f32 %v5591_v46, %v5897_v52  ;;  %v2819_v16 = vadd.f32 %v2818_v20, %v5897_v52  ;;  %v2830_v45 = vpop.f32.mrb[190].mxu0 }
 0x582   : > { %v2832_v43 = vpop.f32.mrb[191].mxu0  ;;  %v2444_v60 = vadd.f32 %v5486_v50, %v5907_v26  ;;  %v3060_v41 = vmax.f32 %v2932_v4, 0.0  ;;  %v2557_v55 = vadd.f32 %v5631_v32, %v5907_v26  ;;  %v3062_v35 = vmax.f32 %v2934_v63, 0.0 }
 0x583   : > { %v5918_v40 = vadd.f32 %v5790_v25, %v2704_v37  ;;  %v5921_v31 = vadd.f32 %v5790_v25, %v2817_v22  ;;  %v5924_v46 = vadd.f32 %v5790_v25, %v2706_v58  ;;  %v5927_v20 = vadd.f32 %v5790_v25, %v2819_v16 }
 0x584   : > { %v2940_v18 = vadd.f32 %v5684_v57, %v2444_v60  ;;  %v2942_v50 = vadd.f32 %v5684_v57, %v2557_v55  ;;  %v2442_v32 = vadd.f32 %v5484_v24, %v5907_v26  ;;  %v3059_v4 = vmax.f32 %v2931_v5, 0.0  ;;  %v5939_v16 = vpop.permute.xlu0 %2316 }
 0x585   : > { %6644 = vst [vmem:[#allocation90_spill] sm:$0xff] %v5918_v40  ;;  %6645 = vst [vmem:[#allocation91_spill] sm:$0xff] %v5921_v31  ;;  %v5937_v2 = vpop.permute.xlu1 %2291  ;;  %v5943_v60 = vadd.f32 %v5609_v48, %v5939_v16  ;;  %v5946_v55 = vadd.f32 %v2830_v45, %v5939_v16  ;;  %v5950_v24 = vadd.f32 %v5611_v9, %v5939_v16  ;;  %v3061_v31 = vmax.f32 %v2933_v61, 0.0 }
 0x586   : > { %6646 = vst [vmem:[#allocation92_spill] sm:$0xff] %v5927_v20  ;;  %v5953_v5 = vadd.f32 %v2832_v43, %v5939_v16  ;;  %v3068_v37 = vmax.f32 %v2940_v18, 0.0  ;;  %v3070_v63 = vmax.f32 %v2942_v50, 0.0  ;;  %v2939_v58 = vadd.f32 %v5684_v57, %v2442_v32 }
 0x587   : > { %6647 = vst [vmem:[#allocation93_spill] sm:$0xff] %v5943_v60  ;;  %6648 = vst [vmem:[#allocation94_spill] sm:$0xff] %v5946_v55  ;;  %v2555_v22 = vadd.f32 %v5629_v29, %v5907_v26  ;;  %v6650_v48 = vmax.f32 %v5832_v44, 0.0  ;;  %v6651_v45 = vmax.f32 %v5837_v21, 0.0  ;;  %v6652_v9 = vmax.f32 %v5840_v34, 0.0  ;;  %v6653_v29 = vld [vmem:[#allocation10_spill] sm:$0xff] }
 0x588   : > { %6649 = vst [vmem:[#allocation95_spill] sm:$0xff] %v5953_v5  ;;  %v3172_v43 = vpack.c.bf16 %v3068_v37, %v3060_v41  ;;  %v3174_v18 = vpack.c.bf16 %v3070_v63, %v3062_v35  ;;  %v3067_v50 = vmax.f32 %v2939_v58, 0.0  ;;  %v3181_v5 = vpack.c.bf16 %v3085_v15, %v3077_v49  ;;  %v6655_v35 = vld [vmem:[#allocation8_spill] sm:$0xff]  ;;  %v6656_v63 = vld [vmem:[#allocation69_spill] sm:$0xff] }
 0x589   : > { %v3180_v60 = vpack.c.bf16 %v6650_v48, %v3076_v39  ;;  %v3182_v55 = vpack.c.bf16 %v6651_v45, %v3078_v8  ;;  %v3179_v40 = vpack.c.bf16 %v6652_v9, %v3075_v23  ;;  %v5964_v20 = vpop.permute.xlu1 %2286  ;;  %v2941_v32 = vadd.f32 %v5684_v57, %v2555_v22  ;;  %v6654_v39 = vld [vmem:[#allocation49_spill] sm:$0xff]  ;;  %v6659_v9 = vld [vmem:[#allocation12_spill] sm:$0xff] }
 0x58a   : > { %v2464_v61 = vadd.f32 %v6653_v29, %v5964_v20  ;;  %v3092_v44 = vmax.f32 %v5873_v28, 0.0  ;;  %v2577_v21 = vadd.f32 %v6654_v39, %v5964_v20  ;;  %3287 = vmatprep.subr.bf16.mxu1 %v3172_v43  ;;  %3360 = vmatprep.subr.bf16.mxu0 %v3174_v18  ;;  %v3171_v34 = vpack.c.bf16 %v3067_v50, %v3059_v4  ;;  %v6657_v28 = vld [vmem:[#allocation47_spill] sm:$0xff] }
 0x58b   : > { %v3069_v8 = vmax.f32 %v2941_v32, 0.0  ;;  %v3094_v23 = vmax.f32 %v5876_v54, 0.0  ;;  %v2462_v41 = vadd.f32 %v6655_v35, %v5964_v20  ;;  %v2963_v49 = vadd.f32 %v5726_v7, %v5885_v62  ;;  %v6658_v54 = vld [vmem:[#allocation48_spill] sm:$0xff] }
 0x58c   : > { %v2972_v37 = vadd.f32 %v6656_v63, %v2464_v61  ;;  %v2974_v15 = vadd.f32 %v6656_v63, %v2577_v21  ;;  %v2571_v22 = vadd.f32 %v6657_v28, %v5834_v56  ;;  %3288 = vmatpush1.bf16.msra.mxu1 %v3171_v34  ;;  %v2575_v45 = vadd.f32 %v6658_v54, %v5964_v20  ;;  %v6660_v61 = vld [vmem:[#allocation14_spill] sm:$0xff]  ;;  %v6664_v54 = vld [vmem:[#allocation53_spill] sm:$0xff] }
 0x58d   : > { %v3173_v58 = vpack.c.bf16 %v3069_v8, %v3061_v31  ;;  %v5981_v48 = vpop.permute.xlu1 %2311  ;;  %v2971_v4 = vadd.f32 %v6656_v63, %v2462_v41  ;;  %v2470_v43 = vadd.f32 %v6659_v9, %v5937_v2  ;;  %3289 = vmatprep.subr.bf16.mxu1 %v3180_v60  ;;  %v3091_v32 = vmax.f32 %v2963_v49, 0.0  ;;  %v6661_v21 = vld [vmem:[#allocation74_spill] sm:$0xff]  ;;  %v6662_v60 = vld [vmem:[#allocation51_spill] sm:$0xff] }
 0x58e   : > { %v3100_v18 = vmax.f32 %v2972_v37, 0.0  ;;  %v3102_v50 = vmax.f32 %v2974_v15, 0.0  ;;  %v2965_v62 = vadd.f32 %v5726_v7, %v2571_v22  ;;  %v2973_v31 = vadd.f32 %v6656_v63, %v2575_v45  ;;  %v6663_v22 = vld [vmem:[#allocation79_spill] sm:$0xff] }
 0x58f   : > { %3361 = vmatpush1.bf16.msra.mxu0 %v3173_v58  ;;  %v3099_v29 = vmax.f32 %v2971_v4, 0.0  ;;  %v2474_v39 = vadd.f32 %v6660_v61, %v5868_v10  ;;  %v2980_v34 = vadd.f32 %v6661_v21, %v2470_v43  ;;  %v2583_v37 = vadd.f32 %v6662_v60, %v5937_v2  ;;  %v6666_v9 = vld [vmem:[#allocation11_spill] sm:$0xff] }
 0x590   : > { %3362 = vmatprep.subr.bf16.mxu0 %v3182_v55  ;;  %v3188_v8 = vpack.c.bf16 %v3100_v18, %v3092_v44  ;;  %v3190_v35 = vpack.c.bf16 %v3102_v50, %v3094_v23  ;;  %v3093_v41 = vmax.f32 %v2965_v62, 0.0  ;;  %3290 = vmatpush1.bf16.msra.mxu1 %v3179_v40  ;;  %v3101_v28 = vmax.f32 %v2973_v31, 0.0  ;;  %v6665_v44 = vld [vmem:[#allocation9_spill] sm:$0xff]  ;;  %v6667_v50 = vld [vmem:[#allocation50_spill] sm:$0xff]  ;;  %v6668_v62 = vld [vmem:[#allocation52_spill] sm:$0xff] }
 0x591   : > { %v5995_v15 = vpop.permute.xlu1 %2306  ;;  %v3187_v49 = vpack.c.bf16 %v3099_v29, %v3091_v32  ;;  %v2988_v58 = vadd.f32 %v6663_v22, %v2474_v39  ;;  %v3108_v4 = vmax.f32 %v2980_v34, 0.0  ;;  %v2587_v45 = vadd.f32 %v6664_v54, %v5868_v10  ;;  %v6669_v60 = vld [vmem:[#allocation15_spill] sm:$0xff] }
 0x592   : > { %3291 = vmatprep.subr.bf16.mxu1 %v3188_v8  ;;  %v2982_v55 = vadd.f32 %v6661_v21, %v2583_v37  ;;  %v2468_v23 = vadd.f32 %v6665_v44, %v5937_v2  ;;  %v2472_v43 = vadd.f32 %v6666_v9, %v5868_v10  ;;  %v3189_v40 = vpack.c.bf16 %v3101_v28, %v3093_v41 }
 0x593   : > { %3363 = vmatpush1.bf16.msra.mxu0 %v3181_v5  ;;  %v3116_v18 = vmax.f32 %v2988_v58, 0.0  ;;  %v2581_v32 = vadd.f32 %v6667_v50, %v5937_v2  ;;  %v2585_v29 = vadd.f32 %v6668_v62, %v5868_v10  ;;  %v2990_v31 = vadd.f32 %v6663_v22, %v2587_v45  ;;  %v6670_v45 = vld [vmem:[#allocation17_spill] sm:$0xff] }
 0x594   : > { %3364 = vmatprep.subr.bf16.mxu0 %v3190_v35  ;;  %v3110_v61 = vmax.f32 %v2982_v55, 0.0  ;;  %v2979_v39 = vadd.f32 %v6661_v21, %v2468_v23  ;;  %v2987_v34 = vadd.f32 %v6663_v22, %v2472_v43  ;;  %3292 = vmatpush1.bf16.msra.mxu1 %v3187_v49  ;;  %v2480_v37 = vadd.f32 %v6669_v60, %v5897_v52  ;;  %v6671_v23 = vld [vmem:[#allocation56_spill] sm:$0xff]  ;;  %v6675_v60 = vld [vmem:[#allocation55_spill] sm:$0xff] }
 0x595   : > { %v3196_v8 = vpack.c.bf16 %v3116_v18, %v3108_v4  ;;  %v2981_v5 = vadd.f32 %v6661_v21, %v2581_v32  ;;  %v2989_v41 = vadd.f32 %v6663_v22, %v2585_v29  ;;  %v3118_v28 = vmax.f32 %v2990_v31, 0.0  ;;  %v6672_v32 = vld [vmem:[#allocation58_spill] sm:$0xff] }
 0x596   : > { %v6016_v58 = vpop.permute.xlu1 %2892  ;;  %v3107_v35 = vmax.f32 %v2979_v39, 0.0  ;;  %v3115_v54 = vmax.f32 %v2987_v34, 0.0  ;;  %v2484_v55 = vadd.f32 %v6670_v45, %v5995_v15  ;;  %v2996_v4 = vadd.f32 %v5790_v25, %v2480_v37 }
 0x597   : > { %3365 = vmatpush1.bf16.msra.mxu0 %v3189_v40  ;;  %3293 = vmatprep.subr.bf16.mxu1 %v3196_v8  ;;  %v3109_v44 = vmax.f32 %v2981_v5, 0.0  ;;  %v3117_v49 = vmax.f32 %v2989_v41, 0.0  ;;  %v2593_v9 = vadd.f32 %v6671_v23, %v5897_v52  ;;  %v3198_v43 = vpack.c.bf16 %v3118_v28, %v3110_v61  ;;  %v6673_v40 = vld [vmem:[#allocation13_spill] sm:$0xff]  ;;  %v6674_v61 = vld [vmem:[#allocation16_spill] sm:$0xff] }
 0x598   : > { %v3195_v18 = vpack.c.bf16 %v3115_v54, %v3107_v35  ;;  %v3004_v50 = vadd.f32 %v5811_v17, %v2484_v55  ;;  %v2597_v62 = vadd.f32 %v6672_v32, %v5995_v15  ;;  %v3124_v31 = vmax.f32 %v2996_v4, 0.0  ;;  %v6676_v54 = vld [vmem:[#allocation57_spill] sm:$0xff]  ;;  %v6677_v55 = vld [vmem:[#allocation19_spill] sm:$0xff] }
 0x599   : > { %v3197_v29 = vpack.c.bf16 %v3117_v49, %v3109_v44  ;;  %v2998_v39 = vadd.f32 %v5790_v25, %v2593_v9  ;;  %v2478_v34 = vadd.f32 %v6673_v40, %v5897_v52  ;;  %3366 = vmatprep.subr.bf16.mxu0 %v3198_v43  ;;  %v2482_v41 = vadd.f32 %v6674_v61, %v5995_v15 }
 0x59a   : > { %3294 = vmatpush1.bf16.msra.mxu1 %v3195_v18  ;;  %v3132_v8 = vmax.f32 %v3004_v50, 0.0  ;;  %v3006_v5 = vadd.f32 %v5811_v17, %v2597_v62  ;;  %v2591_v37 = vadd.f32 %v6675_v60, %v5897_v52  ;;  %v2595_v45 = vadd.f32 %v6676_v54, %v5995_v15  ;;  %v6039_v49 = vpop.permute.xlu1 %2896  ;;  %v6678_v50 = vld [vmem:[#allocation21_spill] sm:$0xff] }
 0x59b   : > { %3367 = vmatpush1.bf16.msra.mxu0 %v3197_v29  ;;  %v3126_v28 = vmax.f32 %v2998_v39, 0.0  ;;  %v2995_v35 = vadd.f32 %v5790_v25, %v2478_v34  ;;  %v2490_v44 = vadd.f32 %v6677_v55, %v5981_v48  ;;  %v3003_v9 = vadd.f32 %v5811_v17, %v2482_v41  ;;  %v6679_v34 = vld [vmem:[#allocation60_spill] sm:$0xff] }
 0x59c   : > { %v3204_v4 = vpack.c.bf16 %v3132_v8, %v3124_v31  ;;  %v3134_v23 = vmax.f32 %v3006_v5, 0.0  ;;  %v2997_v43 = vadd.f32 %v5790_v25, %v2591_v37  ;;  %v3005_v52 = vadd.f32 %v5811_v17, %v2595_v45  ;;  %v6680_v25 = vld [vmem:[#allocation62_spill] sm:$0xff] }
 0x59d   : > { %v3123_v18 = vmax.f32 %v2995_v35, 0.0  ;;  %v2494_v32 = vadd.f32 %v6678_v50, %v5939_v16  ;;  %v3012_v62 = vadd.f32 %v6016_v58, %v2490_v44  ;;  %v3131_v39 = vmax.f32 %v3003_v9, 0.0  ;;  %v6681_v35 = vld [vmem:[#allocation18_spill] sm:$0xff]  ;;  %v6684_v50 = vld [vmem:[#allocation61_spill] sm:$0xff] }
 0x59e   : > { %3295 = vmatprep.subr.bf16.mxu1 %v3204_v4  ;;  %v3206_v29 = vpack.c.bf16 %v3134_v23, %v3126_v28  ;;  %v3125_v40 = vmax.f32 %v2997_v43, 0.0  ;;  %v2603_v31 = vadd.f32 %v6679_v34, %v5981_v48  ;;  %v3133_v8 = vmax.f32 %v3005_v52, 0.0  ;;  %v6682_v28 = vld [vmem:[#allocation20_spill] sm:$0xff]  ;;  %v6683_v23 = vld [vmem:[#allocation59_spill] sm:$0xff] }
 0x59f   : > { %v3020_v5 = vadd.f32 %v6039_v49, %v2494_v32  ;;  %v3140_v61 = vmax.f32 %v3012_v62, 0.0  ;;  %v2607_v41 = vadd.f32 %v6680_v25, %v5939_v16  ;;  %v3203_v60 = vpack.c.bf16 %v3131_v39, %v3123_v18  ;;  %v6686_v34 = vld [vmem:[#allocation24_spill] sm:$0xff] }
 0x5a0   : > { %3368 = vmatprep.subr.bf16.mxu0 %v3206_v29  ;;  %v3014_v37 = vadd.f32 %v6016_v58, %v2603_v31  ;;  %v2488_v54 = vadd.f32 %v6681_v35, %v5981_v48  ;;  %v2492_v45 = vadd.f32 %v6682_v28, %v5939_v16  ;;  %v3205_v55 = vpack.c.bf16 %v3133_v8, %v3125_v40  ;;  %v6685_v40 = vld [vmem:[#allocation87_spill] sm:$0xff]  ;;  %v6687_v35 = vld [vmem:[#allocation54_spill] sm:$0xff] }
 0x5a1   : > { %v3148_v44 = vmax.f32 %v3020_v5, 0.0  ;;  %v3022_v4 = vadd.f32 %v6039_v49, %v2607_v41  ;;  %v2601_v9 = vadd.f32 %v6683_v23, %v5981_v48  ;;  %3296 = vmatpush1.bf16.msra.mxu1 %v3203_v60  ;;  %v2605_v32 = vadd.f32 %v6684_v50, %v5939_v16 }
 0x5a2   : > { %v3142_v43 = vmax.f32 %v3014_v37, 0.0  ;;  %v3011_v52 = vadd.f32 %v6016_v58, %v2488_v54  ;;  %v3019_v18 = vadd.f32 %v6039_v49, %v2492_v45  ;;  %3369 = vmatpush1.bf16.msra.mxu0 %v3205_v55  ;;  %v2650_v31 = vadd.f32 %v6686_v34, %v6685_v40  ;;  %v6693_v34 = vld [vmem:[#allocation65_spill] sm:$0xff] }
 0x5a3   : > { %v3212_v62 = vpack.c.bf16 %v3148_v44, %v3140_v61  ;;  %v3150_v29 = vmax.f32 %v3022_v4, 0.0  ;;  %v3013_v39 = vadd.f32 %v6016_v58, %v2601_v9  ;;  %v3021_v25 = vadd.f32 %v6039_v49, %v2605_v32  ;;  %v6688_v61 = vld [vmem:[#allocation64_spill] sm:$0xff]  ;;  %v6689_v44 = vld [vmem:[#allocation66_spill] sm:$0xff] }
 0x5a4   : > { %v3139_v8 = vmax.f32 %v3011_v52, 0.0  ;;  %v3147_v5 = vmax.f32 %v3019_v18, 0.0  ;;  %v2904_v41 = vadd.f32 %v5652_v13, %v5821_v30  ;;  %v2912_v16 = vadd.f32 %v6687_v35, %v2650_v31  ;;  %v6079_v30 = vld [vmem:[%s6510_s6] sm:$0xff]  }
 0x5a5   : > { %3297 = vmatprep.subr.bf16.mxu1 %v3212_v62  ;;  %v3214_v60 = vpack.c.bf16 %v3150_v29, %v3142_v43  ;;  %v3141_v37 = vmax.f32 %v3013_v39, 0.0  ;;  %v2759_v54 = vadd.f32 %v6688_v61, %v5762_v14  ;;  %v3149_v45 = vmax.f32 %v3021_v25, 0.0  ;;  %v6690_v43 = vld [vmem:[#allocation22_spill] sm:$0xff]  ;;  %v6691_v18 = vld [vmem:[#allocation23_spill] sm:$0xff] }
 0x5a6   : > { %v3211_v28 = vpack.c.bf16 %v3147_v5, %v3139_v8  ;;  %v3032_v55 = vmax.f32 %v2904_v41, 0.0  ;;  %v2763_v4 = vadd.f32 %v6689_v44, %v6685_v40  ;;  %v3040_v23 = vmax.f32 %v2912_v16, 0.0  ;;  %v6692_v29 = vld [vmem:[#allocation63_spill] sm:$0xff]  ;;  %v6694_v61 = vld [vmem:[#allocation26_spill] sm:$0xff] }
 0x5a7   : > { %3370 = vmatprep.subr.bf16.mxu0 %v3214_v60  ;;  %v2906_v9 = vadd.f32 %v5652_v13, %v2759_v54  ;;  %v2644_v52 = vadd.f32 %v6690_v43, %v5762_v14  ;;  %v2648_v50 = vadd.f32 %v6691_v18, %v6685_v40  ;;  %v3213_v32 = vpack.c.bf16 %v3149_v45, %v3141_v37 }
 0x5a8   : > { %3298 = vmatpush1.bf16.msra.mxu1 %v3211_v28  ;;  %v2914_v62 = vadd.f32 %v6687_v35, %v2763_v4  ;;  %v2757_v39 = vadd.f32 %v6692_v29, %v5762_v14  ;;  %v2761_v31 = vadd.f32 %v6693_v34, %v6685_v40  ;;  %v3160_v8 = vpack.c.bf16 %v3040_v23, %v3032_v55  ;;  %v6695_v28 = vld [vmem:[#allocation83_spill] sm:$0xff]  ;;  %v6696_v55 = vld [vmem:[#allocation68_spill] sm:$0xff] }
 0x5a9   : > { %v3034_v5 = vmax.f32 %v2906_v9, 0.0  ;;  %v2903_v25 = vadd.f32 %v5652_v13, %v2644_v52  ;;  %v2911_v41 = vadd.f32 %v6687_v35, %v2648_v50  ;;  %3371 = vmatpush1.bf16.msra.mxu0 %v3213_v32  ;;  %v2660_v54 = vadd.f32 %v6694_v61, %v5788_v11  ;;  %v6698_v50 = vld [vmem:[#allocation25_spill] sm:$0xff]  ;;  %v6120_v61 = vld [vmem:[%s6510_s6 + $0x8] sm:$0xff]  }
 0x5aa   : > { %v3042_v60 = vmax.f32 %v2914_v62, 0.0  ;;  %v2905_v16 = vadd.f32 %v5652_v13, %v2757_v39  ;;  %v2913_v37 = vadd.f32 %v6687_v35, %v2761_v31  ;;  %3429 = vmatprep.subr.bf16.mxu1 %v3160_v8  ;;  %v2920_v45 = vadd.f32 %v5668_v33, %v6695_v28  ;;  %v6699_v39 = vld [vmem:[#allocation84_spill] sm:$0xff]  ;;  %v6700_v31 = vld [vmem:[#allocation67_spill] sm:$0xff] }
 0x5ab   : > { %3316 = vmatmul.mubr.bf16.vlgmr.msra.gmra.mrb[176].mxu1 %v6079_v30  ;;  %v3031_v14 = vmax.f32 %v2903_v25, 0.0  ;;  %v3039_v40 = vmax.f32 %v2911_v41, 0.0  ;;  %v2773_v44 = vadd.f32 %v6696_v55, %v5788_v11  ;;  %v2928_v13 = vadd.f32 %v5674_v27, %v2660_v54  ;;  %v6701_v41 = vld [vmem:[#allocation85_spill] sm:$0xff] }
 0x5ac   : > { %v3162_v4 = vpack.c.bf16 %v3042_v60, %v3034_v5  ;;  %v3033_v23 = vmax.f32 %v2905_v16, 0.0  ;;  %v3041_v9 = vmax.f32 %v2913_v37, 0.0  ;;  %v6697_v35 = vmov 0   ;;  %3389 = vmatmul.mubr.bf16.vlgmr.msra.gmra.mrb[192].mxu0 %v6079_v30  ;;  %v6702_v16 = vld [vmem:[#allocation28_spill] sm:$0xff] }
 0x5ad   : > { %3325 = vmatprep.mubr.bf16.mxu1 %v6697_v35  ;;  %v3159_v43 = vpack.c.bf16 %v3039_v40, %v3031_v14  ;;  %v3048_v52 = vmax.f32 %v2920_v45, 0.0  ;;  %v2930_v18 = vadd.f32 %v5674_v27, %v2773_v44  ;;  %v2658_v32 = vadd.f32 %v6698_v50, %v5788_v11  ;;  %3398 = vmatprep.mubr.bf16.mxu0 %v6697_v35  ;;  %v6703_v40 = vld [vmem:[#allocation30_spill] sm:$0xff] }
 0x5ae   : > { %3502 = vmatprep.subr.bf16.mxu0 %v3162_v4  ;;  %v3161_v62 = vpack.c.bf16 %v3041_v9, %v3033_v23  ;;  %v3056_v29 = vmax.f32 %v2928_v13, 0.0  ;;  %v2919_v34 = vadd.f32 %v5668_v33, %v6699_v39  ;;  %v2771_v8 = vadd.f32 %v6700_v31, %v5788_v11  ;;  %v6704_v45 = vld [vmem:[#allocation86_spill] sm:$0xff]  ;;  %v6709_v39 = vld [vmem:[#allocation29_spill] sm:$0xff] }
 0x5af   : > { %3430 = vmatpush1.bf16.msra.mxu1 %v3159_v43  ;;  %v3058_v5 = vmax.f32 %v2930_v18, 0.0  ;;  %v2927_v25 = vadd.f32 %v5674_v27, %v2658_v32  ;;  %v2921_v60 = vadd.f32 %v5668_v33, %v6701_v41  ;;  %v2666_v37 = vadd.f32 %v6702_v16, %v5878_v53  ;;  %v6706_v43 = vld [vmem:[#allocation71_spill] sm:$0xff]  ;;  %v6707_v18 = vld [vmem:[#allocation73_spill] sm:$0xff]  ;;  %v6710_v16 = vld [vmem:[#allocation70_spill] sm:$0xff] }
 0x5b0   : > { %3503 = vmatpush1.bf16.msra.mxu0 %v3161_v62  ;;  %v3168_v54 = vpack.c.bf16 %v3056_v29, %v3048_v52  ;;  %v3047_v11 = vmax.f32 %v2919_v34, 0.0  ;;  %v2929_v14 = vadd.f32 %v5674_v27, %v2771_v8  ;;  %v2670_v28 = vadd.f32 %v6703_v40, %v5907_v26  ;;  %v6708_v62 = vld [vmem:[#allocation27_spill] sm:$0xff]  ;;  %v6711_v40 = vld [vmem:[#allocation72_spill] sm:$0xff] }
 0x5b1   : > { %v6705_v55 = vmax.f32 %v6704_v45, 0.0  ;;  %v3055_v33 = vmax.f32 %v2927_v25, 0.0  ;;  %v3049_v4 = vmax.f32 %v2921_v60, 0.0  ;;  %v2936_v23 = vadd.f32 %v5714_v12, %v2666_v37 }
 0x5b2   : > { %3431 = vmatprep.subr.bf16.mxu1 %v3168_v54  ;;  %v3057_v9 = vmax.f32 %v2929_v14, 0.0  ;;  %v2944_v13 = vadd.f32 %v5684_v57, %v2670_v28  ;;  %v2779_v52 = vadd.f32 %v6706_v43, %v5878_v53  ;;  %v2783_v27 = vadd.f32 %v6707_v18, %v5907_v26 }
 0x5b3   : > { %v3170_v44 = vpack.c.bf16 %v3058_v5, %v6705_v55  ;;  %v3167_v50 = vpack.c.bf16 %v3055_v33, %v3047_v11  ;;  %v3064_v32 = vmax.f32 %v2936_v23, 0.0  ;;  %3326 = vmatmul.mubr.bf16.gmra.mrb[180].mxu1 %v6120_v61  ;;  %v2664_v29 = vadd.f32 %v6708_v62, %v5878_v53  ;;  %v6712_v33 = vld [vmem:[#allocation32_spill] sm:$0xff] }
 0x5b4   : > { %v2668_v34 = vadd.f32 %v6709_v39, %v5907_v26  ;;  %v3169_v31 = vpack.c.bf16 %v3057_v9, %v3049_v4  ;;  %v3072_v8 = vmax.f32 %v2944_v13, 0.0  ;;  %v2938_v5 = vadd.f32 %v5714_v12, %v2779_v52  ;;  %3335 = vmatprep.mubr.bf16.mxu1 %v6697_v35  ;;  %3399 = vmatmul.mubr.bf16.gmra.mrb[196].mxu0 %v6120_v61  ;;  %v6713_v13 = vld [vmem:[#allocation34_spill] sm:$0xff] }
 0x5b5   : > { %3504 = vmatprep.subr.bf16.mxu0 %v3170_v44  ;;  %v2946_v25 = vadd.f32 %v5684_v57, %v2783_v27  ;;  %3432 = vmatpush1.bf16.msra.mxu1 %v3167_v50  ;;  %v2935_v41 = vadd.f32 %v5714_v12, %v2664_v29  ;;  %v2777_v37 = vadd.f32 %v6710_v16, %v5878_v53  ;;  %v4402_v23 = vmov 4   ;;  %v4292_v29 = vld [vmem:[%s6512_s8 + $0x8] sm:$0xff] }
 0x5b6   : > { %v2943_v60 = vadd.f32 %v5684_v57, %v2668_v34  ;;  %3505 = vmatpush1.bf16.msra.mxu0 %v3169_v31  ;;  %v3176_v54 = vpack.c.bf16 %v3072_v8, %v3064_v32  ;;  %v3066_v11 = vmax.f32 %v2938_v5, 0.0  ;;  %v2781_v28 = vadd.f32 %v6711_v40, %v5907_v26  ;;  %3408 = vmatprep.mubr.bf16.mxu0 %v6697_v35  ;;  %v6714_v26 = vld [vmem:[#allocation76_spill] sm:$0xff]  ;;  %v6715_v32 = vld [vmem:[#allocation78_spill] sm:$0xff]  ;;  %v6716_v8 = vld [vmem:[#allocation31_spill] sm:$0xff] }
 0x5b7   : > { %v3074_v14 = vmax.f32 %v2946_v25, 0.0  ;;  %v3063_v45 = vmax.f32 %v2935_v41, 0.0  ;;  %v2937_v44 = vadd.f32 %v5714_v12, %v2777_v37  ;;  %v2676_v4 = vadd.f32 %v6712_v33, %v5844_v51  ;;  %4235 = vset.pattern.permute.xlu0 %v4402_v23  ;;  %4236 = vset.pattern.permute.xlu1 %v4402_v23  ;;  %v6160_v12 = vld [vmem:[%s6510_s6 + $0x10] sm:$0xff]   ;;  %v6718_v37 = vld [vmem:[#allocation75_spill] sm:$0xff] }
 0x5b8   : > { %v3071_v55 = vmax.f32 %v2943_v60, 0.0  ;;  %3433 = vmatprep.subr.bf16.mxu1 %v3176_v54  ;;  %v2945_v9 = vadd.f32 %v5684_v57, %v2781_v28  ;;  %v2680_v43 = vadd.f32 %v6713_v13, %v5813_v3  ;;  %v2789_v52 = vadd.f32 %v6714_v26, %v5844_v51  ;;  %v4291_v57 = vld [vmem:[%s6512_s8] sm:$0xff]  ;;  %3232 = vperm.xlu1 %4236, %v4292_v29   ;;  %v6717_v60 = vld [vmem:[#allocation33_spill] sm:$0xff]  ;;  %v6721_v13 = vld [vmem:[#allocation38_spill] sm:$0xff] }
 0x5b9   : > { %v3178_v53 = vpack.c.bf16 %v3074_v14, %v3066_v11  ;;  %v3065_v27 = vmax.f32 %v2937_v44, 0.0  ;;  %v2952_v50 = vadd.f32 %v5694_v1, %v2676_v4  ;;  %v2793_v62 = vadd.f32 %v6715_v32, %v5813_v3  ;;  %3228 = vperm.xlu0 %4235, %v4291_v57   ;;  %v6719_v44 = vld [vmem:[#allocation77_spill] sm:$0xff] }
 0x5ba   : > { %v3175_v18 = vpack.c.bf16 %v3071_v55, %v3063_v45  ;;  %v3073_v39 = vmax.f32 %v2945_v9, 0.0  ;;  %v2960_v34 = vadd.f32 %v5696_v47, %v2680_v43  ;;  %v2954_v31 = vadd.f32 %v5694_v1, %v2789_v52 }
 0x5bb   : > { %3506 = vmatprep.subr.bf16.mxu0 %v3178_v53  ;;  %v2674_v5 = vadd.f32 %v6716_v8, %v5844_v51  ;;  %v3080_v25 = vmax.f32 %v2952_v50, 0.0  ;;  %v2962_v41 = vadd.f32 %v5696_v47, %v2793_v62  ;;  %v2678_v16 = vadd.f32 %v6717_v60, %v5813_v3  ;;  %3336 = vmatmul.mubr.bf16.gmra.mrb[184].mxu1 %v6160_v12  ;;  %v6720_v53 = vld [vmem:[#allocation36_spill] sm:$0xff]  ;;  %v6722_v62 = vld [vmem:[#allocation81_spill] sm:$0xff]  ;;  %v6724_v8 = vld [vmem:[#allocation35_spill] sm:$0xff] }
 0x5bc   : > { %3434 = vmatpush1.bf16.msra.mxu1 %v3175_v18  ;;  %v2787_v54 = vadd.f32 %v6718_v37, %v5844_v51  ;;  %v3177_v11 = vpack.c.bf16 %v3073_v39, %v3065_v27  ;;  %v3088_v14 = vmax.f32 %v2960_v34, 0.0  ;;  %v3082_v40 = vmax.f32 %v2954_v31, 0.0  ;;  %3409 = vmatmul.mubr.bf16.gmra.mrb[200].mxu0 %v6160_v12  ;;  %v4293_v18 = vld [vmem:[%s6512_s8 + $0x18] sm:$0xff]  ;;  %v4294_v27 = vld [vmem:[%s6512_s8 + $0x10] sm:$0xff] }
 0x5bd   : > { %v2951_v28 = vadd.f32 %v5694_v1, %v2674_v5  ;;  %v3090_v45 = vmax.f32 %v2962_v41, 0.0  ;;  %v2959_v55 = vadd.f32 %v5696_v47, %v2678_v16  ;;  %v2791_v33 = vadd.f32 %v6719_v44, %v5813_v3  ;;  %3345 = vmatprep.mubr.bf16.mxu1 %v6697_v35  ;;  %3418 = vmatprep.mubr.bf16.mxu0 %v6697_v35  ;;  %v6209_v39 = vld [vmem:[%s6510_s6 + $0x18] sm:$0xff]  }
 0x5be   : > { %v2953_v4 = vadd.f32 %v5694_v1, %v2787_v54  ;;  %3507 = vmatpush1.bf16.msra.mxu0 %v3177_v11  ;;  %v3184_v51 = vpack.c.bf16 %v3088_v14, %v3080_v25  ;;  %v2686_v9 = vadd.f32 %v6720_v53, %v5834_v56  ;;  %v2690_v43 = vadd.f32 %v6721_v13, %v5964_v20  ;;  %v6725_v25 = vld [vmem:[#allocation37_spill] sm:$0xff] }
 0x5bf   : > { %v3079_v23 = vmax.f32 %v2951_v28, 0.0  ;;  %v3186_v26 = vpack.c.bf16 %v3090_v45, %v3082_v40  ;;  %v3087_v52 = vmax.f32 %v2959_v55, 0.0  ;;  %v2961_v3 = vadd.f32 %v5696_v47, %v2791_v33  ;;  %3240 = vperm.xlu0 %4235, %v4293_v18   ;;  %3236 = vperm.xlu1 %4236, %v4294_v27   ;;  %v6723_v47 = vld [vmem:[#allocation88_spill] sm:$0xff] }
 0x5c0   : > { %v3081_v1 = vmax.f32 %v2953_v4, 0.0  ;;  %3435 = vmatprep.subr.bf16.mxu1 %v3184_v51  ;;  %v2968_v50 = vadd.f32 %v5726_v7, %v2686_v9  ;;  %v2976_v32 = vadd.f32 %v6656_v63, %v2690_v43  ;;  %v2799_v57 = vadd.f32 %v6722_v62, %v5834_v56  ;;  %v6726_v28 = vld [vmem:[#allocation80_spill] sm:$0xff]  ;;  %v6727_v4 = vld [vmem:[#allocation82_spill] sm:$0xff] }
 0x5c1   : > { %v2803_v29 = vadd.f32 %v6723_v47, %v5964_v20  ;;  %3508 = vmatprep.subr.bf16.mxu0 %v3186_v26  ;;  %v3183_v34 = vpack.c.bf16 %v3087_v52, %v3079_v23  ;;  %v3089_v31 = vmax.f32 %v2961_v3, 0.0  ;;  %v2684_v5 = vadd.f32 %v6724_v8, %v5834_v56  ;;  %v4295_v23 = vld [vmem:[%s6512_s8 + $0x28] sm:$0xff]  ;;  %v6729_v52 = vld [vmem:[#allocation42_spill] sm:$0xff] }
 0x5c2   : > { %v2688_v41 = vadd.f32 %v6725_v25, %v5964_v20  ;;  %v3096_v60 = vmax.f32 %v2968_v50, 0.0  ;;  %v3104_v16 = vmax.f32 %v2976_v32, 0.0  ;;  %v2970_v37 = vadd.f32 %v5726_v7, %v2799_v57  ;;  %v4296_v32 = vld [vmem:[%s6512_s8 + $0x20] sm:$0xff] }
 0x5c3   : > { %v2978_v54 = vadd.f32 %v6656_v63, %v2803_v29  ;;  %3436 = vmatpush1.bf16.msra.mxu1 %v3183_v34  ;;  %v3185_v11 = vpack.c.bf16 %v3089_v31, %v3081_v1  ;;  %v2967_v14 = vadd.f32 %v5726_v7, %v2684_v5  ;;  %v2797_v45 = vadd.f32 %v6726_v28, %v5834_v56  ;;  %v6728_v56 = vld [vmem:[#allocation40_spill] sm:$0xff]  ;;  %v6730_v57 = vld [vmem:[#allocation39_spill] sm:$0xff]  ;;  %v6731_v34 = vld [vmem:[#allocation41_spill] sm:$0xff] }
 0x5c4   : > { %v2975_v40 = vadd.f32 %v6656_v63, %v2688_v41  ;;  %v3192_v55 = vpack.c.bf16 %v3104_v16, %v3096_v60  ;;  %v3098_v44 = vmax.f32 %v2970_v37, 0.0  ;;  %v2801_v51 = vadd.f32 %v6727_v4, %v5964_v20  ;;  %3346 = vmatmul.mubr.bf16.gmra.mrb[188].mxu1 %v6209_v39  ;;  %3248 = vperm.xlu0 %4235, %v4295_v23   ;;  %v4297_v5 = vld [vmem:[%s6512_s8 + $0x38] sm:$0xff]  ;;  %v6732_v28 = vld [vmem:[#allocation44_spill] sm:$0xff] }
 0x5c5   : > { %v3106_v33 = vmax.f32 %v2978_v54, 0.0  ;;  %3509 = vmatpush1.bf16.msra.mxu0 %v3185_v11  ;;  %v3095_v53 = vmax.f32 %v2967_v14, 0.0  ;;  %v2969_v13 = vadd.f32 %v5726_v7, %v2797_v45  ;;  %v2696_v43 = vadd.f32 %v6728_v56, %v5937_v2  ;;  %3461 = vmatprep.mubr.bf16.mxu1 %v6697_v35 }
 0x5c6   : > { %v3103_v9 = vmax.f32 %v2975_v40, 0.0  ;;  %3437 = vmatprep.subr.bf16.mxu1 %v3192_v55  ;;  %v2977_v20 = vadd.f32 %v6656_v63, %v2801_v51  ;;  %v2700_v3 = vadd.f32 %v6729_v52, %v5868_v10  ;;  %v2809_v1 = vadd.f32 %v5800_v36, %v5937_v2  ;;  %3419 = vmatmul.mubr.bf16.gmra.mrb[204].mxu0 %v6209_v39  ;;  %v6733_v51 = vld [vmem:[#allocation43_spill] sm:$0xff] }
 0x5c7   : > { %v3194_v26 = vpack.c.bf16 %v3106_v33, %v3098_v44  ;;  %v3097_v27 = vmax.f32 %v2969_v13, 0.0  ;;  %v2984_v50 = vadd.f32 %v6661_v21, %v2696_v43  ;;  %v2813_v7 = vadd.f32 %v5809_v38, %v5868_v10  ;;  %3244 = vperm.xlu1 %4236, %v4296_v32   ;;  %3534 = vmatprep.mubr.bf16.mxu0 %v6697_v35 }
 0x5c8   : > { %v3191_v18 = vpack.c.bf16 %v3103_v9, %v3095_v53  ;;  %v3105_v63 = vmax.f32 %v2977_v20, 0.0  ;;  %v2992_v62 = vadd.f32 %v6663_v22, %v2700_v3  ;;  %v2986_v36 = vadd.f32 %v6661_v21, %v2809_v1  ;;  %3256 = vperm.xlu0 %4235, %v4297_v5   ;;  %v6744_v5 = vld [vmem:[#allocation93_spill] sm:$0xff] }
 0x5c9   : > { %3510 = vmatprep.subr.bf16.mxu0 %v3194_v26  ;;  %v2694_v47 = vadd.f32 %v6730_v57, %v5937_v2  ;;  %v3112_v38 = vmax.f32 %v2984_v50, 0.0  ;;  %v2994_v29 = vadd.f32 %v6663_v22, %v2813_v7  ;;  %v2698_v31 = vadd.f32 %v6731_v34, %v5868_v10  ;;  %v6736_v50 = vld [vmem:[#allocation92_spill] sm:$0xff]  ;;  %v6742_v34 = vld [vmem:[#allocation91_spill] sm:$0xff] }
 0x5ca   : > { %3438 = vmatpush1.bf16.msra.mxu1 %v3191_v18  ;;  %v2807_v8 = vadd.f32 %v5793_v6, %v5937_v2  ;;  %v3193_v25 = vpack.c.bf16 %v3105_v63, %v3097_v27  ;;  %v3120_v41 = vmax.f32 %v2992_v62, 0.0  ;;  %v3114_v60 = vmax.f32 %v2986_v36, 0.0  ;;  %v4298_v6 = vld [vmem:[%s6512_s8 + $0x30] sm:$0xff]  ;;  %v6738_v36 = vld [vmem:[#allocation95_spill] sm:$0xff] }
 0x5cb   : > { %v2983_v16 = vadd.f32 %v6661_v21, %v2694_v47  ;;  %v3122_v37 = vmax.f32 %v2994_v29, 0.0  ;;  %v2991_v54 = vadd.f32 %v6663_v22, %v2698_v31  ;;  %v2811_v11 = vadd.f32 %v5803_v59, %v5868_v10  ;;  %3252 = vperm.xlu1 %4236, %v4298_v6   ;;  %v6739_v47 = vld [vmem:[#allocation45_spill] sm:$0xff]  ;;  %v6746_v6 = vld [vmem:[#allocation94_spill] sm:$0xff] }
 0x5cc   : > { %v2985_v14 = vadd.f32 %v6661_v21, %v2807_v8  ;;  %3511 = vmatpush1.bf16.msra.mxu0 %v3193_v25  ;;  %v3200_v2 = vpack.c.bf16 %v3120_v41, %v3112_v38  ;;  %v2710_v45 = vadd.f32 %v6732_v28, %v5995_v15  ;;  %v2823_v55 = vadd.f32 %v5853_v19, %v5995_v15  ;;  %v6734_v19 = vld [vmem:[#allocation46_spill] sm:$0xff] }
 0x5cd   : > { %v3111_v40 = vmax.f32 %v2983_v16, 0.0  ;;  %v3202_v44 = vpack.c.bf16 %v3122_v37, %v3114_v60  ;;  %v3119_v33 = vmax.f32 %v2991_v54, 0.0  ;;  %v2993_v59 = vadd.f32 %v6663_v22, %v2811_v11  ;;  %v6745_v11 = vld [vmem:[#allocation89_spill] sm:$0xff] }
 0x5ce   : > { %v3113_v10 = vmax.f32 %v2985_v14, 0.0  ;;  %3439 = vmatprep.subr.bf16.mxu1 %v3200_v2  ;;  %v3008_v21 = vadd.f32 %v5811_v17, %v2710_v45  ;;  %v3010_v4 = vadd.f32 %v5811_v17, %v2823_v55  ;;  %v2708_v23 = vadd.f32 %v6733_v51, %v5995_v15 }
 0x5cf   : > { %v2821_v53 = vadd.f32 %v5846_v0, %v5995_v15  ;;  %3512 = vmatprep.subr.bf16.mxu0 %v3202_v44  ;;  %v3199_v9 = vpack.c.bf16 %v3119_v33, %v3111_v40  ;;  %v3121_v13 = vmax.f32 %v2993_v59, 0.0  ;;  %v2716_v56 = vadd.f32 %v6734_v19, %v5981_v48 }
 0x5d0   : > { %v3024_v22 = vadd.f32 %v6039_v49, %v5950_v24  ;;  %v3136_v43 = vmax.f32 %v3008_v21, 0.0  ;;  %v3138_v26 = vmax.f32 %v3010_v4, 0.0  ;;  %v3007_v20 = vadd.f32 %v5811_v17, %v2708_v23 }
 0x5d1   : > { %v3009_v52 = vadd.f32 %v5811_v17, %v2821_v53  ;;  %3440 = vmatpush1.bf16.msra.mxu1 %v3199_v9  ;;  %v3201_v3 = vpack.c.bf16 %v3121_v13, %v3113_v10  ;;  %v3016_v1 = vadd.f32 %v6016_v58, %v2716_v56  ;;  %v2829_v15 = vadd.f32 %v5899_v42, %v5981_v48  ;;  %v6740_v42 = vld [vmem:[#allocation90_spill] sm:$0xff] }
 0x5d2   : > { %v3152_v0 = vmax.f32 %v3024_v22, 0.0  ;;  %v6735_v18 = vmax.f32 %v5924_v46, 0.0  ;;  %v6737_v7 = vmax.f32 %v6736_v50, 0.0  ;;  %v3135_v32 = vmax.f32 %v3007_v20, 0.0 }
 0x5d3   : > { %v3137_v63 = vmax.f32 %v3009_v52, 0.0  ;;  %3513 = vmatpush1.bf16.msra.mxu0 %v3201_v3  ;;  %v3144_v62 = vmax.f32 %v3016_v1, 0.0  ;;  %v3018_v17 = vadd.f32 %v6016_v58, %v2829_v15  ;;  %v3026_v57 = vadd.f32 %v6039_v49, %v6738_v36 }
 0x5d4   : > { %v3208_v27 = vpack.c.bf16 %v3136_v43, %v6735_v18  ;;  %v3210_v24 = vpack.c.bf16 %v3138_v26, %v6737_v7  ;;  %v2714_v38 = vadd.f32 %v6739_v47, %v5981_v48  ;;  %v6741_v46 = vmax.f32 %v6740_v42, 0.0 }
 0x5d5   : > { %v6743_v31 = vmax.f32 %v6742_v34, 0.0  ;;  %v3023_v25 = vadd.f32 %v6039_v49, %v6744_v5  ;;  %v3216_v41 = vpack.c.bf16 %v3152_v0, %v3144_v62  ;;  %v3146_v60 = vmax.f32 %v3018_v17, 0.0 }
 0x5d6   : > { %3441 = vmatprep.subr.bf16.mxu1 %v3208_v27  ;;  %3514 = vmatprep.subr.bf16.mxu0 %v3210_v24  ;;  %v3207_v29 = vpack.c.bf16 %v3135_v32, %v6741_v46  ;;  %v3154_v16 = vmax.f32 %v3026_v57, 0.0  ;;  %v3015_v37 = vadd.f32 %v6016_v58, %v2714_v38  ;;  %v2827_v14 = vadd.f32 %v6745_v11, %v5981_v48  ;;  %v3674_v48 = vld [vmem:[%s6512_s8 + $0x8] sm:$0xff] }
 0x5d7   : > { %v3209_v8 = vpack.c.bf16 %v3137_v63, %v6743_v31  ;;  %v3151_v54 = vmax.f32 %v3023_v25, 0.0  ;;  %v3025_v2 = vadd.f32 %v6039_v49, %v6746_v6  ;;  %v4403_v49 = vmov 5  }
 0x5d8   : > { %3442 = vmatpush1.bf16.msra.mxu1 %v3207_v29  ;;  %v3218_v40 = vpack.c.bf16 %v3154_v16, %v3146_v60  ;;  %v3143_v28 = vmax.f32 %v3015_v37, 0.0  ;;  %v3017_v45 = vadd.f32 %v6016_v58, %v2827_v14  ;;  %v3673_v58 = vld [vmem:[%s6512_s8] sm:$0xff]  ;;  %4238 = vset.pattern.permute.xlu0 %v4403_v49 }
 0x5d9   : > { %3515 = vmatpush1.bf16.msra.mxu0 %v3209_v8  ;;  %3443 = vmatprep.subr.bf16.mxu1 %v3216_v41  ;;  %v3153_v55 = vmax.f32 %v3025_v2, 0.0 }
 0x5da   : > { %3516 = vmatprep.subr.bf16.mxu0 %v3218_v40  ;;  %v3215_v44 = vpack.c.bf16 %v3151_v54, %v3143_v28  ;;  %v3145_v33 = vmax.f32 %v3017_v45, 0.0  ;;  %4237 = vset.pattern.permute.xlu1 %v4403_v49 }
 0x5db   : > { %3682 = vperm.xlu0 %4238, %v3674_v48   ;;  %3677 = vperm.xlu1 %4237, %v3673_v58  }
 0x5dc   : > { %3444 = vmatpush1.bf16.msra.mxu1 %v3215_v44  ;;  %v3217_v59 = vpack.c.bf16 %v3153_v55, %v3145_v33 }
 0x5de   : > { %3517 = vmatpush1.bf16.msra.mxu0 %v3217_v59 }
 0x5df   : > { %3462 = vmatmul.mubr.bf16.vlgmr.msra.gmra.mrb[192].mxu1 %v6079_v30 }
 0x5e0   : > { %3471 = vmatprep.mubr.bf16.mxu1 %v6697_v35 }
 0x5e1   : > { %3535 = vmatmul.mubr.bf16.vlgmr.msra.gmra.mrb[208].mxu0 %v6079_v30 }
 0x5e2   : > { %3544 = vmatprep.mubr.bf16.mxu0 %v6697_v35 }
 0x5e7   : > { %3472 = vmatmul.mubr.bf16.gmra.mrb[196].mxu1 %v6120_v61 }
 0x5e8   : > { %3481 = vmatprep.mubr.bf16.mxu1 %v6697_v35 }
 0x5e9   : > { %3545 = vmatmul.mubr.bf16.gmra.mrb[212].mxu0 %v6120_v61 }
 0x5ea   : > { %3554 = vmatprep.mubr.bf16.mxu0 %v6697_v35 }
 0x5ef   : > { %3482 = vmatmul.mubr.bf16.gmra.mrb[200].mxu1 %v6160_v12 }
 0x5f0   : > { %3491 = vmatprep.mubr.bf16.mxu1 %v6697_v35 }
 0x5f1   : > { %3555 = vmatmul.mubr.bf16.gmra.mrb[216].mxu0 %v6160_v12 }
 0x5f2   : > { %3564 = vmatprep.mubr.bf16.mxu0 %v6697_v35 }
 0x5f7   : > { %3492 = vmatmul.mubr.bf16.gmra.mrb[204].mxu1 %v6209_v39 }
 0x5f8   : > { %3725 = vmatprep.mubr.bf16.mxu1 %v6697_v35 }
 0x5f9   : > { %3565 = vmatmul.mubr.bf16.gmra.mrb[220].mxu0 %v6209_v39 }
 0x5fa   : > { %3811 = vmatprep.mubr.bf16.mxu0 %v6697_v35 }
 0x637   : > { %v6329_v61 = vpop.permute.xlu1 %3232 }
 0x638   : > { %v6327_v30 = vpop.permute.xlu0 %3228 }
 0x63e   : > { %v6338_v0 = vpop.permute.xlu1 %3236  ;;  %v6344_v36 = vpop.permute.xlu0 %3240 }
 0x643   : > { %v6355_v33 = vpop.permute.xlu0 %3248 }
 0x646   : > { %v6359_v48 = vpop.permute.xlu1 %3244 }
 0x67e   : > { %v3317_v12 = vpop.f32.mrb[176].mxu1 }
 0x67f   : > { %v3319_v39 = vpop.f32.mrb[177].mxu1  ;;  %v3318_v10 = vadd.f32 %v3317_v12, %v6327_v30  ;;  %v3390_v4 = vpop.f32.mrb[192].mxu0 }
 0x680   : > { %v3320_v21 = vadd.f32 %v3319_v39, %v6327_v30  ;;  %v3321_v51 = vpop.f32.mrb[178].mxu1  ;;  %v3391_v23 = vadd.f32 %v3390_v4, %v6327_v30  ;;  %v3392_v9 = vpop.f32.mrb[193].mxu0 }
 0x681   : > { %v3322_v53 = vadd.f32 %v3321_v51, %v6329_v61  ;;  %v3323_v13 = vpop.f32.mrb[179].mxu1  ;;  %v3393_v19 = vadd.f32 %v3392_v9, %v6327_v30  ;;  %v3394_v22 = vpop.f32.mrb[194].mxu0  ;;  %v3575_v43 = vmax.f32 %v3318_v10, 0.0 }
 0x682   : > { %v3324_v56 = vadd.f32 %v3323_v13, %v6329_v61  ;;  %v3395_v20 = vadd.f32 %v3394_v22, %v6329_v61  ;;  %v3396_v52 = vpop.f32.mrb[195].mxu0  ;;  %v3576_v3 = vmax.f32 %v3320_v21, 0.0  ;;  %v3577_v18 = vmax.f32 %v3391_v23, 0.0 }
 0x683   : > { %v3583_v26 = vmax.f32 %v3322_v53, 0.0  ;;  %v3397_v15 = vadd.f32 %v3396_v52, %v6329_v61  ;;  %v3578_v7 = vmax.f32 %v3393_v19, 0.0 }
 0x684   : > { %v3584_v1 = vmax.f32 %v3324_v56, 0.0  ;;  %v3585_v50 = vmax.f32 %v3395_v20, 0.0 }
 0x685   : > { %v3639_v27 = vpack.c.bf16 %v3583_v26, %v3575_v43  ;;  %v3586_v63 = vmax.f32 %v3397_v15, 0.0 }
 0x686   : > { %v3640_v24 = vpack.c.bf16 %v3584_v1, %v3576_v3  ;;  %v3327_v32 = vpop.f32.mrb[180].mxu1  ;;  %v6341_v62 = vpack.c.bf16 %v3585_v50, %v3577_v18 }
 0x687   : > { %v3328_v17 = vadd.f32 %v3327_v32, %v6338_v0  ;;  %v3329_v57 = vpop.f32.mrb[181].mxu1  ;;  %v6346_v47 = vpack.c.bf16 %v3586_v63, %v3578_v7  ;;  %v3400_v42 = vpop.f32.mrb[196].mxu0 }
 0x688   : > { %v3330_v38 = vadd.f32 %v3329_v57, %v6338_v0  ;;  %v3331_v46 = vpop.f32.mrb[182].mxu1  ;;  %3693 = vmatprep.subr.bf16.mxu1 %v3640_v24  ;;  %v3401_v29 = vadd.f32 %v3400_v42, %v6338_v0  ;;  %v3402_v31 = vpop.f32.mrb[197].mxu0 }
 0x689   : > { %v3332_v34 = vadd.f32 %v3331_v46, %v6344_v36  ;;  %v3333_v8 = vpop.f32.mrb[183].mxu1  ;;  %3694 = vmatpush1.bf16.msra.mxu1 %v3639_v27  ;;  %v3403_v5 = vadd.f32 %v3402_v31, %v6338_v0  ;;  %v3404_v41 = vpop.f32.mrb[198].mxu0  ;;  %v3591_v60 = vmax.f32 %v3328_v17, 0.0 }
 0x68a   : > { %v3334_v25 = vadd.f32 %v3333_v8, %v6344_v36  ;;  %v3405_v37 = vadd.f32 %v3404_v41, %v6344_v36  ;;  %v3406_v54 = vpop.f32.mrb[199].mxu0  ;;  %v3592_v11 = vmax.f32 %v3330_v38, 0.0  ;;  %v3593_v2 = vmax.f32 %v3401_v29, 0.0  ;;  %v6371_v63 = vpop.permute.xlu1 %3252 }
 0x68b   : > { %v3599_v16 = vmax.f32 %v3332_v34, 0.0  ;;  %v3407_v6 = vadd.f32 %v3406_v54, %v6344_v36  ;;  %v3594_v45 = vmax.f32 %v3403_v5, 0.0  ;;  %v6374_v46 = vpop.permute.xlu0 %3256 }
 0x68c   : > { %v3600_v14 = vmax.f32 %v3334_v25, 0.0  ;;  %v3601_v28 = vmax.f32 %v3405_v37, 0.0 }
 0x68d   : > { %v3647_v40 = vpack.c.bf16 %v3599_v16, %v3591_v60  ;;  %v3602_v44 = vmax.f32 %v3407_v6, 0.0 }
 0x68e   : > { %v3648_v55 = vpack.c.bf16 %v3600_v14, %v3592_v11  ;;  %v6357_v59 = vpack.c.bf16 %v3601_v28, %v3593_v2  ;;  %v3337_v58 = vpop.f32.mrb[184].mxu1 }
 0x68f   : > { %v3338_v49 = vadd.f32 %v3337_v58, %v6359_v48  ;;  %v6362_v12 = vpack.c.bf16 %v3602_v44, %v3594_v45  ;;  %v3339_v39 = vpop.f32.mrb[185].mxu1  ;;  %v3410_v10 = vpop.f32.mrb[200].mxu0 }
 0x690   : > { %3695 = vmatprep.subr.bf16.mxu1 %v3648_v55  ;;  %v3340_v21 = vadd.f32 %v3339_v39, %v6359_v48  ;;  %v3411_v4 = vadd.f32 %v3410_v10, %v6359_v48  ;;  %v3341_v51 = vpop.f32.mrb[186].mxu1  ;;  %v3412_v23 = vpop.f32.mrb[201].mxu0 }
 0x691   : > { %3696 = vmatpush1.bf16.msra.mxu1 %v3647_v40  ;;  %v3342_v53 = vadd.f32 %v3341_v51, %v6355_v33  ;;  %v3413_v9 = vadd.f32 %v3412_v23, %v6359_v48  ;;  %v3343_v13 = vpop.f32.mrb[187].mxu1  ;;  %v3414_v19 = vpop.f32.mrb[202].mxu0  ;;  %v3607_v26 = vmax.f32 %v3338_v49, 0.0 }
 0x692   : > { %v3344_v56 = vadd.f32 %v3343_v13, %v6355_v33  ;;  %v3415_v22 = vadd.f32 %v3414_v19, %v6355_v33  ;;  %v3416_v43 = vpop.f32.mrb[203].mxu0  ;;  %v3608_v3 = vmax.f32 %v3340_v21, 0.0  ;;  %v3609_v1 = vmax.f32 %v3411_v4, 0.0  ;;  %v6383_v21 = vld [vmem:[#allocation2] sm:$0xff]  }
 0x693   : > { %v3615_v20 = vmax.f32 %v3342_v53, 0.0  ;;  %v3417_v52 = vadd.f32 %v3416_v43, %v6355_v33  ;;  %v3610_v50 = vmax.f32 %v3413_v9, 0.0 }
 0x694   : > { %v3616_v15 = vmax.f32 %v3344_v56, 0.0  ;;  %v3617_v18 = vmax.f32 %v3415_v22, 0.0 }
 0x695   : > { %v3655_v27 = vpack.c.bf16 %v3615_v20, %v3607_v26  ;;  %v3618_v7 = vmax.f32 %v3417_v52, 0.0 }
 0x696   : > { %v3656_v24 = vpack.c.bf16 %v3616_v15, %v3608_v3  ;;  %v3657_v32 = vpack.c.bf16 %v3617_v18, %v3609_v1 }
 0x697   : > { %v3347_v17 = vpop.f32.mrb[188].mxu1  ;;  %v3658_v57 = vpack.c.bf16 %v3618_v7, %v3610_v50 }
 0x698   : > { %v3348_v38 = vadd.f32 %v3347_v17, %v6371_v63  ;;  %v3349_v42 = vpop.f32.mrb[189].mxu1  ;;  %3697 = vmatprep.subr.bf16.mxu1 %v3656_v24 }
 0x699   : > { %v3350_v29 = vadd.f32 %v3349_v42, %v6371_v63  ;;  %v3351_v34 = vpop.f32.mrb[190].mxu1  ;;  %v3420_v31 = vpop.f32.mrb[204].mxu0  ;;  %3698 = vmatpush1.bf16.msra.mxu1 %v3655_v27 }
 0x69a   : > { %v3352_v8 = vadd.f32 %v3351_v34, %v6374_v46  ;;  %v3353_v5 = vpop.f32.mrb[191].mxu1  ;;  %v3421_v25 = vadd.f32 %v3420_v31, %v6371_v63  ;;  %v3422_v41 = vpop.f32.mrb[205].mxu0  ;;  %v3623_v16 = vmax.f32 %v3348_v38, 0.0 }
 0x69b   : > { %v3354_v60 = vadd.f32 %v3353_v5, %v6374_v46  ;;  %v3423_v37 = vadd.f32 %v3422_v41, %v6371_v63  ;;  %v3424_v11 = vpop.f32.mrb[206].mxu0  ;;  %v3624_v14 = vmax.f32 %v3350_v29, 0.0 }
 0x69c   : > { %v3631_v54 = vmax.f32 %v3352_v8, 0.0  ;;  %v3425_v6 = vadd.f32 %v3424_v11, %v6374_v46  ;;  %v3426_v40 = vpop.f32.mrb[207].mxu0  ;;  %v3625_v55 = vmax.f32 %v3421_v25, 0.0 }
 0x69d   : > { %v3632_v2 = vmax.f32 %v3354_v60, 0.0  ;;  %v3427_v45 = vadd.f32 %v3426_v40, %v6374_v46  ;;  %v3626_v49 = vmax.f32 %v3423_v37, 0.0 }
 0x69e   : > { %v3663_v28 = vpack.c.bf16 %v3631_v54, %v3623_v16  ;;  %v3633_v44 = vmax.f32 %v3425_v6, 0.0 }
 0x69f   : > { %v3664_v58 = vpack.c.bf16 %v3632_v2, %v3624_v14  ;;  %v3634_v39 = vmax.f32 %v3427_v45, 0.0 }
 0x6a0   : > { %v3665_v10 = vpack.c.bf16 %v3633_v44, %v3625_v55 }
 0x6a1   : > { %3699 = vmatprep.subr.bf16.mxu1 %v3664_v58  ;;  %v3666_v4 = vpack.c.bf16 %v3634_v39, %v3626_v49 }
 0x6a2   : > { %3700 = vmatpush1.bf16.msra.mxu1 %v3663_v28 }
 0x6a3   : > { %3736 = vmatprep.subr.bf16.mxu1 %v6346_v47 }
 0x6a5   : > { %4101 = vmatmul.mubr.msk.bf16.vlgmr.msra.gmra.mrb[208].mxu1 %vm1305_vm2, %v6383_v21 }
 0x6a6   : > { %3737 = vmatpush1.bf16.msra.mxu1 %v6341_v62  ;;  %3768 = vmatprep.mubr.bf16.mxu1 %v6697_v35 }
 0x6a7   : > { %3738 = vmatprep.subr.bf16.mxu1 %v6362_v12 }
 0x6aa   : > { %3739 = vmatpush1.bf16.msra.mxu1 %v6357_v59 }
 0x6ab   : > { %3740 = vmatprep.subr.bf16.mxu1 %v3658_v57 }
 0x6ae   : > { %3741 = vmatpush1.bf16.msra.mxu1 %v3657_v32 }
 0x6af   : > { %3742 = vmatprep.subr.bf16.mxu1 %v3666_v4 }
 0x6b2   : > { %v3463_v51 = vpop.f32.mrb[192].mxu1  ;;  %3743 = vmatpush1.bf16.msra.mxu1 %v3665_v10 }
 0x6b3   : > { %v3464_v23 = vadd.f32 %v3463_v51, %v6327_v30  ;;  %v3465_v53 = vpop.f32.mrb[193].mxu1 }
 0x6b4   : > { %v3466_v47 = vadd.f32 %v3465_v53, %v6327_v30  ;;  %v3467_v9 = vpop.f32.mrb[194].mxu1  ;;  %v3536_v13 = vpop.f32.mrb[208].mxu0 }
 0x6b5   : > { %v3468_v62 = vadd.f32 %v3467_v9, %v6329_v61  ;;  %v3469_v19 = vpop.f32.mrb[195].mxu1  ;;  %v3537_v56 = vadd.f32 %v3536_v13, %v6327_v30  ;;  %v3538_v12 = vpop.f32.mrb[209].mxu0  ;;  %4102 = vmatmul.mubr.msk.bf16.vlgmr.msra.gmra.mrb[212].mxu1 %vm1305_vm2, %v6383_v21  ;;  %v3579_v22 = vmax.f32 %v3464_v23, 0.0 }
 0x6b6   : > { %v3470_v59 = vadd.f32 %v3469_v19, %v6329_v61  ;;  %v3539_v43 = vadd.f32 %v3538_v12, %v6327_v30  ;;  %v3540_v20 = vpop.f32.mrb[210].mxu0  ;;  %3854 = vmatprep.mubr.bf16.mxu1 %v6697_v35  ;;  %v3580_v52 = vmax.f32 %v3466_v47, 0.0 }
 0x6b7   : > { %v3587_v26 = vmax.f32 %v3468_v62, 0.0  ;;  %v3541_v3 = vadd.f32 %v3540_v20, %v6329_v61  ;;  %v3542_v15 = vpop.f32.mrb[211].mxu0  ;;  %v3581_v50 = vmax.f32 %v3537_v56, 0.0 }
 0x6b8   : > { %v3588_v1 = vmax.f32 %v3470_v59, 0.0  ;;  %v3543_v27 = vadd.f32 %v3542_v15, %v6329_v61  ;;  %v3582_v17 = vmax.f32 %v3539_v43, 0.0 }
 0x6b9   : > { %v3643_v18 = vpack.c.bf16 %v3587_v26, %v3579_v22  ;;  %v3589_v7 = vmax.f32 %v3541_v3, 0.0 }
 0x6ba   : > { %v3644_v24 = vpack.c.bf16 %v3588_v1, %v3580_v52  ;;  %v3473_v32 = vpop.f32.mrb[196].mxu1  ;;  %v3590_v57 = vmax.f32 %v3543_v27, 0.0 }
 0x6bb   : > { %v3474_v30 = vadd.f32 %v3473_v32, %v6338_v0  ;;  %v3475_v38 = vpop.f32.mrb[197].mxu1  ;;  %v3645_v42 = vpack.c.bf16 %v3589_v7, %v3581_v50 }
 0x6bc   : > { %v3476_v35 = vadd.f32 %v3475_v38, %v6338_v0  ;;  %v3477_v29 = vpop.f32.mrb[198].mxu1  ;;  %3779 = vmatprep.subr.bf16.mxu0 %v3644_v24  ;;  %v3646_v34 = vpack.c.bf16 %v3590_v57, %v3582_v17  ;;  %v3546_v31 = vpop.f32.mrb[212].mxu0 }
 0x6bd   : > { %v3478_v8 = vadd.f32 %v3477_v29, %v6344_v36  ;;  %v3479_v5 = vpop.f32.mrb[199].mxu1  ;;  %3780 = vmatpush1.bf16.msra.mxu0 %v3643_v18  ;;  %v3547_v61 = vadd.f32 %v3546_v31, %v6338_v0  ;;  %v3548_v25 = vpop.f32.mrb[213].mxu0  ;;  %v3595_v60 = vmax.f32 %v3474_v30, 0.0 }
 0x6be   : > { %v3480_v41 = vadd.f32 %v3479_v5, %v6344_v36  ;;  %v3549_v16 = vadd.f32 %v3548_v25, %v6338_v0  ;;  %v3550_v54 = vpop.f32.mrb[214].mxu0  ;;  %3822 = vmatprep.subr.bf16.mxu1 %v3646_v34  ;;  %v3596_v11 = vmax.f32 %v3476_v35, 0.0 }
 0x6bf   : > { %v3603_v37 = vmax.f32 %v3478_v8, 0.0  ;;  %v3551_v14 = vadd.f32 %v3550_v54, %v6344_v36  ;;  %v3552_v2 = vpop.f32.mrb[215].mxu0  ;;  %3823 = vmatpush1.bf16.msra.mxu1 %v3645_v42  ;;  %v3597_v45 = vmax.f32 %v3547_v61, 0.0 }
 0x6c0   : > { %v3604_v6 = vmax.f32 %v3480_v41, 0.0  ;;  %v3553_v28 = vadd.f32 %v3552_v2, %v6344_v36  ;;  %v3598_v49 = vmax.f32 %v3549_v16, 0.0 }
 0x6c1   : > { %v3651_v40 = vpack.c.bf16 %v3603_v37, %v3595_v60  ;;  %v3605_v55 = vmax.f32 %v3551_v14, 0.0 }
 0x6c2   : > { %v3652_v44 = vpack.c.bf16 %v3604_v6, %v3596_v11  ;;  %v3483_v58 = vpop.f32.mrb[200].mxu1  ;;  %v3606_v39 = vmax.f32 %v3553_v28, 0.0 }
 0x6c3   : > { %v3484_v0 = vadd.f32 %v3483_v58, %v6359_v48  ;;  %v3485_v10 = vpop.f32.mrb[201].mxu1  ;;  %v3653_v4 = vpack.c.bf16 %v3605_v55, %v3597_v45 }
 0x6c4   : > { %v3486_v51 = vadd.f32 %v3485_v10, %v6359_v48  ;;  %v3487_v23 = vpop.f32.mrb[202].mxu1  ;;  %3781 = vmatprep.subr.bf16.mxu0 %v3652_v44  ;;  %v3654_v53 = vpack.c.bf16 %v3606_v39, %v3598_v49  ;;  %v3556_v47 = vpop.f32.mrb[216].mxu0 }
 0x6c5   : > { %v3488_v9 = vadd.f32 %v3487_v23, %v6355_v33  ;;  %v3489_v13 = vpop.f32.mrb[203].mxu1  ;;  %3782 = vmatpush1.bf16.msra.mxu0 %v3651_v40  ;;  %v3557_v36 = vadd.f32 %v3556_v47, %v6359_v48  ;;  %v3558_v62 = vpop.f32.mrb[217].mxu0  ;;  %v3611_v56 = vmax.f32 %v3484_v0, 0.0 }
 0x6c6   : > { %v3490_v19 = vadd.f32 %v3489_v13, %v6355_v33  ;;  %v3559_v12 = vadd.f32 %v3558_v62, %v6359_v48  ;;  %v3560_v22 = vpop.f32.mrb[218].mxu0  ;;  %3824 = vmatprep.subr.bf16.mxu1 %v3654_v53  ;;  %v3612_v43 = vmax.f32 %v3486_v51, 0.0  ;;  %v3683_v44 = vpop.permute.xlu0 %3682 }
 0x6c7   : > { %v3619_v59 = vmax.f32 %v3488_v9, 0.0  ;;  %v3561_v26 = vadd.f32 %v3560_v22, %v6355_v33  ;;  %v3562_v52 = vpop.f32.mrb[219].mxu0  ;;  %3825 = vmatpush1.bf16.msra.mxu1 %v3653_v4  ;;  %v3613_v15 = vmax.f32 %v3557_v36, 0.0 }
 0x6c8   : > { %v3620_v20 = vmax.f32 %v3490_v19, 0.0  ;;  %v3563_v1 = vadd.f32 %v3562_v52, %v6355_v33  ;;  %v3614_v7 = vmax.f32 %v3559_v12, 0.0 }
 0x6c9   : > { %v3659_v3 = vpack.c.bf16 %v3619_v59, %v3611_v56  ;;  %v3621_v18 = vmax.f32 %v3561_v26, 0.0 }
 0x6ca   : > { %v3660_v27 = vpack.c.bf16 %v3620_v20, %v3612_v43  ;;  %v3493_v50 = vpop.f32.mrb[204].mxu1  ;;  %v3622_v24 = vmax.f32 %v3563_v1, 0.0 }
 0x6cb   : > { %v3494_v48 = vadd.f32 %v3493_v50, %v6371_v63  ;;  %v3495_v32 = vpop.f32.mrb[205].mxu1  ;;  %v3661_v17 = vpack.c.bf16 %v3621_v18, %v3613_v15 }
 0x6cc   : > { %v3496_v57 = vadd.f32 %v3495_v32, %v6371_v63  ;;  %v3497_v30 = vpop.f32.mrb[206].mxu1  ;;  %3783 = vmatprep.subr.bf16.mxu0 %v3660_v27  ;;  %v3662_v38 = vpack.c.bf16 %v3622_v24, %v3614_v7  ;;  %v3566_v42 = vpop.f32.mrb[220].mxu0 }
 0x6cd   : > { %v3498_v35 = vadd.f32 %v3497_v30, %v6374_v46  ;;  %v3499_v29 = vpop.f32.mrb[207].mxu1  ;;  %3784 = vmatpush1.bf16.msra.mxu0 %v3659_v3  ;;  %v3567_v33 = vadd.f32 %v3566_v42, %v6371_v63  ;;  %v3568_v34 = vpop.f32.mrb[221].mxu0  ;;  %v3627_v8 = vmax.f32 %v3494_v48, 0.0 }
 0x6ce   : > { %v3500_v31 = vadd.f32 %v3499_v29, %v6374_v46  ;;  %v3569_v5 = vadd.f32 %v3568_v34, %v6371_v63  ;;  %v3570_v25 = vpop.f32.mrb[222].mxu0  ;;  %3826 = vmatprep.subr.bf16.mxu1 %v3662_v38  ;;  %v3628_v41 = vmax.f32 %v3496_v57, 0.0 }
 0x6cf   : > { %v3635_v61 = vmax.f32 %v3498_v35, 0.0  ;;  %v3571_v60 = vadd.f32 %v3570_v25, %v6374_v46  ;;  %v3572_v37 = vpop.f32.mrb[223].mxu0  ;;  %3827 = vmatpush1.bf16.msra.mxu1 %v3661_v17  ;;  %v3629_v14 = vmax.f32 %v3567_v33, 0.0 }
 0x6d0   : > { %v3636_v16 = vmax.f32 %v3500_v31, 0.0  ;;  %v3573_v11 = vadd.f32 %v3572_v37, %v6374_v46  ;;  %v3630_v40 = vmax.f32 %v3569_v5, 0.0  ;;  %v3678_v46 = vpop.permute.xlu1 %3677 }
 0x6d1   : > { %v3667_v54 = vpack.c.bf16 %v3635_v61, %v3627_v8  ;;  %v3637_v6 = vmax.f32 %v3571_v60, 0.0 }
 0x6d2   : > { %v3668_v2 = vpack.c.bf16 %v3636_v16, %v3628_v41  ;;  %v3638_v28 = vmax.f32 %v3573_v11, 0.0 }
 0x6d3   : > { %v3669_v63 = vpack.c.bf16 %v3637_v6, %v3629_v14 }
 0x6d4   : > { %3785 = vmatprep.subr.bf16.mxu0 %v3668_v2  ;;  %v3670_v45 = vpack.c.bf16 %v3638_v28, %v3630_v40 }
 0x6d5   : > { %3786 = vmatpush1.bf16.msra.mxu0 %v3667_v54 }
 0x6d6   : > { %3828 = vmatprep.subr.bf16.mxu1 %v3670_v45 }
 0x6d7   : > { %3829 = vmatpush1.bf16.msra.mxu1 %v3669_v63 }
 0x6d8   : > { %4103 = vmatmul.mubr.msk.bf16.vlgmr.msra.gmra.mrb[224].mxu0 %vm1305_vm2, %v6383_v21 }
 0x6da   : > { %4104 = vmatmul.mubr.msk.bf16.vlgmr.msra.gmra.mrb[216].mxu1 %vm1305_vm2, %v6383_v21 }
 0x778   : > { %v3727_v55 = vpop.f32.mrb[208].mxu1 }
 0x779   : > { %v3729_v58 = vpop.f32.mrb[209].mxu1  ;;  %v3728_v49 = vadd.f32 %v3727_v55, %v3678_v46 }
 0x77a   : > { %v3731_v39 = vpop.f32.mrb[210].mxu1  ;;  %v3730_v0 = vadd.f32 %v3729_v58, %v3678_v46 }
 0x77b   : > { %3865 = vst [vmem:[%s6434_s21] sm:$0xff] %v3728_v49  ;;  %v3733_v21 = vpop.f32.mrb[211].mxu1  ;;  %v3732_v10 = vadd.f32 %v3731_v39, %v3683_v44 }
 0x77c   : > { %3866 = vst [vmem:[%s6434_s21 + $0x8] sm:$0xff] %v3730_v0  ;;  %v3734_v4 = vadd.f32 %v3733_v21, %v3683_v44 }
 0x77d   : > { %3873 = vst [vmem:[%s6434_s21 + $0x40] sm:$0xff] %v3732_v10 }
 0x77e   : > { %3874 = vst [vmem:[%s6434_s21 + $0x48] sm:$0xff] %v3734_v4 }
 0x788   : > { %v3770_v51 = vpop.f32.mrb[212].mxu1 }
 0x789   : > { %v3771_v23 = vadd.f32 %v3770_v51, %v3678_v46  ;;  %v3772_v53 = vpop.f32.mrb[213].mxu1 }
 0x78a   : > { %v3773_v47 = vadd.f32 %v3772_v53, %v3678_v46  ;;  %v3774_v9 = vpop.f32.mrb[214].mxu1 }
 0x78b   : > { %3867 = vst [vmem:[%s6434_s21 + $0x10] sm:$0xff] %v3771_v23  ;;  %v3775_v13 = vadd.f32 %v3774_v9, %v3683_v44  ;;  %v3776_v36 = vpop.f32.mrb[215].mxu1 }
 0x78c   : > { %3868 = vst [vmem:[%s6434_s21 + $0x18] sm:$0xff] %v3773_v47  ;;  %v3777_v62 = vadd.f32 %v3776_v36, %v3683_v44 }
 0x78d   : > { %3875 = vst [vmem:[%s6434_s21 + $0x50] sm:$0xff] %v3775_v13 }
 0x78e   : > { %3876 = vst [vmem:[%s6434_s21 + $0x58] sm:$0xff] %v3777_v62 }
 0x7ab   : > { %v3813_v19 = vpop.f32.mrb[224].mxu0 }
 0x7ac   : > { %v3814_v56 = vadd.f32 %v3813_v19, %v3678_v46  ;;  %v3815_v12 = vpop.f32.mrb[225].mxu0 }
 0x7ad   : > { %v3816_v59 = vadd.f32 %v3815_v12, %v3678_v46  ;;  %v3817_v22 = vpop.f32.mrb[226].mxu0  ;;  %v3856_v43 = vpop.f32.mrb[216].mxu1 }
 0x7ae   : > { %3869 = vst [vmem:[%s6434_s21 + $0x20] sm:$0xff] %v3814_v56  ;;  %v3818_v26 = vadd.f32 %v3817_v22, %v3683_v44  ;;  %v3819_v20 = vpop.f32.mrb[227].mxu0  ;;  %v3857_v52 = vadd.f32 %v3856_v43, %v3678_v46  ;;  %v3858_v3 = vpop.f32.mrb[217].mxu1 }
 0x7af   : > { %3870 = vst [vmem:[%s6434_s21 + $0x28] sm:$0xff] %v3816_v59  ;;  %v3820_v1 = vadd.f32 %v3819_v20, %v3683_v44  ;;  %v3859_v15 = vadd.f32 %v3858_v3, %v3678_v46  ;;  %v3860_v18 = vpop.f32.mrb[218].mxu1 }
 0x7b0   : > { %3877 = vst [vmem:[%s6434_s21 + $0x60] sm:$0xff] %v3818_v26  ;;  %3871 = vst [vmem:[%s6434_s21 + $0x30] sm:$0xff] %v3857_v52  ;;  %v3861_v27 = vadd.f32 %v3860_v18, %v3683_v44  ;;  %v3862_v50 = vpop.f32.mrb[219].mxu1 }
 0x7b1   : > { %3878 = vst [vmem:[%s6434_s21 + $0x68] sm:$0xff] %v3820_v1  ;;  %3872 = vst [vmem:[%s6434_s21 + $0x38] sm:$0xff] %v3859_v15  ;;  %v3863_v7 = vadd.f32 %v3862_v50, %v3683_v44 }
 0x7b2   : > { %3879 = vst [vmem:[%s6434_s21 + $0x70] sm:$0xff] %v3861_v27 }
 0x7b3   : > { %3880 = vst [vmem:[%s6434_s21 + $0x78] sm:$0xff] %v3863_v7 }
 0x7b4   : > { %4340 = shalt.err (!%p4337_p7)
}
 0x7b5   : > { %s4341_s28 = scalar_lea.hbm %s6454_s13, 2048  ;;  %s4345_s23 = scalar_lea.hbm %s6513_s9, 4096 }
 0x7b6   : > { %p4342_p8 = scmp.ne.s32.totalorder %s6454_s13, %s4341_s28  ;;  %p4346_p1 = scmp.lt.u32.totalorder %s6454_s13, %s6513_s9 }
 0x7b7   : > { %p4347_p0 = scmp.lt.u32.totalorder %s4345_s23, %s4341_s28  ;;  %p4349_p6 = scmp.lt.u32.totalorder %s4341_s28, %s6454_s13 }
 0x7b8   : > { %p4343_p11 = pnand %p4342_p8, %p6747_p9 }
 0x7b9   : > { %p4348_p5 = por %p4347_p0, %p4346_p1 }
 0x7ba   : > { %p4344_p13 = pneg %p4343_p11 }
 0x7bb   : > { %p4350_p10 = por %p4349_p6, %p4348_p5 }
 0x7bd   : > { %p4351_p12 = pnand %p4350_p10, %p4344_p13 }
 0x7bf   : > { %4354 = shalt.err (!%p4351_p12)
}
 0x7c0   : > { %s4405_s17 = smov 1024   ;;  %s4406_s22 = smov 64  }
 0x7c1   : > { %4164 = dma.vmem_to_hbm [thread:$0]  (%p6747_p9), %s6456_s27, 2048, %s6454_s13, %s6463_s16, %s4405_s17, %s4405_s17, %s4406_s22  }
 0x7c2 PF: > { %p4176_p2 = scmp.ge.s32.totalorder %s4393_s12, 2  ;;  %s3910_s25 = sand.u32 1, %s4381_s30  }
 0x7c3   : > { %p6748_p3 = scmp.ne.s32.totalorder %s6540_s20, 0  ;;  %s3911_s26 = scalar_lea.sflag [#allocation4], %s3910_s25 }
 0x7c5   : > { %p4171_p4 = pnand %p4176_p2, %p6748_p3 }
 0x7c7   : > { %4376 = dma.done.wait (!%p4171_p4), %s3911_s26, 2048  }
 0x7c8   : > { %4378 = vsyncadd (!%p4171_p4), %s3911_s26, 4294965248  ;;  %p20_p7 = scmp.ge.s32.totalorder %s4482_s15, 4   ;;  %s6749_s30 = smov %s4385_s10 }
 0x7c9   : > { %s6750_s10 = smov %s4389_s11  ;;  %s6751_s11 = smov %s4493_s18 }
 0x7ca   : > { %s6752_s12 = smov %s4482_s15  ;;  %22 = sbr.rel (!%p20_p7) target bundleno = 4 (0x4), region = 96 }
 0x7d1   :  { %3916 = vsyncpa [#allocation3], 1 }
 0x7d2   :  { %3918 = vsyncpa [#allocation3 + $0x1], 1 }
 0x7d3   :  { %3919 = vsyncpa [#allocation4], 1 }
 0x7d4   :  { %3921 = vsyncpa [#allocation4 + $0x1], 1 }

</bundles_post_ra>
